<compile_context>
chip_gen: v5e
topology: v5e:2x2
jax: 0.10.0
libtpu: 0.0.40
codegen_flags: <defaults>
</compile_context>

<pallas_src>
import functools

import jax
import jax.numpy as jnp
from jax import lax
from jax.experimental import pallas as pl
from jax.experimental.pallas import tpu as pltpu

KERNEL_SIZE = 7
PAD = KERNEL_SIZE // 2


def _spatial_attention_kernel(w_ref, idx_ref, x_ref, o_ref, sum_acc, max_acc,
                              *, h, w, c_total):
    # w_ref   : SMEM f32[2*K*K]           flattened conv1 weight, channel-major
    # idx_ref : VMEM i32[2, 1, HW]        flat row / col index of every pixel
    # x_ref   : VMEM x.dtype[B, C_TILE, HW]
    # o_ref   : VMEM x.dtype[B, 1, HW]
    # sum_acc / max_acc : VMEM f32[B, 1, HW]  running channel sum / max
    k = KERNEL_SIZE
    hw = h * w
    c_step = pl.program_id(1)
    n_c = pl.num_programs(1)

    @pl.when(c_step == 0)
    def _init():
        sum_acc[...] = jnp.zeros_like(sum_acc)
        max_acc[...] = jnp.full_like(max_acc, -jnp.inf)

    # Channel-tile reduction; upcast to f32 right after load (input may be bf16).
    xf = x_ref[...].astype(jnp.float32)
    sum_acc[...] += xf.sum(axis=1, keepdims=True)
    max_acc[...] = jnp.maximum(max_acc[...], xf.max(axis=1, keepdims=True))

    @pl.when(c_step == n_c - 1)
    def _finalize():
        avg = sum_acc[...] * (1.0 / c_total)          # (B, 1, HW)
        mx = max_acc[...]                             # (B, 1, HW)

        idx = idx_ref[...]
        row = idx[0:1]                                # (1, 1, HW)
        col = idx[1:2]                                # (1, 1, HW)

        # Edge-validity masks, hoisted out of the tap loop (7 + 7 of them).
        rowv, colv = [], []
        for d in range(-PAD, PAD + 1):
            rd = row + d
            cd = col + d
            rowv.append(jnp.logical_and(rd >= 0, rd < h))
            colv.append(jnp.logical_and(cd >= 0, cd < w))

        # Hoisted scalar weight reads (SMEM), channel-major [avg, max].
        wa = [[w_ref[kh * k + kw] for kw in range(k)] for kh in range(k)]
        wm = [[w_ref[k * k + kh * k + kw] for kw in range(k)] for kh in range(k)]

        # 7x7 conv over the 2-channel [avg, max] stack as 49 shifted FMAs on the
        # flattened map: a (dh, dw) spatial shift == flat lane roll of dh*W + dw,
        # with wrap-around killed by the row/col validity mask (XLU roll + VPU).
        acc = jnp.zeros_like(avg)
        for kh in range(k):
            dh = kh - PAD
            for kw in range(k):
                dw = kw - PAD
                rs = (-(dh * w + dw)) % hw            # static roll amount
                a_t = pltpu.roll(avg, shift=rs, axis=2) if rs else avg
                m_t = pltpu.roll(mx, shift=rs, axis=2) if rs else mx
                tap = a_t * wa[kh][kw] + m_t * wm[kh][kw]
                if dh == 0 and dw == 0:
                    acc = acc + tap
                else:
                    valid = jnp.logical_and(rowv[kh], colv[kw])
                    acc = acc + jnp.where(valid, tap, 0.0)

        # Numerically stable sigmoid (exp runs on the EUP; no inf intermediate).
        e = jnp.exp(-jnp.abs(acc))
        out = jnp.where(acc >= 0.0, 1.0, e) / (1.0 + e)
        o_ref[...] = out.astype(o_ref.dtype)


def _choose_tiles(n, c, hw, itemsize, budget_bytes=4 * 1024 * 1024):
    """Pick (batch_tile, channel_tile) so one x block stays well under the
    scoped-VMEM budget (v7x: 64 MiB physical / 32 MiB default scoped) while
    still giving the pipeline reasonably large, lane-dense blocks."""
    full_c_bytes = c * hw * itemsize
    if full_c_bytes <= budget_bytes:
        c_tile = c
        b_tile = max(1, min(n, budget_bytes // max(1, full_c_bytes)))
    else:
        # Channel-tile (multiple of 8 on the sublane axis) with accumulators.
        c_tile = c
        cand = max(8, (budget_bytes // (hw * itemsize)) // 8 * 8)
        while cand >= 8:
            if c % cand == 0:
                c_tile = cand
                break
            cand -= 8
        b_tile = 1
    if n >= 2:
        # Keep >= 2 batch-parallel grid steps (v7x has 2 TensorCores).
        b_tile = min(b_tile, max(1, n // 2))
    while n % b_tile != 0:
        b_tile -= 1
    return b_tile, c_tile


def spatial_attention(x: jax.Array, conv_weight: jax.Array) -> jax.Array:
    """x: [N, C, H, W] (f32 or bf16), conv_weight: f32[1, 2, K, K] -> [N, 1, H, W]."""
    N, C, H, W = x.shape
    HW = H * W
    w_flat = conv_weight.reshape(-1).astype(jnp.float32)        # (2*K*K,)
    x_flat = x.reshape(N, C, HW)                                # free, lane-dense

    rows = jnp.repeat(jnp.arange(H, dtype=jnp.int32), W)
    cols = jnp.tile(jnp.arange(W, dtype=jnp.int32), H)
    idx = jnp.stack([rows, cols]).reshape(2, 1, HW)

    b_tile, c_tile = _choose_tiles(N, C, HW, x.dtype.itemsize)
    grid = (N // b_tile, C // c_tile)

    out = pl.pallas_call(
        functools.partial(_spatial_attention_kernel, h=H, w=W, c_total=C),
        out_shape=jax.ShapeDtypeStruct((N, 1, HW), x.dtype),
        grid_spec=pltpu.PrefetchScalarGridSpec(
            num_scalar_prefetch=0,
            grid=grid,
            in_specs=[
                pl.BlockSpec(memory_space=pltpu.MemorySpace.SMEM),           # weights
                pl.BlockSpec((2, 1, HW), lambda b, c: (0, 0, 0)),            # row/col idx
                pl.BlockSpec((b_tile, c_tile, HW), lambda b, c: (b, c, 0)),  # x
            ],
            out_specs=pl.BlockSpec((b_tile, 1, HW), lambda b, c: (b, 0, 0)),
            scratch_shapes=[
                pltpu.VMEM((b_tile, 1, HW), jnp.float32),   # running channel sum
                pltpu.VMEM((b_tile, 1, HW), jnp.float32),   # running channel max
            ],
        ),
        compiler_params=pltpu.CompilerParams(
            dimension_semantics=("parallel", "arbitrary"),
            vmem_limit_bytes=32 * 1024 * 1024,
        ),
    )(w_flat, idx, x_flat)
    return out.reshape(N, 1, H, W)


def _reference(x, conv_weight):
    avg = jnp.mean(x, axis=1, keepdims=True)
    mx = jnp.max(x, axis=1, keepdims=True)
    cat = jnp.concatenate([avg, mx], axis=1)                    # (N, 2, H, W)
    y = lax.conv_general_dilated(
        cat, conv_weight,
        window_strides=(1, 1),
        padding=[(PAD, PAD), (PAD, PAD)],
        dimension_numbers=("NCHW", "OIHW", "NCHW"))
    return jax.nn.sigmoid(y)


if __name__ == "__main__":
    key = jax.random.PRNGKey(0)
    kx, kw = jax.random.split(key)

    N, C, H, W = 2, 4, 16, 16
    x = jax.random.normal(kx, (N, C, H, W), dtype=jnp.float32)

    # Deterministic synthetic init for nn.Conv2d(2, 1, 7, bias=False) weight.
    fan_in = 2 * KERNEL_SIZE * KERNEL_SIZE
    bound = 1.0 / (fan_in ** 0.5)
    conv_w = jax.random.uniform(
        kw, (1, 2, KERNEL_SIZE, KERNEL_SIZE),
        minval=-bound, maxval=bound, dtype=jnp.float32)

    # f32 path (tight check vs XLA reference).
    out = jax.block_until_ready(spatial_attention(x, conv_w))
    ref = _reference(x, conv_w)
    assert out.shape == (N, 1, H, W)
    assert jnp.allclose(out, ref, atol=1e-5, rtol=1e-5)

    # bf16 path: kernel accepts the model's native dtype and upcasts in-kernel.
    x_bf16 = x.astype(jnp.bfloat16)
    out_bf16 = jax.block_until_ready(spatial_attention(x_bf16, conv_w))
    ref_bf16 = _reference(x_bf16.astype(jnp.float32), conv_w)
    assert out_bf16.dtype == jnp.bfloat16
    assert jnp.allclose(out_bf16.astype(jnp.float32), ref_bf16, atol=1e-2)

    print("KERNEL_OK")
</pallas_src>

<mosaic_0001>
module attributes {stable_mosaic.version = 11 : i64} {
  func.func @_spatial_attention_kernel(%arg0: i32, %arg1: i32, %arg2: memref<98xf32, #tpu.memory_space<smem>>, %arg3: memref<2x1x256xi32, #tpu.memory_space<vmem>>, %arg4: memref<1x4x256xf32, #tpu.memory_space<vmem>>, %arg5: memref<1x1x256xf32, #tpu.memory_space<vmem>>, %arg6: memref<1x1x256xf32, #tpu.memory_space<vmem>>, %arg7: memref<1x1x256xf32, #tpu.memory_space<vmem>>) attributes {dimension_semantics = [#tpu.dimension_semantics<parallel>, #tpu.dimension_semantics<arbitrary>], iteration_bounds = array<i64: 2, 1>, scalar_prefetch = 0 : i64, scratch_operands = 2 : i64, tpu.core_type = #tpu.core_type<tc>, window_params = [{transform_indices = @transform_0, window_bounds = array<i64: 98>}, {pipeline_mode = #tpu.pipeline_mode<synchronous>, transform_indices = @transform_1, window_bounds = array<i64: 2, 1, 256>}, {transform_indices = @transform_2, window_bounds = array<i64: 1, 4, 256>}, {transform_indices = @transform_3, window_bounds = array<i64: 1, 1, 256>}]} {
    %c0_i32 = arith.constant 0 : i32
    %0 = arith.cmpi eq, %arg1, %c0_i32 : i32
    %1 = arith.extui %0 : i1 to i32
    %c0_i32_0 = arith.constant 0 : i32
    %2 = arith.cmpi ne, %1, %c0_i32_0 : i32
    scf.if %2 {
      %cst_18 = arith.constant 0.000000e+00 : f32
      %17 = vector.broadcast %cst_18 : f32 to vector<1x1x256xf32>
      %c0_19 = arith.constant 0 : index
      %c0_20 = arith.constant 0 : index
      %c0_21 = arith.constant 0 : index
      %18 = vector.load %arg6[%c0_19, %c0_20, %c0_21] : memref<1x1x256xf32, #tpu.memory_space<vmem>>, vector<1x1x256xf32>
      tpu.vector_store %arg6[%c0_19, %c0_20, %c0_21], %17 {strides = array<i32>} : memref<1x1x256xf32, #tpu.memory_space<vmem>>, vector<1x1x256xf32>,
      %cst_22 = arith.constant 0xFF800000 : f32
      %19 = vector.broadcast %cst_22 : f32 to vector<1x1x256xf32>
      %c0_23 = arith.constant 0 : index
      %c0_24 = arith.constant 0 : index
      %c0_25 = arith.constant 0 : index
      %20 = vector.load %arg7[%c0_23, %c0_24, %c0_25] : memref<1x1x256xf32, #tpu.memory_space<vmem>>, vector<1x1x256xf32>
      tpu.vector_store %arg7[%c0_23, %c0_24, %c0_25], %19 {strides = array<i32>} : memref<1x1x256xf32, #tpu.memory_space<vmem>>, vector<1x1x256xf32>,
    } else {
    }
    %c0 = arith.constant 0 : index
    %c0_1 = arith.constant 0 : index
    %c0_2 = arith.constant 0 : index
    %3 = vector.load %arg4[%c0, %c0_1, %c0_2] : memref<1x4x256xf32, #tpu.memory_space<vmem>>, vector<1x4x256xf32>
    %c0_3 = arith.constant 0 : index
    %c0_4 = arith.constant 0 : index
    %c0_5 = arith.constant 0 : index
    %4 = vector.load %arg6[%c0_3, %c0_4, %c0_5] : memref<1x1x256xf32, #tpu.memory_space<vmem>>, vector<1x1x256xf32>
    %cst = arith.constant dense<0.000000e+00> : vector<1x256xf32>
    %5 = vector.multi_reduction <add>, %3, %cst [1] : vector<1x4x256xf32> to vector<1x256xf32>
    %6 = vector.shape_cast %5 : vector<1x256xf32> to vector<1x1x256xf32>
    %7 = arith.addf %4, %6 : vector<1x1x256xf32>
    %c0_6 = arith.constant 0 : index
    %c0_7 = arith.constant 0 : index
    %c0_8 = arith.constant 0 : index
    %8 = vector.load %arg6[%c0_6, %c0_7, %c0_8] : memref<1x1x256xf32, #tpu.memory_space<vmem>>, vector<1x1x256xf32>
    tpu.vector_store %arg6[%c0_6, %c0_7, %c0_8], %7 {strides = array<i32>} : memref<1x1x256xf32, #tpu.memory_space<vmem>>, vector<1x1x256xf32>,
    %c0_9 = arith.constant 0 : index
    %c0_10 = arith.constant 0 : index
    %c0_11 = arith.constant 0 : index
    %9 = vector.load %arg7[%c0_9, %c0_10, %c0_11] : memref<1x1x256xf32, #tpu.memory_space<vmem>>, vector<1x1x256xf32>
    %cst_12 = arith.constant dense<0xFF800000> : vector<1x256xf32>
    %10 = vector.multi_reduction <maximumf>, %3, %cst_12 [1] : vector<1x4x256xf32> to vector<1x256xf32>
    %11 = vector.shape_cast %10 : vector<1x256xf32> to vector<1x1x256xf32>
    %12 = arith.maximumf %9, %11 : vector<1x1x256xf32>
    %c0_13 = arith.constant 0 : index
    %c0_14 = arith.constant 0 : index
    %c0_15 = arith.constant 0 : index
    %13 = vector.load %arg7[%c0_13, %c0_14, %c0_15] : memref<1x1x256xf32, #tpu.memory_space<vmem>>, vector<1x1x256xf32>
    tpu.vector_store %arg7[%c0_13, %c0_14, %c0_15], %12 {strides = array<i32>} : memref<1x1x256xf32, #tpu.memory_space<vmem>>, vector<1x1x256xf32>,
    %c0_i32_16 = arith.constant 0 : i32
    %14 = arith.cmpi eq, %arg1, %c0_i32_16 : i32
    %15 = arith.extui %14 : i1 to i32
    %c0_i32_17 = arith.constant 0 : i32
    %16 = arith.cmpi ne, %15, %c0_i32_17 : i32
    scf.if %16 {
      %c0_18 = arith.constant 0 : index
      %c0_19 = arith.constant 0 : index
      %c0_20 = arith.constant 0 : index
      %17 = vector.load %arg6[%c0_18, %c0_19, %c0_20] : memref<1x1x256xf32, #tpu.memory_space<vmem>>, vector<1x1x256xf32>
      %cst_21 = arith.constant 2.500000e-01 : f32
      %18 = vector.broadcast %cst_21 : f32 to vector<1x1x256xf32>
      %19 = arith.mulf %17, %18 : vector<1x1x256xf32>
      %c0_22 = arith.constant 0 : index
      %c0_23 = arith.constant 0 : index
      %c0_24 = arith.constant 0 : index
      %20 = vector.load %arg7[%c0_22, %c0_23, %c0_24] : memref<1x1x256xf32, #tpu.memory_space<vmem>>, vector<1x1x256xf32>
      %c0_25 = arith.constant 0 : index
      %c0_26 = arith.constant 0 : index
      %c0_27 = arith.constant 0 : index
      %21 = vector.load %arg3[%c0_25, %c0_26, %c0_27] : memref<2x1x256xi32, #tpu.memory_space<vmem>>, vector<2x1x256xi32>
      %22 = vector.extract_strided_slice %21 {offsets = [0, 0, 0], sizes = [1, 1, 256], strides = [1, 1, 1]} : vector<2x1x256xi32> to vector<1x1x256xi32>
      %23 = vector.extract_strided_slice %21 {offsets = [1, 0, 0], sizes = [1, 1, 256], strides = [1, 1, 1]} : vector<2x1x256xi32> to vector<1x1x256xi32>
      %c-3_i32 = arith.constant -3 : i32
      %24 = vector.broadcast %c-3_i32 : i32 to vector<1x1x256xi32>
      %25 = arith.addi %22, %24 : vector<1x1x256xi32>
      %c-3_i32_28 = arith.constant -3 : i32
      %26 = vector.broadcast %c-3_i32_28 : i32 to vector<1x1x256xi32>
      %27 = arith.addi %23, %26 : vector<1x1x256xi32>
      %c0_i32_29 = arith.constant 0 : i32
      %28 = vector.broadcast %c0_i32_29 : i32 to vector<1x1x256xi32>
      %29 = arith.cmpi sge, %25, %28 : vector<1x1x256xi32>
      %c16_i32 = arith.constant 16 : i32
      %30 = vector.broadcast %c16_i32 : i32 to vector<1x1x256xi32>
      %31 = arith.cmpi slt, %25, %30 : vector<1x1x256xi32>
      %32 = arith.andi %29, %31 : vector<1x1x256xi1>
      %c0_i32_30 = arith.constant 0 : i32
      %33 = vector.broadcast %c0_i32_30 : i32 to vector<1x1x256xi32>
      %34 = arith.cmpi sge, %27, %33 : vector<1x1x256xi32>
      %c16_i32_31 = arith.constant 16 : i32
      %35 = vector.broadcast %c16_i32_31 : i32 to vector<1x1x256xi32>
      %36 = arith.cmpi slt, %27, %35 : vector<1x1x256xi32>
      %37 = arith.andi %34, %36 : vector<1x1x256xi1>
      %c-2_i32 = arith.constant -2 : i32
      %38 = vector.broadcast %c-2_i32 : i32 to vector<1x1x256xi32>
      %39 = arith.addi %22, %38 : vector<1x1x256xi32>
      %c-2_i32_32 = arith.constant -2 : i32
      %40 = vector.broadcast %c-2_i32_32 : i32 to vector<1x1x256xi32>
      %41 = arith.addi %23, %40 : vector<1x1x256xi32>
      %c0_i32_33 = arith.constant 0 : i32
      %42 = vector.broadcast %c0_i32_33 : i32 to vector<1x1x256xi32>
      %43 = arith.cmpi sge, %39, %42 : vector<1x1x256xi32>
      %c16_i32_34 = arith.constant 16 : i32
      %44 = vector.broadcast %c16_i32_34 : i32 to vector<1x1x256xi32>
      %45 = arith.cmpi slt, %39, %44 : vector<1x1x256xi32>
      %46 = arith.andi %43, %45 : vector<1x1x256xi1>
      %c0_i32_35 = arith.constant 0 : i32
      %47 = vector.broadcast %c0_i32_35 : i32 to vector<1x1x256xi32>
      %48 = arith.cmpi sge, %41, %47 : vector<1x1x256xi32>
      %c16_i32_36 = arith.constant 16 : i32
      %49 = vector.broadcast %c16_i32_36 : i32 to vector<1x1x256xi32>
      %50 = arith.cmpi slt, %41, %49 : vector<1x1x256xi32>
      %51 = arith.andi %48, %50 : vector<1x1x256xi1>
      %c-1_i32 = arith.constant -1 : i32
      %52 = vector.broadcast %c-1_i32 : i32 to vector<1x1x256xi32>
      %53 = arith.addi %22, %52 : vector<1x1x256xi32>
      %c-1_i32_37 = arith.constant -1 : i32
      %54 = vector.broadcast %c-1_i32_37 : i32 to vector<1x1x256xi32>
      %55 = arith.addi %23, %54 : vector<1x1x256xi32>
      %c0_i32_38 = arith.constant 0 : i32
      %56 = vector.broadcast %c0_i32_38 : i32 to vector<1x1x256xi32>
      %57 = arith.cmpi sge, %53, %56 : vector<1x1x256xi32>
      %c16_i32_39 = arith.constant 16 : i32
      %58 = vector.broadcast %c16_i32_39 : i32 to vector<1x1x256xi32>
      %59 = arith.cmpi slt, %53, %58 : vector<1x1x256xi32>
      %60 = arith.andi %57, %59 : vector<1x1x256xi1>
      %c0_i32_40 = arith.constant 0 : i32
      %61 = vector.broadcast %c0_i32_40 : i32 to vector<1x1x256xi32>
      %62 = arith.cmpi sge, %55, %61 : vector<1x1x256xi32>
      %c16_i32_41 = arith.constant 16 : i32
      %63 = vector.broadcast %c16_i32_41 : i32 to vector<1x1x256xi32>
      %64 = arith.cmpi slt, %55, %63 : vector<1x1x256xi32>
      %65 = arith.andi %62, %64 : vector<1x1x256xi1>
      %c0_i32_42 = arith.constant 0 : i32
      %66 = vector.broadcast %c0_i32_42 : i32 to vector<1x1x256xi32>
      %67 = arith.addi %22, %66 : vector<1x1x256xi32>
      %c0_i32_43 = arith.constant 0 : i32
      %68 = vector.broadcast %c0_i32_43 : i32 to vector<1x1x256xi32>
      %69 = arith.addi %23, %68 : vector<1x1x256xi32>
      %c0_i32_44 = arith.constant 0 : i32
      %70 = vector.broadcast %c0_i32_44 : i32 to vector<1x1x256xi32>
      %71 = arith.cmpi sge, %67, %70 : vector<1x1x256xi32>
      %c16_i32_45 = arith.constant 16 : i32
      %72 = vector.broadcast %c16_i32_45 : i32 to vector<1x1x256xi32>
      %73 = arith.cmpi slt, %67, %72 : vector<1x1x256xi32>
      %74 = arith.andi %71, %73 : vector<1x1x256xi1>
      %c0_i32_46 = arith.constant 0 : i32
      %75 = vector.broadcast %c0_i32_46 : i32 to vector<1x1x256xi32>
      %76 = arith.cmpi sge, %69, %75 : vector<1x1x256xi32>
      %c16_i32_47 = arith.constant 16 : i32
      %77 = vector.broadcast %c16_i32_47 : i32 to vector<1x1x256xi32>
      %78 = arith.cmpi slt, %69, %77 : vector<1x1x256xi32>
      %79 = arith.andi %76, %78 : vector<1x1x256xi1>
      %c1_i32 = arith.constant 1 : i32
      %80 = vector.broadcast %c1_i32 : i32 to vector<1x1x256xi32>
      %81 = arith.addi %22, %80 : vector<1x1x256xi32>
      %c1_i32_48 = arith.constant 1 : i32
      %82 = vector.broadcast %c1_i32_48 : i32 to vector<1x1x256xi32>
      %83 = arith.addi %23, %82 : vector<1x1x256xi32>
      %c0_i32_49 = arith.constant 0 : i32
      %84 = vector.broadcast %c0_i32_49 : i32 to vector<1x1x256xi32>
      %85 = arith.cmpi sge, %81, %84 : vector<1x1x256xi32>
      %c16_i32_50 = arith.constant 16 : i32
      %86 = vector.broadcast %c16_i32_50 : i32 to vector<1x1x256xi32>
      %87 = arith.cmpi slt, %81, %86 : vector<1x1x256xi32>
      %88 = arith.andi %85, %87 : vector<1x1x256xi1>
      %c0_i32_51 = arith.constant 0 : i32
      %89 = vector.broadcast %c0_i32_51 : i32 to vector<1x1x256xi32>
      %90 = arith.cmpi sge, %83, %89 : vector<1x1x256xi32>
      %c16_i32_52 = arith.constant 16 : i32
      %91 = vector.broadcast %c16_i32_52 : i32 to vector<1x1x256xi32>
      %92 = arith.cmpi slt, %83, %91 : vector<1x1x256xi32>
      %93 = arith.andi %90, %92 : vector<1x1x256xi1>
      %c2_i32 = arith.constant 2 : i32
      %94 = vector.broadcast %c2_i32 : i32 to vector<1x1x256xi32>
      %95 = arith.addi %22, %94 : vector<1x1x256xi32>
      %c2_i32_53 = arith.constant 2 : i32
      %96 = vector.broadcast %c2_i32_53 : i32 to vector<1x1x256xi32>
      %97 = arith.addi %23, %96 : vector<1x1x256xi32>
      %c0_i32_54 = arith.constant 0 : i32
      %98 = vector.broadcast %c0_i32_54 : i32 to vector<1x1x256xi32>
      %99 = arith.cmpi sge, %95, %98 : vector<1x1x256xi32>
      %c16_i32_55 = arith.constant 16 : i32
      %100 = vector.broadcast %c16_i32_55 : i32 to vector<1x1x256xi32>
      %101 = arith.cmpi slt, %95, %100 : vector<1x1x256xi32>
      %102 = arith.andi %99, %101 : vector<1x1x256xi1>
      %c0_i32_56 = arith.constant 0 : i32
      %103 = vector.broadcast %c0_i32_56 : i32 to vector<1x1x256xi32>
      %104 = arith.cmpi sge, %97, %103 : vector<1x1x256xi32>
      %c16_i32_57 = arith.constant 16 : i32
      %105 = vector.broadcast %c16_i32_57 : i32 to vector<1x1x256xi32>
      %106 = arith.cmpi slt, %97, %105 : vector<1x1x256xi32>
      %107 = arith.andi %104, %106 : vector<1x1x256xi1>
      %c3_i32 = arith.constant 3 : i32
      %108 = vector.broadcast %c3_i32 : i32 to vector<1x1x256xi32>
      %109 = arith.addi %22, %108 : vector<1x1x256xi32>
      %c3_i32_58 = arith.constant 3 : i32
      %110 = vector.broadcast %c3_i32_58 : i32 to vector<1x1x256xi32>
      %111 = arith.addi %23, %110 : vector<1x1x256xi32>
      %c0_i32_59 = arith.constant 0 : i32
      %112 = vector.broadcast %c0_i32_59 : i32 to vector<1x1x256xi32>
      %113 = arith.cmpi sge, %109, %112 : vector<1x1x256xi32>
      %c16_i32_60 = arith.constant 16 : i32
      %114 = vector.broadcast %c16_i32_60 : i32 to vector<1x1x256xi32>
      %115 = arith.cmpi slt, %109, %114 : vector<1x1x256xi32>
      %116 = arith.andi %113, %115 : vector<1x1x256xi1>
      %c0_i32_61 = arith.constant 0 : i32
      %117 = vector.broadcast %c0_i32_61 : i32 to vector<1x1x256xi32>
      %118 = arith.cmpi sge, %111, %117 : vector<1x1x256xi32>
      %c16_i32_62 = arith.constant 16 : i32
      %119 = vector.broadcast %c16_i32_62 : i32 to vector<1x1x256xi32>
      %120 = arith.cmpi slt, %111, %119 : vector<1x1x256xi32>
      %121 = arith.andi %118, %120 : vector<1x1x256xi1>
      %c0_63 = arith.constant 0 : index
      %122 = memref.load %arg2[%c0_63] : memref<98xf32, #tpu.memory_space<smem>>
      %c1 = arith.constant 1 : index
      %123 = memref.load %arg2[%c1] : memref<98xf32, #tpu.memory_space<smem>>
      %c2 = arith.constant 2 : index
      %124 = memref.load %arg2[%c2] : memref<98xf32, #tpu.memory_space<smem>>
      %c3 = arith.constant 3 : index
      %125 = memref.load %arg2[%c3] : memref<98xf32, #tpu.memory_space<smem>>
      %c4 = arith.constant 4 : index
      %126 = memref.load %arg2[%c4] : memref<98xf32, #tpu.memory_space<smem>>
      %c5 = arith.constant 5 : index
      %127 = memref.load %arg2[%c5] : memref<98xf32, #tpu.memory_space<smem>>
      %c6 = arith.constant 6 : index
      %128 = memref.load %arg2[%c6] : memref<98xf32, #tpu.memory_space<smem>>
      %c7 = arith.constant 7 : index
      %129 = memref.load %arg2[%c7] : memref<98xf32, #tpu.memory_space<smem>>
      %c8 = arith.constant 8 : index
      %130 = memref.load %arg2[%c8] : memref<98xf32, #tpu.memory_space<smem>>
      %c9 = arith.constant 9 : index
      %131 = memref.load %arg2[%c9] : memref<98xf32, #tpu.memory_space<smem>>
      %c10 = arith.constant 10 : index
      %132 = memref.load %arg2[%c10] : memref<98xf32, #tpu.memory_space<smem>>
      %c11 = arith.constant 11 : index
      %133 = memref.load %arg2[%c11] : memref<98xf32, #tpu.memory_space<smem>>
      %c12 = arith.constant 12 : index
      %134 = memref.load %arg2[%c12] : memref<98xf32, #tpu.memory_space<smem>>
      %c13 = arith.constant 13 : index
      %135 = memref.load %arg2[%c13] : memref<98xf32, #tpu.memory_space<smem>>
      %c14 = arith.constant 14 : index
      %136 = memref.load %arg2[%c14] : memref<98xf32, #tpu.memory_space<smem>>
      %c15 = arith.constant 15 : index
      %137 = memref.load %arg2[%c15] : memref<98xf32, #tpu.memory_space<smem>>
      %c16 = arith.constant 16 : index
      %138 = memref.load %arg2[%c16] : memref<98xf32, #tpu.memory_space<smem>>
      %c17 = arith.constant 17 : index
      %139 = memref.load %arg2[%c17] : memref<98xf32, #tpu.memory_space<smem>>
      %c18 = arith.constant 18 : index
      %140 = memref.load %arg2[%c18] : memref<98xf32, #tpu.memory_space<smem>>
      %c19 = arith.constant 19 : index
      %141 = memref.load %arg2[%c19] : memref<98xf32, #tpu.memory_space<smem>>
      %c20 = arith.constant 20 : index
      %142 = memref.load %arg2[%c20] : memref<98xf32, #tpu.memory_space<smem>>
      %c21 = arith.constant 21 : index
      %143 = memref.load %arg2[%c21] : memref<98xf32, #tpu.memory_space<smem>>
      %c22 = arith.constant 22 : index
      %144 = memref.load %arg2[%c22] : memref<98xf32, #tpu.memory_space<smem>>
      %c23 = arith.constant 23 : index
      %145 = memref.load %arg2[%c23] : memref<98xf32, #tpu.memory_space<smem>>
      %c24 = arith.constant 24 : index
      %146 = memref.load %arg2[%c24] : memref<98xf32, #tpu.memory_space<smem>>
      %c25 = arith.constant 25 : index
      %147 = memref.load %arg2[%c25] : memref<98xf32, #tpu.memory_space<smem>>
      %c26 = arith.constant 26 : index
      %148 = memref.load %arg2[%c26] : memref<98xf32, #tpu.memory_space<smem>>
      %c27 = arith.constant 27 : index
      %149 = memref.load %arg2[%c27] : memref<98xf32, #tpu.memory_space<smem>>
      %c28 = arith.constant 28 : index
      %150 = memref.load %arg2[%c28] : memref<98xf32, #tpu.memory_space<smem>>
      %c29 = arith.constant 29 : index
      %151 = memref.load %arg2[%c29] : memref<98xf32, #tpu.memory_space<smem>>
      %c30 = arith.constant 30 : index
      %152 = memref.load %arg2[%c30] : memref<98xf32, #tpu.memory_space<smem>>
      %c31 = arith.constant 31 : index
      %153 = memref.load %arg2[%c31] : memref<98xf32, #tpu.memory_space<smem>>
      %c32 = arith.constant 32 : index
      %154 = memref.load %arg2[%c32] : memref<98xf32, #tpu.memory_space<smem>>
      %c33 = arith.constant 33 : index
      %155 = memref.load %arg2[%c33] : memref<98xf32, #tpu.memory_space<smem>>
      %c34 = arith.constant 34 : index
      %156 = memref.load %arg2[%c34] : memref<98xf32, #tpu.memory_space<smem>>
      %c35 = arith.constant 35 : index
      %157 = memref.load %arg2[%c35] : memref<98xf32, #tpu.memory_space<smem>>
      %c36 = arith.constant 36 : index
      %158 = memref.load %arg2[%c36] : memref<98xf32, #tpu.memory_space<smem>>
      %c37 = arith.constant 37 : index
      %159 = memref.load %arg2[%c37] : memref<98xf32, #tpu.memory_space<smem>>
      %c38 = arith.constant 38 : index
      %160 = memref.load %arg2[%c38] : memref<98xf32, #tpu.memory_space<smem>>
      %c39 = arith.constant 39 : index
      %161 = memref.load %arg2[%c39] : memref<98xf32, #tpu.memory_space<smem>>
      %c40 = arith.constant 40 : index
      %162 = memref.load %arg2[%c40] : memref<98xf32, #tpu.memory_space<smem>>
      %c41 = arith.constant 41 : index
      %163 = memref.load %arg2[%c41] : memref<98xf32, #tpu.memory_space<smem>>
      %c42 = arith.constant 42 : index
      %164 = memref.load %arg2[%c42] : memref<98xf32, #tpu.memory_space<smem>>
      %c43 = arith.constant 43 : index
      %165 = memref.load %arg2[%c43] : memref<98xf32, #tpu.memory_space<smem>>
      %c44 = arith.constant 44 : index
      %166 = memref.load %arg2[%c44] : memref<98xf32, #tpu.memory_space<smem>>
      %c45 = arith.constant 45 : index
      %167 = memref.load %arg2[%c45] : memref<98xf32, #tpu.memory_space<smem>>
      %c46 = arith.constant 46 : index
      %168 = memref.load %arg2[%c46] : memref<98xf32, #tpu.memory_space<smem>>
      %c47 = arith.constant 47 : index
      %169 = memref.load %arg2[%c47] : memref<98xf32, #tpu.memory_space<smem>>
      %c48 = arith.constant 48 : index
      %170 = memref.load %arg2[%c48] : memref<98xf32, #tpu.memory_space<smem>>
      %c49 = arith.constant 49 : index
      %171 = memref.load %arg2[%c49] : memref<98xf32, #tpu.memory_space<smem>>
      %c50 = arith.constant 50 : index
      %172 = memref.load %arg2[%c50] : memref<98xf32, #tpu.memory_space<smem>>
      %c51 = arith.constant 51 : index
      %173 = memref.load %arg2[%c51] : memref<98xf32, #tpu.memory_space<smem>>
      %c52 = arith.constant 52 : index
      %174 = memref.load %arg2[%c52] : memref<98xf32, #tpu.memory_space<smem>>
      %c53 = arith.constant 53 : index
      %175 = memref.load %arg2[%c53] : memref<98xf32, #tpu.memory_space<smem>>
      %c54 = arith.constant 54 : index
      %176 = memref.load %arg2[%c54] : memref<98xf32, #tpu.memory_space<smem>>
      %c55 = arith.constant 55 : index
      %177 = memref.load %arg2[%c55] : memref<98xf32, #tpu.memory_space<smem>>
      %c56 = arith.constant 56 : index
      %178 = memref.load %arg2[%c56] : memref<98xf32, #tpu.memory_space<smem>>
      %c57 = arith.constant 57 : index
      %179 = memref.load %arg2[%c57] : memref<98xf32, #tpu.memory_space<smem>>
      %c58 = arith.constant 58 : index
      %180 = memref.load %arg2[%c58] : memref<98xf32, #tpu.memory_space<smem>>
      %c59 = arith.constant 59 : index
      %181 = memref.load %arg2[%c59] : memref<98xf32, #tpu.memory_space<smem>>
      %c60 = arith.constant 60 : index
      %182 = memref.load %arg2[%c60] : memref<98xf32, #tpu.memory_space<smem>>
      %c61 = arith.constant 61 : index
      %183 = memref.load %arg2[%c61] : memref<98xf32, #tpu.memory_space<smem>>
      %c62 = arith.constant 62 : index
      %184 = memref.load %arg2[%c62] : memref<98xf32, #tpu.memory_space<smem>>
      %c63 = arith.constant 63 : index
      %185 = memref.load %arg2[%c63] : memref<98xf32, #tpu.memory_space<smem>>
      %c64 = arith.constant 64 : index
      %186 = memref.load %arg2[%c64] : memref<98xf32, #tpu.memory_space<smem>>
      %c65 = arith.constant 65 : index
      %187 = memref.load %arg2[%c65] : memref<98xf32, #tpu.memory_space<smem>>
      %c66 = arith.constant 66 : index
      %188 = memref.load %arg2[%c66] : memref<98xf32, #tpu.memory_space<smem>>
      %c67 = arith.constant 67 : index
      %189 = memref.load %arg2[%c67] : memref<98xf32, #tpu.memory_space<smem>>
      %c68 = arith.constant 68 : index
      %190 = memref.load %arg2[%c68] : memref<98xf32, #tpu.memory_space<smem>>
      %c69 = arith.constant 69 : index
      %191 = memref.load %arg2[%c69] : memref<98xf32, #tpu.memory_space<smem>>
      %c70 = arith.constant 70 : index
      %192 = memref.load %arg2[%c70] : memref<98xf32, #tpu.memory_space<smem>>
      %c71 = arith.constant 71 : index
      %193 = memref.load %arg2[%c71] : memref<98xf32, #tpu.memory_space<smem>>
      %c72 = arith.constant 72 : index
      %194 = memref.load %arg2[%c72] : memref<98xf32, #tpu.memory_space<smem>>
      %c73 = arith.constant 73 : index
      %195 = memref.load %arg2[%c73] : memref<98xf32, #tpu.memory_space<smem>>
      %c74 = arith.constant 74 : index
      %196 = memref.load %arg2[%c74] : memref<98xf32, #tpu.memory_space<smem>>
      %c75 = arith.constant 75 : index
      %197 = memref.load %arg2[%c75] : memref<98xf32, #tpu.memory_space<smem>>
      %c76 = arith.constant 76 : index
      %198 = memref.load %arg2[%c76] : memref<98xf32, #tpu.memory_space<smem>>
      %c77 = arith.constant 77 : index
      %199 = memref.load %arg2[%c77] : memref<98xf32, #tpu.memory_space<smem>>
      %c78 = arith.constant 78 : index
      %200 = memref.load %arg2[%c78] : memref<98xf32, #tpu.memory_space<smem>>
      %c79 = arith.constant 79 : index
      %201 = memref.load %arg2[%c79] : memref<98xf32, #tpu.memory_space<smem>>
      %c80 = arith.constant 80 : index
      %202 = memref.load %arg2[%c80] : memref<98xf32, #tpu.memory_space<smem>>
      %c81 = arith.constant 81 : index
      %203 = memref.load %arg2[%c81] : memref<98xf32, #tpu.memory_space<smem>>
      %c82 = arith.constant 82 : index
      %204 = memref.load %arg2[%c82] : memref<98xf32, #tpu.memory_space<smem>>
      %c83 = arith.constant 83 : index
      %205 = memref.load %arg2[%c83] : memref<98xf32, #tpu.memory_space<smem>>
      %c84 = arith.constant 84 : index
      %206 = memref.load %arg2[%c84] : memref<98xf32, #tpu.memory_space<smem>>
      %c85 = arith.constant 85 : index
      %207 = memref.load %arg2[%c85] : memref<98xf32, #tpu.memory_space<smem>>
      %c86 = arith.constant 86 : index
      %208 = memref.load %arg2[%c86] : memref<98xf32, #tpu.memory_space<smem>>
      %c87 = arith.constant 87 : index
      %209 = memref.load %arg2[%c87] : memref<98xf32, #tpu.memory_space<smem>>
      %c88 = arith.constant 88 : index
      %210 = memref.load %arg2[%c88] : memref<98xf32, #tpu.memory_space<smem>>
      %c89 = arith.constant 89 : index
      %211 = memref.load %arg2[%c89] : memref<98xf32, #tpu.memory_space<smem>>
      %c90 = arith.constant 90 : index
      %212 = memref.load %arg2[%c90] : memref<98xf32, #tpu.memory_space<smem>>
      %c91 = arith.constant 91 : index
      %213 = memref.load %arg2[%c91] : memref<98xf32, #tpu.memory_space<smem>>
      %c92 = arith.constant 92 : index
      %214 = memref.load %arg2[%c92] : memref<98xf32, #tpu.memory_space<smem>>
      %c93 = arith.constant 93 : index
      %215 = memref.load %arg2[%c93] : memref<98xf32, #tpu.memory_space<smem>>
      %c94 = arith.constant 94 : index
      %216 = memref.load %arg2[%c94] : memref<98xf32, #tpu.memory_space<smem>>
      %c95 = arith.constant 95 : index
      %217 = memref.load %arg2[%c95] : memref<98xf32, #tpu.memory_space<smem>>
      %c96 = arith.constant 96 : index
      %218 = memref.load %arg2[%c96] : memref<98xf32, #tpu.memory_space<smem>>
      %c97 = arith.constant 97 : index
      %219 = memref.load %arg2[%c97] : memref<98xf32, #tpu.memory_space<smem>>
      %cst_64 = arith.constant 0.000000e+00 : f32
      %220 = vector.broadcast %cst_64 : f32 to vector<1x1x256xf32>
      %c51_i32 = arith.constant 51 : i32
      %221 = tpu.dynamic_rotate %19 by %c51_i32 dim 2 : vector<1x1x256xf32>, i32 -> vector<1x1x256xf32>
      %c51_i32_65 = arith.constant 51 : i32
      %222 = tpu.dynamic_rotate %20 by %c51_i32_65 dim 2 : vector<1x1x256xf32>, i32 -> vector<1x1x256xf32>
      %223 = vector.broadcast %122 : f32 to vector<1x1x256xf32>
      %224 = arith.mulf %221, %223 : vector<1x1x256xf32>
      %225 = vector.broadcast %171 : f32 to vector<1x1x256xf32>
      %226 = arith.mulf %222, %225 : vector<1x1x256xf32>
      %227 = arith.addf %224, %226 : vector<1x1x256xf32>
      %228 = arith.andi %32, %37 : vector<1x1x256xi1>
      %cst_66 = arith.constant 0.000000e+00 : f32
      %229 = vector.broadcast %cst_66 : f32 to vector<1x1x256xf32>
      %230 = arith.select %228, %227, %229 : vector<1x1x256xi1>, vector<1x1x256xf32>
      %231 = arith.addf %220, %230 : vector<1x1x256xf32>
      %c50_i32 = arith.constant 50 : i32
      %232 = tpu.dynamic_rotate %19 by %c50_i32 dim 2 : vector<1x1x256xf32>, i32 -> vector<1x1x256xf32>
      %c50_i32_67 = arith.constant 50 : i32
      %233 = tpu.dynamic_rotate %20 by %c50_i32_67 dim 2 : vector<1x1x256xf32>, i32 -> vector<1x1x256xf32>
      %234 = vector.broadcast %123 : f32 to vector<1x1x256xf32>
      %235 = arith.mulf %232, %234 : vector<1x1x256xf32>
      %236 = vector.broadcast %172 : f32 to vector<1x1x256xf32>
      %237 = arith.mulf %233, %236 : vector<1x1x256xf32>
      %238 = arith.addf %235, %237 : vector<1x1x256xf32>
      %239 = arith.andi %32, %51 : vector<1x1x256xi1>
      %cst_68 = arith.constant 0.000000e+00 : f32
      %240 = vector.broadcast %cst_68 : f32 to vector<1x1x256xf32>
      %241 = arith.select %239, %238, %240 : vector<1x1x256xi1>, vector<1x1x256xf32>
      %242 = arith.addf %231, %241 : vector<1x1x256xf32>
      %c49_i32 = arith.constant 49 : i32
      %243 = tpu.dynamic_rotate %19 by %c49_i32 dim 2 : vector<1x1x256xf32>, i32 -> vector<1x1x256xf32>
      %c49_i32_69 = arith.constant 49 : i32
      %244 = tpu.dynamic_rotate %20 by %c49_i32_69 dim 2 : vector<1x1x256xf32>, i32 -> vector<1x1x256xf32>
      %245 = vector.broadcast %124 : f32 to vector<1x1x256xf32>
      %246 = arith.mulf %243, %245 : vector<1x1x256xf32>
      %247 = vector.broadcast %173 : f32 to vector<1x1x256xf32>
      %248 = arith.mulf %244, %247 : vector<1x1x256xf32>
      %249 = arith.addf %246, %248 : vector<1x1x256xf32>
      %250 = arith.andi %32, %65 : vector<1x1x256xi1>
      %cst_70 = arith.constant 0.000000e+00 : f32
      %251 = vector.broadcast %cst_70 : f32 to vector<1x1x256xf32>
      %252 = arith.select %250, %249, %251 : vector<1x1x256xi1>, vector<1x1x256xf32>
      %253 = arith.addf %242, %252 : vector<1x1x256xf32>
      %c48_i32 = arith.constant 48 : i32
      %254 = tpu.dynamic_rotate %19 by %c48_i32 dim 2 : vector<1x1x256xf32>, i32 -> vector<1x1x256xf32>
      %c48_i32_71 = arith.constant 48 : i32
      %255 = tpu.dynamic_rotate %20 by %c48_i32_71 dim 2 : vector<1x1x256xf32>, i32 -> vector<1x1x256xf32>
      %256 = vector.broadcast %125 : f32 to vector<1x1x256xf32>
      %257 = arith.mulf %254, %256 : vector<1x1x256xf32>
      %258 = vector.broadcast %174 : f32 to vector<1x1x256xf32>
      %259 = arith.mulf %255, %258 : vector<1x1x256xf32>
      %260 = arith.addf %257, %259 : vector<1x1x256xf32>
      %261 = arith.andi %32, %79 : vector<1x1x256xi1>
      %cst_72 = arith.constant 0.000000e+00 : f32
      %262 = vector.broadcast %cst_72 : f32 to vector<1x1x256xf32>
      %263 = arith.select %261, %260, %262 : vector<1x1x256xi1>, vector<1x1x256xf32>
      %264 = arith.addf %253, %263 : vector<1x1x256xf32>
      %c47_i32 = arith.constant 47 : i32
      %265 = tpu.dynamic_rotate %19 by %c47_i32 dim 2 : vector<1x1x256xf32>, i32 -> vector<1x1x256xf32>
      %c47_i32_73 = arith.constant 47 : i32
      %266 = tpu.dynamic_rotate %20 by %c47_i32_73 dim 2 : vector<1x1x256xf32>, i32 -> vector<1x1x256xf32>
      %267 = vector.broadcast %126 : f32 to vector<1x1x256xf32>
      %268 = arith.mulf %265, %267 : vector<1x1x256xf32>
      %269 = vector.broadcast %175 : f32 to vector<1x1x256xf32>
      %270 = arith.mulf %266, %269 : vector<1x1x256xf32>
      %271 = arith.addf %268, %270 : vector<1x1x256xf32>
      %272 = arith.andi %32, %93 : vector<1x1x256xi1>
      %cst_74 = arith.constant 0.000000e+00 : f32
      %273 = vector.broadcast %cst_74 : f32 to vector<1x1x256xf32>
      %274 = arith.select %272, %271, %273 : vector<1x1x256xi1>, vector<1x1x256xf32>
      %275 = arith.addf %264, %274 : vector<1x1x256xf32>
      %c46_i32 = arith.constant 46 : i32
      %276 = tpu.dynamic_rotate %19 by %c46_i32 dim 2 : vector<1x1x256xf32>, i32 -> vector<1x1x256xf32>
      %c46_i32_75 = arith.constant 46 : i32
      %277 = tpu.dynamic_rotate %20 by %c46_i32_75 dim 2 : vector<1x1x256xf32>, i32 -> vector<1x1x256xf32>
      %278 = vector.broadcast %127 : f32 to vector<1x1x256xf32>
      %279 = arith.mulf %276, %278 : vector<1x1x256xf32>
      %280 = vector.broadcast %176 : f32 to vector<1x1x256xf32>
      %281 = arith.mulf %277, %280 : vector<1x1x256xf32>
      %282 = arith.addf %279, %281 : vector<1x1x256xf32>
      %283 = arith.andi %32, %107 : vector<1x1x256xi1>
      %cst_76 = arith.constant 0.000000e+00 : f32
      %284 = vector.broadcast %cst_76 : f32 to vector<1x1x256xf32>
      %285 = arith.select %283, %282, %284 : vector<1x1x256xi1>, vector<1x1x256xf32>
      %286 = arith.addf %275, %285 : vector<1x1x256xf32>
      %c45_i32 = arith.constant 45 : i32
      %287 = tpu.dynamic_rotate %19 by %c45_i32 dim 2 : vector<1x1x256xf32>, i32 -> vector<1x1x256xf32>
      %c45_i32_77 = arith.constant 45 : i32
      %288 = tpu.dynamic_rotate %20 by %c45_i32_77 dim 2 : vector<1x1x256xf32>, i32 -> vector<1x1x256xf32>
      %289 = vector.broadcast %128 : f32 to vector<1x1x256xf32>
      %290 = arith.mulf %287, %289 : vector<1x1x256xf32>
      %291 = vector.broadcast %177 : f32 to vector<1x1x256xf32>
      %292 = arith.mulf %288, %291 : vector<1x1x256xf32>
      %293 = arith.addf %290, %292 : vector<1x1x256xf32>
      %294 = arith.andi %32, %121 : vector<1x1x256xi1>
      %cst_78 = arith.constant 0.000000e+00 : f32
      %295 = vector.broadcast %cst_78 : f32 to vector<1x1x256xf32>
      %296 = arith.select %294, %293, %295 : vector<1x1x256xi1>, vector<1x1x256xf32>
      %297 = arith.addf %286, %296 : vector<1x1x256xf32>
      %c35_i32 = arith.constant 35 : i32
      %298 = tpu.dynamic_rotate %19 by %c35_i32 dim 2 : vector<1x1x256xf32>, i32 -> vector<1x1x256xf32>
      %c35_i32_79 = arith.constant 35 : i32
      %299 = tpu.dynamic_rotate %20 by %c35_i32_79 dim 2 : vector<1x1x256xf32>, i32 -> vector<1x1x256xf32>
      %300 = vector.broadcast %129 : f32 to vector<1x1x256xf32>
      %301 = arith.mulf %298, %300 : vector<1x1x256xf32>
      %302 = vector.broadcast %178 : f32 to vector<1x1x256xf32>
      %303 = arith.mulf %299, %302 : vector<1x1x256xf32>
      %304 = arith.addf %301, %303 : vector<1x1x256xf32>
      %305 = arith.andi %46, %37 : vector<1x1x256xi1>
      %cst_80 = arith.constant 0.000000e+00 : f32
      %306 = vector.broadcast %cst_80 : f32 to vector<1x1x256xf32>
      %307 = arith.select %305, %304, %306 : vector<1x1x256xi1>, vector<1x1x256xf32>
      %308 = arith.addf %297, %307 : vector<1x1x256xf32>
      %c34_i32 = arith.constant 34 : i32
      %309 = tpu.dynamic_rotate %19 by %c34_i32 dim 2 : vector<1x1x256xf32>, i32 -> vector<1x1x256xf32>
      %c34_i32_81 = arith.constant 34 : i32
      %310 = tpu.dynamic_rotate %20 by %c34_i32_81 dim 2 : vector<1x1x256xf32>, i32 -> vector<1x1x256xf32>
      %311 = vector.broadcast %130 : f32 to vector<1x1x256xf32>
      %312 = arith.mulf %309, %311 : vector<1x1x256xf32>
      %313 = vector.broadcast %179 : f32 to vector<1x1x256xf32>
      %314 = arith.mulf %310, %313 : vector<1x1x256xf32>
      %315 = arith.addf %312, %314 : vector<1x1x256xf32>
      %316 = arith.andi %46, %51 : vector<1x1x256xi1>
      %cst_82 = arith.constant 0.000000e+00 : f32
      %317 = vector.broadcast %cst_82 : f32 to vector<1x1x256xf32>
      %318 = arith.select %316, %315, %317 : vector<1x1x256xi1>, vector<1x1x256xf32>
      %319 = arith.addf %308, %318 : vector<1x1x256xf32>
      %c33_i32 = arith.constant 33 : i32
      %320 = tpu.dynamic_rotate %19 by %c33_i32 dim 2 : vector<1x1x256xf32>, i32 -> vector<1x1x256xf32>
      %c33_i32_83 = arith.constant 33 : i32
      %321 = tpu.dynamic_rotate %20 by %c33_i32_83 dim 2 : vector<1x1x256xf32>, i32 -> vector<1x1x256xf32>
      %322 = vector.broadcast %131 : f32 to vector<1x1x256xf32>
      %323 = arith.mulf %320, %322 : vector<1x1x256xf32>
      %324 = vector.broadcast %180 : f32 to vector<1x1x256xf32>
      %325 = arith.mulf %321, %324 : vector<1x1x256xf32>
      %326 = arith.addf %323, %325 : vector<1x1x256xf32>
      %327 = arith.andi %46, %65 : vector<1x1x256xi1>
      %cst_84 = arith.constant 0.000000e+00 : f32
      %328 = vector.broadcast %cst_84 : f32 to vector<1x1x256xf32>
      %329 = arith.select %327, %326, %328 : vector<1x1x256xi1>, vector<1x1x256xf32>
      %330 = arith.addf %319, %329 : vector<1x1x256xf32>
      %c32_i32 = arith.constant 32 : i32
      %331 = tpu.dynamic_rotate %19 by %c32_i32 dim 2 : vector<1x1x256xf32>, i32 -> vector<1x1x256xf32>
      %c32_i32_85 = arith.constant 32 : i32
      %332 = tpu.dynamic_rotate %20 by %c32_i32_85 dim 2 : vector<1x1x256xf32>, i32 -> vector<1x1x256xf32>
      %333 = vector.broadcast %132 : f32 to vector<1x1x256xf32>
      %334 = arith.mulf %331, %333 : vector<1x1x256xf32>
      %335 = vector.broadcast %181 : f32 to vector<1x1x256xf32>
      %336 = arith.mulf %332, %335 : vector<1x1x256xf32>
      %337 = arith.addf %334, %336 : vector<1x1x256xf32>
      %338 = arith.andi %46, %79 : vector<1x1x256xi1>
      %cst_86 = arith.constant 0.000000e+00 : f32
      %339 = vector.broadcast %cst_86 : f32 to vector<1x1x256xf32>
      %340 = arith.select %338, %337, %339 : vector<1x1x256xi1>, vector<1x1x256xf32>
      %341 = arith.addf %330, %340 : vector<1x1x256xf32>
      %c31_i32 = arith.constant 31 : i32
      %342 = tpu.dynamic_rotate %19 by %c31_i32 dim 2 : vector<1x1x256xf32>, i32 -> vector<1x1x256xf32>
      %c31_i32_87 = arith.constant 31 : i32
      %343 = tpu.dynamic_rotate %20 by %c31_i32_87 dim 2 : vector<1x1x256xf32>, i32 -> vector<1x1x256xf32>
      %344 = vector.broadcast %133 : f32 to vector<1x1x256xf32>
      %345 = arith.mulf %342, %344 : vector<1x1x256xf32>
      %346 = vector.broadcast %182 : f32 to vector<1x1x256xf32>
      %347 = arith.mulf %343, %346 : vector<1x1x256xf32>
      %348 = arith.addf %345, %347 : vector<1x1x256xf32>
      %349 = arith.andi %46, %93 : vector<1x1x256xi1>
      %cst_88 = arith.constant 0.000000e+00 : f32
      %350 = vector.broadcast %cst_88 : f32 to vector<1x1x256xf32>
      %351 = arith.select %349, %348, %350 : vector<1x1x256xi1>, vector<1x1x256xf32>
      %352 = arith.addf %341, %351 : vector<1x1x256xf32>
      %c30_i32 = arith.constant 30 : i32
      %353 = tpu.dynamic_rotate %19 by %c30_i32 dim 2 : vector<1x1x256xf32>, i32 -> vector<1x1x256xf32>
      %c30_i32_89 = arith.constant 30 : i32
      %354 = tpu.dynamic_rotate %20 by %c30_i32_89 dim 2 : vector<1x1x256xf32>, i32 -> vector<1x1x256xf32>
      %355 = vector.broadcast %134 : f32 to vector<1x1x256xf32>
      %356 = arith.mulf %353, %355 : vector<1x1x256xf32>
      %357 = vector.broadcast %183 : f32 to vector<1x1x256xf32>
      %358 = arith.mulf %354, %357 : vector<1x1x256xf32>
      %359 = arith.addf %356, %358 : vector<1x1x256xf32>
      %360 = arith.andi %46, %107 : vector<1x1x256xi1>
      %cst_90 = arith.constant 0.000000e+00 : f32
      %361 = vector.broadcast %cst_90 : f32 to vector<1x1x256xf32>
      %362 = arith.select %360, %359, %361 : vector<1x1x256xi1>, vector<1x1x256xf32>
      %363 = arith.addf %352, %362 : vector<1x1x256xf32>
      %c29_i32 = arith.constant 29 : i32
      %364 = tpu.dynamic_rotate %19 by %c29_i32 dim 2 : vector<1x1x256xf32>, i32 -> vector<1x1x256xf32>
      %c29_i32_91 = arith.constant 29 : i32
      %365 = tpu.dynamic_rotate %20 by %c29_i32_91 dim 2 : vector<1x1x256xf32>, i32 -> vector<1x1x256xf32>
      %366 = vector.broadcast %135 : f32 to vector<1x1x256xf32>
      %367 = arith.mulf %364, %366 : vector<1x1x256xf32>
      %368 = vector.broadcast %184 : f32 to vector<1x1x256xf32>
      %369 = arith.mulf %365, %368 : vector<1x1x256xf32>
      %370 = arith.addf %367, %369 : vector<1x1x256xf32>
      %371 = arith.andi %46, %121 : vector<1x1x256xi1>
      %cst_92 = arith.constant 0.000000e+00 : f32
      %372 = vector.broadcast %cst_92 : f32 to vector<1x1x256xf32>
      %373 = arith.select %371, %370, %372 : vector<1x1x256xi1>, vector<1x1x256xf32>
      %374 = arith.addf %363, %373 : vector<1x1x256xf32>
      %c19_i32 = arith.constant 19 : i32
      %375 = tpu.dynamic_rotate %19 by %c19_i32 dim 2 : vector<1x1x256xf32>, i32 -> vector<1x1x256xf32>
      %c19_i32_93 = arith.constant 19 : i32
      %376 = tpu.dynamic_rotate %20 by %c19_i32_93 dim 2 : vector<1x1x256xf32>, i32 -> vector<1x1x256xf32>
      %377 = vector.broadcast %136 : f32 to vector<1x1x256xf32>
      %378 = arith.mulf %375, %377 : vector<1x1x256xf32>
      %379 = vector.broadcast %185 : f32 to vector<1x1x256xf32>
      %380 = arith.mulf %376, %379 : vector<1x1x256xf32>
      %381 = arith.addf %378, %380 : vector<1x1x256xf32>
      %382 = arith.andi %60, %37 : vector<1x1x256xi1>
      %cst_94 = arith.constant 0.000000e+00 : f32
      %383 = vector.broadcast %cst_94 : f32 to vector<1x1x256xf32>
      %384 = arith.select %382, %381, %383 : vector<1x1x256xi1>, vector<1x1x256xf32>
      %385 = arith.addf %374, %384 : vector<1x1x256xf32>
      %c18_i32 = arith.constant 18 : i32
      %386 = tpu.dynamic_rotate %19 by %c18_i32 dim 2 : vector<1x1x256xf32>, i32 -> vector<1x1x256xf32>
      %c18_i32_95 = arith.constant 18 : i32
      %387 = tpu.dynamic_rotate %20 by %c18_i32_95 dim 2 : vector<1x1x256xf32>, i32 -> vector<1x1x256xf32>
      %388 = vector.broadcast %137 : f32 to vector<1x1x256xf32>
      %389 = arith.mulf %386, %388 : vector<1x1x256xf32>
      %390 = vector.broadcast %186 : f32 to vector<1x1x256xf32>
      %391 = arith.mulf %387, %390 : vector<1x1x256xf32>
      %392 = arith.addf %389, %391 : vector<1x1x256xf32>
      %393 = arith.andi %60, %51 : vector<1x1x256xi1>
      %cst_96 = arith.constant 0.000000e+00 : f32
      %394 = vector.broadcast %cst_96 : f32 to vector<1x1x256xf32>
      %395 = arith.select %393, %392, %394 : vector<1x1x256xi1>, vector<1x1x256xf32>
      %396 = arith.addf %385, %395 : vector<1x1x256xf32>
      %c17_i32 = arith.constant 17 : i32
      %397 = tpu.dynamic_rotate %19 by %c17_i32 dim 2 : vector<1x1x256xf32>, i32 -> vector<1x1x256xf32>
      %c17_i32_97 = arith.constant 17 : i32
      %398 = tpu.dynamic_rotate %20 by %c17_i32_97 dim 2 : vector<1x1x256xf32>, i32 -> vector<1x1x256xf32>
      %399 = vector.broadcast %138 : f32 to vector<1x1x256xf32>
      %400 = arith.mulf %397, %399 : vector<1x1x256xf32>
      %401 = vector.broadcast %187 : f32 to vector<1x1x256xf32>
      %402 = arith.mulf %398, %401 : vector<1x1x256xf32>
      %403 = arith.addf %400, %402 : vector<1x1x256xf32>
      %404 = arith.andi %60, %65 : vector<1x1x256xi1>
      %cst_98 = arith.constant 0.000000e+00 : f32
      %405 = vector.broadcast %cst_98 : f32 to vector<1x1x256xf32>
      %406 = arith.select %404, %403, %405 : vector<1x1x256xi1>, vector<1x1x256xf32>
      %407 = arith.addf %396, %406 : vector<1x1x256xf32>
      %c16_i32_99 = arith.constant 16 : i32
      %408 = tpu.dynamic_rotate %19 by %c16_i32_99 dim 2 : vector<1x1x256xf32>, i32 -> vector<1x1x256xf32>
      %c16_i32_100 = arith.constant 16 : i32
      %409 = tpu.dynamic_rotate %20 by %c16_i32_100 dim 2 : vector<1x1x256xf32>, i32 -> vector<1x1x256xf32>
      %410 = vector.broadcast %139 : f32 to vector<1x1x256xf32>
      %411 = arith.mulf %408, %410 : vector<1x1x256xf32>
      %412 = vector.broadcast %188 : f32 to vector<1x1x256xf32>
      %413 = arith.mulf %409, %412 : vector<1x1x256xf32>
      %414 = arith.addf %411, %413 : vector<1x1x256xf32>
      %415 = arith.andi %60, %79 : vector<1x1x256xi1>
      %cst_101 = arith.constant 0.000000e+00 : f32
      %416 = vector.broadcast %cst_101 : f32 to vector<1x1x256xf32>
      %417 = arith.select %415, %414, %416 : vector<1x1x256xi1>, vector<1x1x256xf32>
      %418 = arith.addf %407, %417 : vector<1x1x256xf32>
      %c15_i32 = arith.constant 15 : i32
      %419 = tpu.dynamic_rotate %19 by %c15_i32 dim 2 : vector<1x1x256xf32>, i32 -> vector<1x1x256xf32>
      %c15_i32_102 = arith.constant 15 : i32
      %420 = tpu.dynamic_rotate %20 by %c15_i32_102 dim 2 : vector<1x1x256xf32>, i32 -> vector<1x1x256xf32>
      %421 = vector.broadcast %140 : f32 to vector<1x1x256xf32>
      %422 = arith.mulf %419, %421 : vector<1x1x256xf32>
      %423 = vector.broadcast %189 : f32 to vector<1x1x256xf32>
      %424 = arith.mulf %420, %423 : vector<1x1x256xf32>
      %425 = arith.addf %422, %424 : vector<1x1x256xf32>
      %426 = arith.andi %60, %93 : vector<1x1x256xi1>
      %cst_103 = arith.constant 0.000000e+00 : f32
      %427 = vector.broadcast %cst_103 : f32 to vector<1x1x256xf32>
      %428 = arith.select %426, %425, %427 : vector<1x1x256xi1>, vector<1x1x256xf32>
      %429 = arith.addf %418, %428 : vector<1x1x256xf32>
      %c14_i32 = arith.constant 14 : i32
      %430 = tpu.dynamic_rotate %19 by %c14_i32 dim 2 : vector<1x1x256xf32>, i32 -> vector<1x1x256xf32>
      %c14_i32_104 = arith.constant 14 : i32
      %431 = tpu.dynamic_rotate %20 by %c14_i32_104 dim 2 : vector<1x1x256xf32>, i32 -> vector<1x1x256xf32>
      %432 = vector.broadcast %141 : f32 to vector<1x1x256xf32>
      %433 = arith.mulf %430, %432 : vector<1x1x256xf32>
      %434 = vector.broadcast %190 : f32 to vector<1x1x256xf32>
      %435 = arith.mulf %431, %434 : vector<1x1x256xf32>
      %436 = arith.addf %433, %435 : vector<1x1x256xf32>
      %437 = arith.andi %60, %107 : vector<1x1x256xi1>
      %cst_105 = arith.constant 0.000000e+00 : f32
      %438 = vector.broadcast %cst_105 : f32 to vector<1x1x256xf32>
      %439 = arith.select %437, %436, %438 : vector<1x1x256xi1>, vector<1x1x256xf32>
      %440 = arith.addf %429, %439 : vector<1x1x256xf32>
      %c13_i32 = arith.constant 13 : i32
      %441 = tpu.dynamic_rotate %19 by %c13_i32 dim 2 : vector<1x1x256xf32>, i32 -> vector<1x1x256xf32>
      %c13_i32_106 = arith.constant 13 : i32
      %442 = tpu.dynamic_rotate %20 by %c13_i32_106 dim 2 : vector<1x1x256xf32>, i32 -> vector<1x1x256xf32>
      %443 = vector.broadcast %142 : f32 to vector<1x1x256xf32>
      %444 = arith.mulf %441, %443 : vector<1x1x256xf32>
      %445 = vector.broadcast %191 : f32 to vector<1x1x256xf32>
      %446 = arith.mulf %442, %445 : vector<1x1x256xf32>
      %447 = arith.addf %444, %446 : vector<1x1x256xf32>
      %448 = arith.andi %60, %121 : vector<1x1x256xi1>
      %cst_107 = arith.constant 0.000000e+00 : f32
      %449 = vector.broadcast %cst_107 : f32 to vector<1x1x256xf32>
      %450 = arith.select %448, %447, %449 : vector<1x1x256xi1>, vector<1x1x256xf32>
      %451 = arith.addf %440, %450 : vector<1x1x256xf32>
      %c3_i32_108 = arith.constant 3 : i32
      %452 = tpu.dynamic_rotate %19 by %c3_i32_108 dim 2 : vector<1x1x256xf32>, i32 -> vector<1x1x256xf32>
      %c3_i32_109 = arith.constant 3 : i32
      %453 = tpu.dynamic_rotate %20 by %c3_i32_109 dim 2 : vector<1x1x256xf32>, i32 -> vector<1x1x256xf32>
      %454 = vector.broadcast %143 : f32 to vector<1x1x256xf32>
      %455 = arith.mulf %452, %454 : vector<1x1x256xf32>
      %456 = vector.broadcast %192 : f32 to vector<1x1x256xf32>
      %457 = arith.mulf %453, %456 : vector<1x1x256xf32>
      %458 = arith.addf %455, %457 : vector<1x1x256xf32>
      %459 = arith.andi %74, %37 : vector<1x1x256xi1>
      %cst_110 = arith.constant 0.000000e+00 : f32
      %460 = vector.broadcast %cst_110 : f32 to vector<1x1x256xf32>
      %461 = arith.select %459, %458, %460 : vector<1x1x256xi1>, vector<1x1x256xf32>
      %462 = arith.addf %451, %461 : vector<1x1x256xf32>
      %c2_i32_111 = arith.constant 2 : i32
      %463 = tpu.dynamic_rotate %19 by %c2_i32_111 dim 2 : vector<1x1x256xf32>, i32 -> vector<1x1x256xf32>
      %c2_i32_112 = arith.constant 2 : i32
      %464 = tpu.dynamic_rotate %20 by %c2_i32_112 dim 2 : vector<1x1x256xf32>, i32 -> vector<1x1x256xf32>
      %465 = vector.broadcast %144 : f32 to vector<1x1x256xf32>
      %466 = arith.mulf %463, %465 : vector<1x1x256xf32>
      %467 = vector.broadcast %193 : f32 to vector<1x1x256xf32>
      %468 = arith.mulf %464, %467 : vector<1x1x256xf32>
      %469 = arith.addf %466, %468 : vector<1x1x256xf32>
      %470 = arith.andi %74, %51 : vector<1x1x256xi1>
      %cst_113 = arith.constant 0.000000e+00 : f32
      %471 = vector.broadcast %cst_113 : f32 to vector<1x1x256xf32>
      %472 = arith.select %470, %469, %471 : vector<1x1x256xi1>, vector<1x1x256xf32>
      %473 = arith.addf %462, %472 : vector<1x1x256xf32>
      %c1_i32_114 = arith.constant 1 : i32
      %474 = tpu.dynamic_rotate %19 by %c1_i32_114 dim 2 : vector<1x1x256xf32>, i32 -> vector<1x1x256xf32>
      %c1_i32_115 = arith.constant 1 : i32
      %475 = tpu.dynamic_rotate %20 by %c1_i32_115 dim 2 : vector<1x1x256xf32>, i32 -> vector<1x1x256xf32>
      %476 = vector.broadcast %145 : f32 to vector<1x1x256xf32>
      %477 = arith.mulf %474, %476 : vector<1x1x256xf32>
      %478 = vector.broadcast %194 : f32 to vector<1x1x256xf32>
      %479 = arith.mulf %475, %478 : vector<1x1x256xf32>
      %480 = arith.addf %477, %479 : vector<1x1x256xf32>
      %481 = arith.andi %74, %65 : vector<1x1x256xi1>
      %cst_116 = arith.constant 0.000000e+00 : f32
      %482 = vector.broadcast %cst_116 : f32 to vector<1x1x256xf32>
      %483 = arith.select %481, %480, %482 : vector<1x1x256xi1>, vector<1x1x256xf32>
      %484 = arith.addf %473, %483 : vector<1x1x256xf32>
      %485 = vector.broadcast %146 : f32 to vector<1x1x256xf32>
      %486 = arith.mulf %19, %485 : vector<1x1x256xf32>
      %487 = vector.broadcast %195 : f32 to vector<1x1x256xf32>
      %488 = arith.mulf %20, %487 : vector<1x1x256xf32>
      %489 = arith.addf %486, %488 : vector<1x1x256xf32>
      %490 = arith.addf %484, %489 : vector<1x1x256xf32>
      %c255_i32 = arith.constant 255 : i32
      %491 = tpu.dynamic_rotate %19 by %c255_i32 dim 2 : vector<1x1x256xf32>, i32 -> vector<1x1x256xf32>
      %c255_i32_117 = arith.constant 255 : i32
      %492 = tpu.dynamic_rotate %20 by %c255_i32_117 dim 2 : vector<1x1x256xf32>, i32 -> vector<1x1x256xf32>
      %493 = vector.broadcast %147 : f32 to vector<1x1x256xf32>
      %494 = arith.mulf %491, %493 : vector<1x1x256xf32>
      %495 = vector.broadcast %196 : f32 to vector<1x1x256xf32>
      %496 = arith.mulf %492, %495 : vector<1x1x256xf32>
      %497 = arith.addf %494, %496 : vector<1x1x256xf32>
      %498 = arith.andi %74, %93 : vector<1x1x256xi1>
      %cst_118 = arith.constant 0.000000e+00 : f32
      %499 = vector.broadcast %cst_118 : f32 to vector<1x1x256xf32>
      %500 = arith.select %498, %497, %499 : vector<1x1x256xi1>, vector<1x1x256xf32>
      %501 = arith.addf %490, %500 : vector<1x1x256xf32>
      %c254_i32 = arith.constant 254 : i32
      %502 = tpu.dynamic_rotate %19 by %c254_i32 dim 2 : vector<1x1x256xf32>, i32 -> vector<1x1x256xf32>
      %c254_i32_119 = arith.constant 254 : i32
      %503 = tpu.dynamic_rotate %20 by %c254_i32_119 dim 2 : vector<1x1x256xf32>, i32 -> vector<1x1x256xf32>
      %504 = vector.broadcast %148 : f32 to vector<1x1x256xf32>
      %505 = arith.mulf %502, %504 : vector<1x1x256xf32>
      %506 = vector.broadcast %197 : f32 to vector<1x1x256xf32>
      %507 = arith.mulf %503, %506 : vector<1x1x256xf32>
      %508 = arith.addf %505, %507 : vector<1x1x256xf32>
      %509 = arith.andi %74, %107 : vector<1x1x256xi1>
      %cst_120 = arith.constant 0.000000e+00 : f32
      %510 = vector.broadcast %cst_120 : f32 to vector<1x1x256xf32>
      %511 = arith.select %509, %508, %510 : vector<1x1x256xi1>, vector<1x1x256xf32>
      %512 = arith.addf %501, %511 : vector<1x1x256xf32>
      %c253_i32 = arith.constant 253 : i32
      %513 = tpu.dynamic_rotate %19 by %c253_i32 dim 2 : vector<1x1x256xf32>, i32 -> vector<1x1x256xf32>
      %c253_i32_121 = arith.constant 253 : i32
      %514 = tpu.dynamic_rotate %20 by %c253_i32_121 dim 2 : vector<1x1x256xf32>, i32 -> vector<1x1x256xf32>
      %515 = vector.broadcast %149 : f32 to vector<1x1x256xf32>
      %516 = arith.mulf %513, %515 : vector<1x1x256xf32>
      %517 = vector.broadcast %198 : f32 to vector<1x1x256xf32>
      %518 = arith.mulf %514, %517 : vector<1x1x256xf32>
      %519 = arith.addf %516, %518 : vector<1x1x256xf32>
      %520 = arith.andi %74, %121 : vector<1x1x256xi1>
      %cst_122 = arith.constant 0.000000e+00 : f32
      %521 = vector.broadcast %cst_122 : f32 to vector<1x1x256xf32>
      %522 = arith.select %520, %519, %521 : vector<1x1x256xi1>, vector<1x1x256xf32>
      %523 = arith.addf %512, %522 : vector<1x1x256xf32>
      %c243_i32 = arith.constant 243 : i32
      %524 = tpu.dynamic_rotate %19 by %c243_i32 dim 2 : vector<1x1x256xf32>, i32 -> vector<1x1x256xf32>
      %c243_i32_123 = arith.constant 243 : i32
      %525 = tpu.dynamic_rotate %20 by %c243_i32_123 dim 2 : vector<1x1x256xf32>, i32 -> vector<1x1x256xf32>
      %526 = vector.broadcast %150 : f32 to vector<1x1x256xf32>
      %527 = arith.mulf %524, %526 : vector<1x1x256xf32>
      %528 = vector.broadcast %199 : f32 to vector<1x1x256xf32>
      %529 = arith.mulf %525, %528 : vector<1x1x256xf32>
      %530 = arith.addf %527, %529 : vector<1x1x256xf32>
      %531 = arith.andi %88, %37 : vector<1x1x256xi1>
      %cst_124 = arith.constant 0.000000e+00 : f32
      %532 = vector.broadcast %cst_124 : f32 to vector<1x1x256xf32>
      %533 = arith.select %531, %530, %532 : vector<1x1x256xi1>, vector<1x1x256xf32>
      %534 = arith.addf %523, %533 : vector<1x1x256xf32>
      %c242_i32 = arith.constant 242 : i32
      %535 = tpu.dynamic_rotate %19 by %c242_i32 dim 2 : vector<1x1x256xf32>, i32 -> vector<1x1x256xf32>
      %c242_i32_125 = arith.constant 242 : i32
      %536 = tpu.dynamic_rotate %20 by %c242_i32_125 dim 2 : vector<1x1x256xf32>, i32 -> vector<1x1x256xf32>
      %537 = vector.broadcast %151 : f32 to vector<1x1x256xf32>
      %538 = arith.mulf %535, %537 : vector<1x1x256xf32>
      %539 = vector.broadcast %200 : f32 to vector<1x1x256xf32>
      %540 = arith.mulf %536, %539 : vector<1x1x256xf32>
      %541 = arith.addf %538, %540 : vector<1x1x256xf32>
      %542 = arith.andi %88, %51 : vector<1x1x256xi1>
      %cst_126 = arith.constant 0.000000e+00 : f32
      %543 = vector.broadcast %cst_126 : f32 to vector<1x1x256xf32>
      %544 = arith.select %542, %541, %543 : vector<1x1x256xi1>, vector<1x1x256xf32>
      %545 = arith.addf %534, %544 : vector<1x1x256xf32>
      %c241_i32 = arith.constant 241 : i32
      %546 = tpu.dynamic_rotate %19 by %c241_i32 dim 2 : vector<1x1x256xf32>, i32 -> vector<1x1x256xf32>
      %c241_i32_127 = arith.constant 241 : i32
      %547 = tpu.dynamic_rotate %20 by %c241_i32_127 dim 2 : vector<1x1x256xf32>, i32 -> vector<1x1x256xf32>
      %548 = vector.broadcast %152 : f32 to vector<1x1x256xf32>
      %549 = arith.mulf %546, %548 : vector<1x1x256xf32>
      %550 = vector.broadcast %201 : f32 to vector<1x1x256xf32>
      %551 = arith.mulf %547, %550 : vector<1x1x256xf32>
      %552 = arith.addf %549, %551 : vector<1x1x256xf32>
      %553 = arith.andi %88, %65 : vector<1x1x256xi1>
      %cst_128 = arith.constant 0.000000e+00 : f32
      %554 = vector.broadcast %cst_128 : f32 to vector<1x1x256xf32>
      %555 = arith.select %553, %552, %554 : vector<1x1x256xi1>, vector<1x1x256xf32>
      %556 = arith.addf %545, %555 : vector<1x1x256xf32>
      %c240_i32 = arith.constant 240 : i32
      %557 = tpu.dynamic_rotate %19 by %c240_i32 dim 2 : vector<1x1x256xf32>, i32 -> vector<1x1x256xf32>
      %c240_i32_129 = arith.constant 240 : i32
      %558 = tpu.dynamic_rotate %20 by %c240_i32_129 dim 2 : vector<1x1x256xf32>, i32 -> vector<1x1x256xf32>
      %559 = vector.broadcast %153 : f32 to vector<1x1x256xf32>
      %560 = arith.mulf %557, %559 : vector<1x1x256xf32>
      %561 = vector.broadcast %202 : f32 to vector<1x1x256xf32>
      %562 = arith.mulf %558, %561 : vector<1x1x256xf32>
      %563 = arith.addf %560, %562 : vector<1x1x256xf32>
      %564 = arith.andi %88, %79 : vector<1x1x256xi1>
      %cst_130 = arith.constant 0.000000e+00 : f32
      %565 = vector.broadcast %cst_130 : f32 to vector<1x1x256xf32>
      %566 = arith.select %564, %563, %565 : vector<1x1x256xi1>, vector<1x1x256xf32>
      %567 = arith.addf %556, %566 : vector<1x1x256xf32>
      %c239_i32 = arith.constant 239 : i32
      %568 = tpu.dynamic_rotate %19 by %c239_i32 dim 2 : vector<1x1x256xf32>, i32 -> vector<1x1x256xf32>
      %c239_i32_131 = arith.constant 239 : i32
      %569 = tpu.dynamic_rotate %20 by %c239_i32_131 dim 2 : vector<1x1x256xf32>, i32 -> vector<1x1x256xf32>
      %570 = vector.broadcast %154 : f32 to vector<1x1x256xf32>
      %571 = arith.mulf %568, %570 : vector<1x1x256xf32>
      %572 = vector.broadcast %203 : f32 to vector<1x1x256xf32>
      %573 = arith.mulf %569, %572 : vector<1x1x256xf32>
      %574 = arith.addf %571, %573 : vector<1x1x256xf32>
      %575 = arith.andi %88, %93 : vector<1x1x256xi1>
      %cst_132 = arith.constant 0.000000e+00 : f32
      %576 = vector.broadcast %cst_132 : f32 to vector<1x1x256xf32>
      %577 = arith.select %575, %574, %576 : vector<1x1x256xi1>, vector<1x1x256xf32>
      %578 = arith.addf %567, %577 : vector<1x1x256xf32>
      %c238_i32 = arith.constant 238 : i32
      %579 = tpu.dynamic_rotate %19 by %c238_i32 dim 2 : vector<1x1x256xf32>, i32 -> vector<1x1x256xf32>
      %c238_i32_133 = arith.constant 238 : i32
      %580 = tpu.dynamic_rotate %20 by %c238_i32_133 dim 2 : vector<1x1x256xf32>, i32 -> vector<1x1x256xf32>
      %581 = vector.broadcast %155 : f32 to vector<1x1x256xf32>
      %582 = arith.mulf %579, %581 : vector<1x1x256xf32>
      %583 = vector.broadcast %204 : f32 to vector<1x1x256xf32>
      %584 = arith.mulf %580, %583 : vector<1x1x256xf32>
      %585 = arith.addf %582, %584 : vector<1x1x256xf32>
      %586 = arith.andi %88, %107 : vector<1x1x256xi1>
      %cst_134 = arith.constant 0.000000e+00 : f32
      %587 = vector.broadcast %cst_134 : f32 to vector<1x1x256xf32>
      %588 = arith.select %586, %585, %587 : vector<1x1x256xi1>, vector<1x1x256xf32>
      %589 = arith.addf %578, %588 : vector<1x1x256xf32>
      %c237_i32 = arith.constant 237 : i32
      %590 = tpu.dynamic_rotate %19 by %c237_i32 dim 2 : vector<1x1x256xf32>, i32 -> vector<1x1x256xf32>
      %c237_i32_135 = arith.constant 237 : i32
      %591 = tpu.dynamic_rotate %20 by %c237_i32_135 dim 2 : vector<1x1x256xf32>, i32 -> vector<1x1x256xf32>
      %592 = vector.broadcast %156 : f32 to vector<1x1x256xf32>
      %593 = arith.mulf %590, %592 : vector<1x1x256xf32>
      %594 = vector.broadcast %205 : f32 to vector<1x1x256xf32>
      %595 = arith.mulf %591, %594 : vector<1x1x256xf32>
      %596 = arith.addf %593, %595 : vector<1x1x256xf32>
      %597 = arith.andi %88, %121 : vector<1x1x256xi1>
      %cst_136 = arith.constant 0.000000e+00 : f32
      %598 = vector.broadcast %cst_136 : f32 to vector<1x1x256xf32>
      %599 = arith.select %597, %596, %598 : vector<1x1x256xi1>, vector<1x1x256xf32>
      %600 = arith.addf %589, %599 : vector<1x1x256xf32>
      %c227_i32 = arith.constant 227 : i32
      %601 = tpu.dynamic_rotate %19 by %c227_i32 dim 2 : vector<1x1x256xf32>, i32 -> vector<1x1x256xf32>
      %c227_i32_137 = arith.constant 227 : i32
      %602 = tpu.dynamic_rotate %20 by %c227_i32_137 dim 2 : vector<1x1x256xf32>, i32 -> vector<1x1x256xf32>
      %603 = vector.broadcast %157 : f32 to vector<1x1x256xf32>
      %604 = arith.mulf %601, %603 : vector<1x1x256xf32>
      %605 = vector.broadcast %206 : f32 to vector<1x1x256xf32>
      %606 = arith.mulf %602, %605 : vector<1x1x256xf32>
      %607 = arith.addf %604, %606 : vector<1x1x256xf32>
      %608 = arith.andi %102, %37 : vector<1x1x256xi1>
      %cst_138 = arith.constant 0.000000e+00 : f32
      %609 = vector.broadcast %cst_138 : f32 to vector<1x1x256xf32>
      %610 = arith.select %608, %607, %609 : vector<1x1x256xi1>, vector<1x1x256xf32>
      %611 = arith.addf %600, %610 : vector<1x1x256xf32>
      %c226_i32 = arith.constant 226 : i32
      %612 = tpu.dynamic_rotate %19 by %c226_i32 dim 2 : vector<1x1x256xf32>, i32 -> vector<1x1x256xf32>
      %c226_i32_139 = arith.constant 226 : i32
      %613 = tpu.dynamic_rotate %20 by %c226_i32_139 dim 2 : vector<1x1x256xf32>, i32 -> vector<1x1x256xf32>
      %614 = vector.broadcast %158 : f32 to vector<1x1x256xf32>
      %615 = arith.mulf %612, %614 : vector<1x1x256xf32>
      %616 = vector.broadcast %207 : f32 to vector<1x1x256xf32>
      %617 = arith.mulf %613, %616 : vector<1x1x256xf32>
      %618 = arith.addf %615, %617 : vector<1x1x256xf32>
      %619 = arith.andi %102, %51 : vector<1x1x256xi1>
      %cst_140 = arith.constant 0.000000e+00 : f32
      %620 = vector.broadcast %cst_140 : f32 to vector<1x1x256xf32>
      %621 = arith.select %619, %618, %620 : vector<1x1x256xi1>, vector<1x1x256xf32>
      %622 = arith.addf %611, %621 : vector<1x1x256xf32>
      %c225_i32 = arith.constant 225 : i32
      %623 = tpu.dynamic_rotate %19 by %c225_i32 dim 2 : vector<1x1x256xf32>, i32 -> vector<1x1x256xf32>
      %c225_i32_141 = arith.constant 225 : i32
      %624 = tpu.dynamic_rotate %20 by %c225_i32_141 dim 2 : vector<1x1x256xf32>, i32 -> vector<1x1x256xf32>
      %625 = vector.broadcast %159 : f32 to vector<1x1x256xf32>
      %626 = arith.mulf %623, %625 : vector<1x1x256xf32>
      %627 = vector.broadcast %208 : f32 to vector<1x1x256xf32>
      %628 = arith.mulf %624, %627 : vector<1x1x256xf32>
      %629 = arith.addf %626, %628 : vector<1x1x256xf32>
      %630 = arith.andi %102, %65 : vector<1x1x256xi1>
      %cst_142 = arith.constant 0.000000e+00 : f32
      %631 = vector.broadcast %cst_142 : f32 to vector<1x1x256xf32>
      %632 = arith.select %630, %629, %631 : vector<1x1x256xi1>, vector<1x1x256xf32>
      %633 = arith.addf %622, %632 : vector<1x1x256xf32>
      %c224_i32 = arith.constant 224 : i32
      %634 = tpu.dynamic_rotate %19 by %c224_i32 dim 2 : vector<1x1x256xf32>, i32 -> vector<1x1x256xf32>
      %c224_i32_143 = arith.constant 224 : i32
      %635 = tpu.dynamic_rotate %20 by %c224_i32_143 dim 2 : vector<1x1x256xf32>, i32 -> vector<1x1x256xf32>
      %636 = vector.broadcast %160 : f32 to vector<1x1x256xf32>
      %637 = arith.mulf %634, %636 : vector<1x1x256xf32>
      %638 = vector.broadcast %209 : f32 to vector<1x1x256xf32>
      %639 = arith.mulf %635, %638 : vector<1x1x256xf32>
      %640 = arith.addf %637, %639 : vector<1x1x256xf32>
      %641 = arith.andi %102, %79 : vector<1x1x256xi1>
      %cst_144 = arith.constant 0.000000e+00 : f32
      %642 = vector.broadcast %cst_144 : f32 to vector<1x1x256xf32>
      %643 = arith.select %641, %640, %642 : vector<1x1x256xi1>, vector<1x1x256xf32>
      %644 = arith.addf %633, %643 : vector<1x1x256xf32>
      %c223_i32 = arith.constant 223 : i32
      %645 = tpu.dynamic_rotate %19 by %c223_i32 dim 2 : vector<1x1x256xf32>, i32 -> vector<1x1x256xf32>
      %c223_i32_145 = arith.constant 223 : i32
      %646 = tpu.dynamic_rotate %20 by %c223_i32_145 dim 2 : vector<1x1x256xf32>, i32 -> vector<1x1x256xf32>
      %647 = vector.broadcast %161 : f32 to vector<1x1x256xf32>
      %648 = arith.mulf %645, %647 : vector<1x1x256xf32>
      %649 = vector.broadcast %210 : f32 to vector<1x1x256xf32>
      %650 = arith.mulf %646, %649 : vector<1x1x256xf32>
      %651 = arith.addf %648, %650 : vector<1x1x256xf32>
      %652 = arith.andi %102, %93 : vector<1x1x256xi1>
      %cst_146 = arith.constant 0.000000e+00 : f32
      %653 = vector.broadcast %cst_146 : f32 to vector<1x1x256xf32>
      %654 = arith.select %652, %651, %653 : vector<1x1x256xi1>, vector<1x1x256xf32>
      %655 = arith.addf %644, %654 : vector<1x1x256xf32>
      %c222_i32 = arith.constant 222 : i32
      %656 = tpu.dynamic_rotate %19 by %c222_i32 dim 2 : vector<1x1x256xf32>, i32 -> vector<1x1x256xf32>
      %c222_i32_147 = arith.constant 222 : i32
      %657 = tpu.dynamic_rotate %20 by %c222_i32_147 dim 2 : vector<1x1x256xf32>, i32 -> vector<1x1x256xf32>
      %658 = vector.broadcast %162 : f32 to vector<1x1x256xf32>
      %659 = arith.mulf %656, %658 : vector<1x1x256xf32>
      %660 = vector.broadcast %211 : f32 to vector<1x1x256xf32>
      %661 = arith.mulf %657, %660 : vector<1x1x256xf32>
      %662 = arith.addf %659, %661 : vector<1x1x256xf32>
      %663 = arith.andi %102, %107 : vector<1x1x256xi1>
      %cst_148 = arith.constant 0.000000e+00 : f32
      %664 = vector.broadcast %cst_148 : f32 to vector<1x1x256xf32>
      %665 = arith.select %663, %662, %664 : vector<1x1x256xi1>, vector<1x1x256xf32>
      %666 = arith.addf %655, %665 : vector<1x1x256xf32>
      %c221_i32 = arith.constant 221 : i32
      %667 = tpu.dynamic_rotate %19 by %c221_i32 dim 2 : vector<1x1x256xf32>, i32 -> vector<1x1x256xf32>
      %c221_i32_149 = arith.constant 221 : i32
      %668 = tpu.dynamic_rotate %20 by %c221_i32_149 dim 2 : vector<1x1x256xf32>, i32 -> vector<1x1x256xf32>
      %669 = vector.broadcast %163 : f32 to vector<1x1x256xf32>
      %670 = arith.mulf %667, %669 : vector<1x1x256xf32>
      %671 = vector.broadcast %212 : f32 to vector<1x1x256xf32>
      %672 = arith.mulf %668, %671 : vector<1x1x256xf32>
      %673 = arith.addf %670, %672 : vector<1x1x256xf32>
      %674 = arith.andi %102, %121 : vector<1x1x256xi1>
      %cst_150 = arith.constant 0.000000e+00 : f32
      %675 = vector.broadcast %cst_150 : f32 to vector<1x1x256xf32>
      %676 = arith.select %674, %673, %675 : vector<1x1x256xi1>, vector<1x1x256xf32>
      %677 = arith.addf %666, %676 : vector<1x1x256xf32>
      %c211_i32 = arith.constant 211 : i32
      %678 = tpu.dynamic_rotate %19 by %c211_i32 dim 2 : vector<1x1x256xf32>, i32 -> vector<1x1x256xf32>
      %c211_i32_151 = arith.constant 211 : i32
      %679 = tpu.dynamic_rotate %20 by %c211_i32_151 dim 2 : vector<1x1x256xf32>, i32 -> vector<1x1x256xf32>
      %680 = vector.broadcast %164 : f32 to vector<1x1x256xf32>
      %681 = arith.mulf %678, %680 : vector<1x1x256xf32>
      %682 = vector.broadcast %213 : f32 to vector<1x1x256xf32>
      %683 = arith.mulf %679, %682 : vector<1x1x256xf32>
      %684 = arith.addf %681, %683 : vector<1x1x256xf32>
      %685 = arith.andi %116, %37 : vector<1x1x256xi1>
      %cst_152 = arith.constant 0.000000e+00 : f32
      %686 = vector.broadcast %cst_152 : f32 to vector<1x1x256xf32>
      %687 = arith.select %685, %684, %686 : vector<1x1x256xi1>, vector<1x1x256xf32>
      %688 = arith.addf %677, %687 : vector<1x1x256xf32>
      %c210_i32 = arith.constant 210 : i32
      %689 = tpu.dynamic_rotate %19 by %c210_i32 dim 2 : vector<1x1x256xf32>, i32 -> vector<1x1x256xf32>
      %c210_i32_153 = arith.constant 210 : i32
      %690 = tpu.dynamic_rotate %20 by %c210_i32_153 dim 2 : vector<1x1x256xf32>, i32 -> vector<1x1x256xf32>
      %691 = vector.broadcast %165 : f32 to vector<1x1x256xf32>
      %692 = arith.mulf %689, %691 : vector<1x1x256xf32>
      %693 = vector.broadcast %214 : f32 to vector<1x1x256xf32>
      %694 = arith.mulf %690, %693 : vector<1x1x256xf32>
      %695 = arith.addf %692, %694 : vector<1x1x256xf32>
      %696 = arith.andi %116, %51 : vector<1x1x256xi1>
      %cst_154 = arith.constant 0.000000e+00 : f32
      %697 = vector.broadcast %cst_154 : f32 to vector<1x1x256xf32>
      %698 = arith.select %696, %695, %697 : vector<1x1x256xi1>, vector<1x1x256xf32>
      %699 = arith.addf %688, %698 : vector<1x1x256xf32>
      %c209_i32 = arith.constant 209 : i32
      %700 = tpu.dynamic_rotate %19 by %c209_i32 dim 2 : vector<1x1x256xf32>, i32 -> vector<1x1x256xf32>
      %c209_i32_155 = arith.constant 209 : i32
      %701 = tpu.dynamic_rotate %20 by %c209_i32_155 dim 2 : vector<1x1x256xf32>, i32 -> vector<1x1x256xf32>
      %702 = vector.broadcast %166 : f32 to vector<1x1x256xf32>
      %703 = arith.mulf %700, %702 : vector<1x1x256xf32>
      %704 = vector.broadcast %215 : f32 to vector<1x1x256xf32>
      %705 = arith.mulf %701, %704 : vector<1x1x256xf32>
      %706 = arith.addf %703, %705 : vector<1x1x256xf32>
      %707 = arith.andi %116, %65 : vector<1x1x256xi1>
      %cst_156 = arith.constant 0.000000e+00 : f32
      %708 = vector.broadcast %cst_156 : f32 to vector<1x1x256xf32>
      %709 = arith.select %707, %706, %708 : vector<1x1x256xi1>, vector<1x1x256xf32>
      %710 = arith.addf %699, %709 : vector<1x1x256xf32>
      %c208_i32 = arith.constant 208 : i32
      %711 = tpu.dynamic_rotate %19 by %c208_i32 dim 2 : vector<1x1x256xf32>, i32 -> vector<1x1x256xf32>
      %c208_i32_157 = arith.constant 208 : i32
      %712 = tpu.dynamic_rotate %20 by %c208_i32_157 dim 2 : vector<1x1x256xf32>, i32 -> vector<1x1x256xf32>
      %713 = vector.broadcast %167 : f32 to vector<1x1x256xf32>
      %714 = arith.mulf %711, %713 : vector<1x1x256xf32>
      %715 = vector.broadcast %216 : f32 to vector<1x1x256xf32>
      %716 = arith.mulf %712, %715 : vector<1x1x256xf32>
      %717 = arith.addf %714, %716 : vector<1x1x256xf32>
      %718 = arith.andi %116, %79 : vector<1x1x256xi1>
      %cst_158 = arith.constant 0.000000e+00 : f32
      %719 = vector.broadcast %cst_158 : f32 to vector<1x1x256xf32>
      %720 = arith.select %718, %717, %719 : vector<1x1x256xi1>, vector<1x1x256xf32>
      %721 = arith.addf %710, %720 : vector<1x1x256xf32>
      %c207_i32 = arith.constant 207 : i32
      %722 = tpu.dynamic_rotate %19 by %c207_i32 dim 2 : vector<1x1x256xf32>, i32 -> vector<1x1x256xf32>
      %c207_i32_159 = arith.constant 207 : i32
      %723 = tpu.dynamic_rotate %20 by %c207_i32_159 dim 2 : vector<1x1x256xf32>, i32 -> vector<1x1x256xf32>
      %724 = vector.broadcast %168 : f32 to vector<1x1x256xf32>
      %725 = arith.mulf %722, %724 : vector<1x1x256xf32>
      %726 = vector.broadcast %217 : f32 to vector<1x1x256xf32>
      %727 = arith.mulf %723, %726 : vector<1x1x256xf32>
      %728 = arith.addf %725, %727 : vector<1x1x256xf32>
      %729 = arith.andi %116, %93 : vector<1x1x256xi1>
      %cst_160 = arith.constant 0.000000e+00 : f32
      %730 = vector.broadcast %cst_160 : f32 to vector<1x1x256xf32>
      %731 = arith.select %729, %728, %730 : vector<1x1x256xi1>, vector<1x1x256xf32>
      %732 = arith.addf %721, %731 : vector<1x1x256xf32>
      %c206_i32 = arith.constant 206 : i32
      %733 = tpu.dynamic_rotate %19 by %c206_i32 dim 2 : vector<1x1x256xf32>, i32 -> vector<1x1x256xf32>
      %c206_i32_161 = arith.constant 206 : i32
      %734 = tpu.dynamic_rotate %20 by %c206_i32_161 dim 2 : vector<1x1x256xf32>, i32 -> vector<1x1x256xf32>
      %735 = vector.broadcast %169 : f32 to vector<1x1x256xf32>
      %736 = arith.mulf %733, %735 : vector<1x1x256xf32>
      %737 = vector.broadcast %218 : f32 to vector<1x1x256xf32>
      %738 = arith.mulf %734, %737 : vector<1x1x256xf32>
      %739 = arith.addf %736, %738 : vector<1x1x256xf32>
      %740 = arith.andi %116, %107 : vector<1x1x256xi1>
      %cst_162 = arith.constant 0.000000e+00 : f32
      %741 = vector.broadcast %cst_162 : f32 to vector<1x1x256xf32>
      %742 = arith.select %740, %739, %741 : vector<1x1x256xi1>, vector<1x1x256xf32>
      %743 = arith.addf %732, %742 : vector<1x1x256xf32>
      %c205_i32 = arith.constant 205 : i32
      %744 = tpu.dynamic_rotate %19 by %c205_i32 dim 2 : vector<1x1x256xf32>, i32 -> vector<1x1x256xf32>
      %c205_i32_163 = arith.constant 205 : i32
      %745 = tpu.dynamic_rotate %20 by %c205_i32_163 dim 2 : vector<1x1x256xf32>, i32 -> vector<1x1x256xf32>
      %746 = vector.broadcast %170 : f32 to vector<1x1x256xf32>
      %747 = arith.mulf %744, %746 : vector<1x1x256xf32>
      %748 = vector.broadcast %219 : f32 to vector<1x1x256xf32>
      %749 = arith.mulf %745, %748 : vector<1x1x256xf32>
      %750 = arith.addf %747, %749 : vector<1x1x256xf32>
      %751 = arith.andi %116, %121 : vector<1x1x256xi1>
      %cst_164 = arith.constant 0.000000e+00 : f32
      %752 = vector.broadcast %cst_164 : f32 to vector<1x1x256xf32>
      %753 = arith.select %751, %750, %752 : vector<1x1x256xi1>, vector<1x1x256xf32>
      %754 = arith.addf %743, %753 : vector<1x1x256xf32>
      %755 = math.absf %754 : vector<1x1x256xf32>
      %cst_165 = arith.constant 0.000000e+00 : f32
      %756 = vector.broadcast %cst_165 : f32 to vector<1x1x256xf32>
      %757 = arith.subf %756, %755 : vector<1x1x256xf32>
      %758 = math.exp %757 : vector<1x1x256xf32>
      %cst_166 = arith.constant 0.000000e+00 : f32
      %759 = vector.broadcast %cst_166 : f32 to vector<1x1x256xf32>
      %760 = arith.cmpf oge, %754, %759 : vector<1x1x256xf32>
      %cst_167 = arith.constant 1.000000e+00 : f32
      %761 = vector.broadcast %cst_167 : f32 to vector<1x1x256xf32>
      %762 = arith.select %760, %761, %758 : vector<1x1x256xi1>, vector<1x1x256xf32>
      %cst_168 = arith.constant 1.000000e+00 : f32
      %763 = vector.broadcast %cst_168 : f32 to vector<1x1x256xf32>
      %764 = arith.addf %763, %758 : vector<1x1x256xf32>
      %765 = arith.divf %762, %764 : vector<1x1x256xf32>
      %c0_169 = arith.constant 0 : index
      %c0_170 = arith.constant 0 : index
      %c0_171 = arith.constant 0 : index
      %766 = vector.load %arg5[%c0_169, %c0_170, %c0_171] : memref<1x1x256xf32, #tpu.memory_space<vmem>>, vector<1x1x256xf32>
      tpu.vector_store %arg5[%c0_169, %c0_170, %c0_171], %765 {strides = array<i32>} : memref<1x1x256xf32, #tpu.memory_space<vmem>>, vector<1x1x256xf32>,
    } else {
    }
    return
  }
  func.func @transform_0(%arg0: i32, %arg1: i32) -> i32 {
    %c0_i32 = arith.constant 0 : i32
    %c0_i32_0 = arith.constant 0 : i32
    return %c0_i32 : i32
  }
  func.func @transform_1(%arg0: i32, %arg1: i32) -> (i32, i32, i32) {
    %c0_i32 = arith.constant 0 : i32
    %c0_i32_0 = arith.constant 0 : i32
    %c0_i32_1 = arith.constant 0 : i32
    %c0_i32_2 = arith.constant 0 : i32
    return %c0_i32, %c0_i32_0, %c0_i32_1 : i32, i32, i32
  }
  func.func @transform_2(%arg0: i32, %arg1: i32) -> (i32, i32, i32) {
    %c0_i32 = arith.constant 0 : i32
    %c0_i32_0 = arith.constant 0 : i32
    return %arg0, %arg1, %c0_i32 : i32, i32, i32
  }
  func.func @transform_3(%arg0: i32, %arg1: i32) -> (i32, i32, i32) {
    %c0_i32 = arith.constant 0 : i32
    %c0_i32_0 = arith.constant 0 : i32
    %c0_i32_1 = arith.constant 0 : i32
    return %arg0, %c0_i32, %c0_i32_0 : i32, i32, i32
  }
}

</mosaic_0001>

<bundles_post_ra>
// kernel: tpu_custom_call.1
= control target key start
LH: loop header
LB: loop body
LE: loop exit
PB: predicated region body
PF: predicated region fallthrough
CT: control target
= control target key end

     0   :  { %8 = vsyncpa [#allocation7], 0  ;;  %s4389_s0 = inlined_call_operand.hbm [shape: f32[98], index: 0, kind: input, shape index: {}]   ;;  %s4390_s1 = inlined_call_operand.hbm [shape: s32[2,1,256], index: 1, kind: input, shape index: {}]   ;;  %s4391_s2 = inlined_call_operand.hbm [shape: f32[2,4,256], index: 2, kind: input, shape index: {}]   ;;  %s4392_s3 = inlined_call_operand.hbm [shape: f32[2,1,256], index: 3, kind: output, shape index: {}]  }
   0x1   :  { %9 = vsyncpa [#allocation5], 0 }
   0x2   :  { %10 = vsyncpa [#allocation10], 0 }
   0x3   :  { %12 = vsyncpa [#allocation10 + $0x1], 0 }
   0x4   :  { %13 = vsyncpa [#allocation6], 0 }
   0x5   :  { %15 = vsyncpa [#allocation6 + $0x1], 0  ;;  %s2521_s12 = smov 0   ;;  %s2523_s13 = smov 0  }
   0x6   :  { %s2525_s14 = smov 0   ;;  %s2527_s15 = smov 0  }
   0x7   :  { %s2529_s16 = smov 0   ;;  %s2531_s17 = smov 0  }
   0x8 LB: > { %s2022_s18 = sadd.s32 4294967295, %s2445_s17   ;;  %s2023_s19 = sadd.s32 4294967294, %s2445_s17   ;;  %s2445_s17 = sphi %s2531_s17, %s21_s17   ;;  %s2441_s16 = sphi %s2529_s16, %s4490_s16   ;;  %s2437_s15 = sphi %s2527_s15, %s4489_s15   ;;  %s2433_s14 = sphi %s2525_s14, %s4488_s14   ;;  %s2429_s13 = sphi %s2523_s13, %s4487_s13   ;;  %s2425_s12 = sphi %s2521_s12, %s4486_s12  }
   0x9   : > { %p97_p0 = scmp.ne.s32.totalorder %s2429_s13, %s2425_s12  ;;  %p2555_p1 = scmp.eq.s32.totalorder %s2022_s18, 0 }
   0xa   : > { %p127_p2 = scmp.eq.s32.totalorder %s2023_s19, 1  ;;  %p2024_p4 = scmp.ge.s32.totalorder %s2445_s17, 1 }
   0xb   : > { %p2561_p3 = por %p2555_p1, %p97_p0  ;;  %p134_p6 = scmp.lt.s32.totalorder %s2445_s17, 3 }
   0xc   : > { %p2566_p5 = por %p127_p2, %p97_p0  ;;  %s146_s25 = sshll.u32 %s4389_s0, 4  ;;  %s147_s25 = int_to_ptr.hbm [resolvable:$true] %s146_s25 }
   0xd   : > { %p2574_p7 = pnand %p2024_p4, %p134_p6  ;;  %p2027_p8 = scmp.ge.s32.totalorder %s2445_s17, 2 }
   0xe   : > { %s155_s29 = sshll.u32 %s4390_s1, 4  ;;  %s2447_s30 = smov [#allocation8]   ;;  %s156_s29 = int_to_ptr.hbm [resolvable:$true] %s155_s29 }
   0xf   : > { %p2150_p9 = pneg %p2574_p7  ;;  %s157_s4 = sshll.u32 %s2447_s30, 4  ;;  %s158_s4 = int_to_ptr.vmem [resolvable:$true] %s157_s4 }
  0x10   : > { %s2448_s5 = smov [#allocation4]   ;;  %s2449_s6 = smov 32  }
  0x11   : > { %p2151_p10 = pnand %p2150_p9, %p2555_p1  ;;  %s2450_s7 = smov 2  }
  0x12   : > { %p121_p11 = scmp.eq.s32.totalorder %s2022_s18, 1  ;;  %s33_s8 = sadd.s32 1, %s2441_s16 }
  0x13   : > { %2153 = dma.hbm_to_smem (!%p2151_p10), %s147_s25, 16, %s2448_s5, [#allocation7]  }
  0x14   : > { %2156 = dma.hbm_to_vmem [thread:$0]  (!%p2151_p10), %s156_s29, 64, %s158_s4, [#allocation5], %s2449_s6, %s2449_s6, %s2450_s7  }
  0x15   : > { %p35_p12 = scmp.ge.s32.totalorder %s33_s8, 2  ;;  %s84_s9 = sadd.s32 1, %s2433_s14 }
  0x16   : > { %p91_p13 = scmp.ne.s32.totalorder %s2433_s14, %s2429_s13  ;;  %p92_p0 = scmp.eq.s32.totalorder %s2445_s17, 0 }
  0x17   : > { %s4492_s8 = smov (%p35_p12, %s33_s8), 0  ;;  %p2167_p4 = scmp.lt.s32.totalorder %s2445_s17, 2 }
  0x18   : > { %p2593_p2 = por %p121_p11, %p91_p13  ;;  %s79_s11 = ssub.s32 %s2441_s16, %s4492_s8 }
  0x19   : > { %s171_s19 = sand.u32 1, %s2433_s14   ;;  %p82_p6 = scmp.eq.s32.totalorder %s79_s11, 0 }
  0x1a   : > { %p93_p9 = por %p92_p0, %p91_p13  ;;  %s2028_s23 = sshll.u32 %s171_s19, 3 }
  0x1b   : > { %s2137_s18 = sshll.u32 %s2441_s16, 3  ;;  %s175_s30 = scalar_lea.vmem [#allocation9], %s2028_s23 }
  0x1c   : > { %s2603_s24 = scalar_select %p82_p6, %s2433_s14, %s84_s9  }
  0x1d   : > { %s182_s28 = scalar_lea.hbm %s4391_s2, %s2137_s18  ;;  %s186_s4 = sshll.u32 %s175_s30, 4  ;;  %s187_s4 = int_to_ptr.vmem [resolvable:$true] %s186_s4 }
  0x1e   : > { %s184_s29 = sshll.u32 %s182_s28, 4  ;;  %p2158_p10 = pnand %p2167_p4, %p93_p9  ;;  %s185_s29 = int_to_ptr.hbm [resolvable:$true] %s184_s29 }
  0x1f   : > { %s172_s5 = scalar_lea.sflag [#allocation10], %s171_s19  ;;  %195 = sbr.rel (%p2574_p7) target bundleno = 751 (0x2ef), region = 32 }
  0x20   : > { %2160 = dma.hbm_to_vmem [thread:$0]  (!%p2158_p10), %s185_s29, 128, %s187_s4, %s172_s5  }
  0x24   : > { %2408 = dma.done.wait (%p2555_p1), [#allocation7], 16  }
  0x25   : > { %2410 = vsyncadd (%p2555_p1), [#allocation7], 4294967280 }
  0x26   : > { %2412 = dma.done.wait (%p2555_p1), [#allocation5], 64  }
  0x27   : > { %2414 = vsyncadd (%p2555_p1), [#allocation5], 4294967232  ;;  %s2621_s6 = sand.u32 1, %s2429_s13  }
  0x28   : > { %s2034_s26 = sshll.u32 %s2621_s6, 3  ;;  %s208_s7 = scalar_lea.sflag [#allocation10], %s2621_s6 }
  0x29   : > { %s211_s9 = scalar_lea.vmem [#allocation9], %s2034_s26 }
  0x2a   : > { %2416 = dma.done.wait (%p2561_p3), %s208_s7, 128  }
  0x2b   : > { %2418 = vsyncadd (%p2561_p3), %s208_s7, 4294967168 }
  0x2c   : > { %217 = sfence }
  0x2d   : > { %v240_v0 = vlaneseq  ;;  %v246_v1 = vld [vmem:[%s211_s9] sm:$0xff]  ;;  %v4402_v2 = vmov 0  ;;  %v2451_v3 = vmov 0.0   ;;  %v2452_v4 = vmov -inf   ;;  %s2453_s20 = smov 48   ;;  %s2454_s21 = smov 51  }
  0x2e   : > { %249 = vst [vmem:[#allocation1] ss:$2 sm:$0xff] %v246_v1  ;;  %vm254_vm1 = vcmask 1043456   ;;  %vm4396_vm2 = vcmask 1040384   ;;  %s2455_s11 = smov 50   ;;  %s2456_s19 = smov 47  }
  0x2f   : > { %vm2630_vm0 = vcmp.lt.s32.totalorder %v240_v0, 256  ;;  %s2457_s23 = smov 49   ;;  %s2458_s18 = smov 46  }
  0x30   : > { %v4403_v2 = vsel %vm2630_vm0, 4294967295, %v4402_v2  ;;  %244 = vst.msk [vmem:[#allocation2] sm:$0x3] %vm2630_vm0, %v2451_v3  ;;  %s2459_s25 = smov 45   ;;  %s2460_s27 = smov 35  }
  0x31   : > { %4404 = vst [vmem:[#allocation16_spill] sm:$0xff] %v4403_v2  ;;  %s2461_s28 = smov 34   ;;  %s2462_s29 = smov 33  }
  0x32   : > { %245 = vst.msk [vmem:[#allocation3] sm:$0x3] %vm2630_vm0, %v2452_v4  ;;  %s2463_s30 = smov 32   ;;  %s2464_s4 = smov 31  }
  0x33   : > { %s2465_s5 = smov 30   ;;  %s2466_s26 = smov 29  }
  0x34   : > { %s2467_s7 = smov 19   ;;  %s2468_s9 = smov 18  }
  0x35   : > { %v250_v5 = vld.sshfl [vmem:[#allocation1] sm:$0xff pattern:$0x75316420]  ;;  %v251_v6 = vld.sshfl [vmem:[#allocation1 + $0x8] sm:$0xff pattern:$0x75316420] }
  0x36   : > { %v255_v7 = vsel %vm254_vm1, %v250_v5, 0.0  ;;  %v262_v8 = vsel %vm254_vm1, %v251_v6, 0.0  ;;  %282 = vst [vmem:[#allocation1] ss:$2 sm:$0xff] %v246_v1 }
  0x37   : > { %v256_v9 = vrot.slane %v255_v7, 4  ;;  %v263_v10 = vrot.slane %v262_v8, 4  ;;  %v247_v29 = vld [vmem:[#allocation2] sm:$0x3] }
  0x39   : > { %v257_v11 = vadd.f32 %v256_v9, %v255_v7  ;;  %v264_v12 = vadd.f32 %v263_v10, %v262_v8  ;;  %v281_v41 = vld [vmem:[#allocation3] sm:$0x3] }
  0x3b   : > { %v258_v13 = vrot.slane %v257_v11, 2  ;;  %v265_v14 = vrot.slane %v264_v12, 2 }
  0x3d   : > { %v259_v15 = vadd.f32 %v258_v13, %v257_v11  ;;  %v266_v16 = vadd.f32 %v265_v14, %v264_v12  ;;  %v283_v17 = vld.sshfl [vmem:[#allocation1] sm:$0xff pattern:$0x75316420]  ;;  %v284_v18 = vld.sshfl [vmem:[#allocation1 + $0x8] sm:$0xff pattern:$0x75316420] }
  0x3e   : > { %v287_v19 = vsel %vm254_vm1, %v283_v17, -inf  ;;  %v294_v20 = vsel %vm254_vm1, %v284_v18, -inf }
  0x3f   : > { %v260_v21 = vrot.slane %v259_v15, 1  ;;  %v267_v22 = vrot.slane %v266_v16, 1  ;;  %v288_v23 = vrot.slane %v287_v19, 4  ;;  %v295_v24 = vrot.slane %v294_v20, 4 }
  0x41   : > { %v261_v25 = vadd.f32 %v260_v21, %v259_v15  ;;  %v268_v26 = vadd.f32 %v267_v22, %v266_v16  ;;  %v289_v27 = vmax.f32 %v287_v19, %v288_v23  ;;  %v296_v28 = vmax.f32 %v294_v20, %v295_v24  ;;  %v2818_v24 = vld [vmem:[#allocation8 + $0x2] sm:$0x3] }
  0x42   : > { %v2796_v20 = vand.u32 127, %v240_v0  ;;  %v2816_v0 = vld [vmem:[#allocation8] sm:$0x3] }
  0x43   : > { %v271_v30 = vrot.slane %v268_v26, 7  ;;  %v290_v31 = vrot.slane %v289_v27, 2  ;;  %v297_v32 = vrot.slane %v296_v28, 2 }
  0x44   : > { %vm513_vm3 = vcmp.lt.s32.totalorder %v2796_v20, 50  ;;  %vm600_vm4 = vcmp.lt.s32.totalorder %v2796_v20, 47  ;;  %vm479_vm5 = vcmp.lt.s32.totalorder %v2796_v20, 51  ;;  %vm542_vm6 = vcmp.lt.s32.totalorder %v2796_v20, 49 }
  0x45   : > { %v273_v33 = vsel %vm4396_vm2, %v261_v25, %v271_v30  ;;  %v291_v34 = vmax.f32 %v289_v27, %v290_v31  ;;  %v298_v35 = vmax.f32 %v296_v28, %v297_v32  ;;  %v2848_v31 = vadd.s32 4294967293, %v2818_v24 }
  0x46   : > { %v275_v36 = vadd.f32 %v273_v33, %v247_v29  ;;  %v2838_v29 = vadd.s32 4294967293, %v2816_v0  ;;  %vm571_vm7 = vcmp.lt.s32.totalorder %v2796_v20, 48 }
  0x47   : > { %v292_v37 = vrot.slane %v291_v34, 1  ;;  %v299_v38 = vrot.slane %v298_v35, 1  ;;  %vm321_vm10 = vcmp.ge.s32.totalorder %v2848_v31, 0  ;;  %vm322_vm11 = vcmp.lt.s32.totalorder %v2848_v31, 16 }
  0x48   : > { %280 = vst.msk [vmem:[#allocation2] sm:$0x3] %vm2630_vm0, %v275_v36  ;;  %vm318_vm8 = vcmp.ge.s32.totalorder %v2838_v29, 0  ;;  %vm319_vm9 = vcmp.lt.s32.totalorder %v2838_v29, 16 }
  0x49   : > { %v293_v39 = vmax.f32 %v291_v34, %v292_v37  ;;  %v300_v40 = vmax.f32 %v298_v35, %v299_v38  ;;  %v325_v37 = vadd.s32 4294967294, %v2818_v24 }
  0x4b   : > { %v303_v42 = vrot.slane %v300_v40, 7  ;;  %vm329_vm12 = vcmp.ge.s32.totalorder %v325_v37, 0  ;;  %vm330_vm13 = vcmp.lt.s32.totalorder %v325_v37, 16 }
  0x4d   : > { %v304_v43 = vsel %vm4396_vm2, %v293_v39, %v303_v42 }
  0x4e   : > { %v306_v44 = vmax.f32 %v281_v41, %v304_v43 }
  0x4f   : > { %v311_v45 = vld [vmem:[#allocation2] sm:$0x3] }
  0x50   : > { %v2646_v46 = vmul.f32 0.25, %v311_v45  ;;  %307 = vst.msk [vmem:[#allocation3] sm:$0x3] %vm2630_vm0, %v306_v44 }
  0x52   : > { %4405 = vst [vmem:[#allocation17_spill] sm:$0xff] %v2646_v46  ;;  %v2651_v47 = vperm.slane %v2646_v46, 1  ;;  %v2654_v48 = vperm.slane %v2646_v46, 0 }
  0x54   : > { %569 = vrot.lane.b32.xlu1 %v2651_v47, %s2453_s20  ;;  %473 = vrot.lane.b32.xlu0 %v2654_v48, %s2454_s21 }
  0x55   : > { %509 = vrot.lane.b32.xlu2 %v2654_v48, %s2455_s11 }
  0x57   : > { %v313_v49 = vld [vmem:[#allocation3] sm:$0x3] }
  0x58   : > { %v2662_v50 = vperm.slane %v313_v49, 0  ;;  %v2667_v51 = vperm.slane %v313_v49, 1 }
  0x5c   : > { %596 = vrot.lane.b32.xlu1 %v2654_v48, %s2456_s19  ;;  %475 = vrot.lane.b32.xlu0 %v2651_v47, %s2454_s21 }
  0x5d   : > { %511 = vrot.lane.b32.xlu2 %v2651_v47, %s2455_s11 }
  0x64   : > { %487 = vrot.lane.b32.xlu1 %v2662_v50, %s2454_s21  ;;  %540 = vrot.lane.b32.xlu0 %v2651_v47, %s2457_s23 }
  0x65   : > { %538 = vrot.lane.b32.xlu2 %v2654_v48, %s2457_s23 }
  0x6c   : > { %489 = vrot.lane.b32.xlu1 %v2667_v51, %s2454_s21  ;;  %567 = vrot.lane.b32.xlu0 %v2654_v48, %s2453_s20  ;;  %s2470_s21 = smov 16  }
  0x6d   : > { %598 = vrot.lane.b32.xlu2 %v2651_v47, %s2456_s19 }
  0x74   : > { %518 = vrot.lane.b32.xlu1 %v2667_v51, %s2455_s11  ;;  %516 = vrot.lane.b32.xlu0 %v2662_v50, %s2455_s11  ;;  %s2789_s11 = sld [smem:[#allocation4 + $0x1]] }
  0x75   : > { %547 = vrot.lane.b32.xlu2 %v2667_v51, %s2457_s23 }
  0x7a   : > { %v522_v25 = vstv %s2789_s11  ;;  %s2473_s11 = smov 13  }
  0x7c   : > { %545 = vrot.lane.b32.xlu1 %v2662_v50, %s2457_s23  ;;  %576 = vrot.lane.b32.xlu0 %v2667_v51, %s2453_s20  ;;  %s2798_s23 = sld [smem:[#allocation4]] }
  0x7d   : > { %574 = vrot.lane.b32.xlu2 %v2662_v50, %s2453_s20  ;;  %s2469_s20 = smov 17  }
  0x82   : > { %v493_v30 = vstv %s2798_s23  ;;  %s3070_s23 = sld [smem:[#allocation4 + $0x38]] }
  0x84   : > { %605 = vrot.lane.b32.xlu1 %v2667_v51, %s2456_s19  ;;  %603 = vrot.lane.b32.xlu0 %v2662_v50, %s2456_s19  ;;  %s2791_s19 = sld [smem:[#allocation4 + $0x4]] }
  0x85   : > { %625 = vrot.lane.b32.xlu2 %v2654_v48, %s2458_s18 }
  0x8a   : > { %v609_v28 = vstv %s2791_s19  ;;  %s3057_s19 = sld [smem:[#allocation4 + $0x7]] }
  0x8c   : > { %632 = vrot.lane.b32.xlu1 %v2662_v50, %s2458_s18  ;;  %627 = vrot.lane.b32.xlu0 %v2651_v47, %s2458_s18 }
  0x8d   : > { %634 = vrot.lane.b32.xlu2 %v2667_v51, %s2458_s18  ;;  %s2801_s18 = sld [smem:[#allocation4 + $0x2]] }
  0x93   : > { %v551_v36 = vstv %s2801_s18  ;;  %s3136_s18 = sld [smem:[#allocation4 + $0x39]] }
  0x94   : > { %656 = vrot.lane.b32.xlu1 %v2651_v47, %s2459_s25  ;;  %654 = vrot.lane.b32.xlu0 %v2654_v48, %s2459_s25 }
  0x95   : > { %661 = vrot.lane.b32.xlu2 %v2662_v50, %s2459_s25 }
  0x9c   : > { %683 = vrot.lane.b32.xlu1 %v2654_v48, %s2460_s27  ;;  %663 = vrot.lane.b32.xlu0 %v2667_v51, %s2459_s25  ;;  %s2807_s25 = sld [smem:[#allocation4 + $0x31]] }
  0x9d   : > { %685 = vrot.lane.b32.xlu2 %v2651_v47, %s2460_s27 }
  0xa2   : > { %v496_v39 = vstv %s2807_s25  ;;  %s3149_s25 = sld [smem:[#allocation4 + $0x8]] }
  0xa4   : > { %692 = vrot.lane.b32.xlu1 %v2667_v51, %s2460_s27  ;;  %690 = vrot.lane.b32.xlu0 %v2662_v50, %s2460_s27  ;;  %s2811_s27 = sld [smem:[#allocation4 + $0x32]] }
  0xa5   : > { %712 = vrot.lane.b32.xlu2 %v2654_v48, %s2461_s28 }
  0xaa   : > { %v525_v40 = vstv %s2811_s27  ;;  %s3157_s27 = sld [smem:[#allocation4 + $0x9]] }
  0xac   : > { %719 = vrot.lane.b32.xlu1 %v2662_v50, %s2461_s28  ;;  %714 = vrot.lane.b32.xlu0 %v2651_v47, %s2461_s28 }
  0xad   : > { %721 = vrot.lane.b32.xlu2 %v2667_v51, %s2461_s28  ;;  %s2814_s28 = sld [smem:[#allocation4 + $0x3]] }
  0xaf   : > { %v2696_v52 = vpop.permute.xlu2 %509 }
  0xb4   : > { %743 = vrot.lane.b32.xlu1 %v2651_v47, %s2462_s29  ;;  %741 = vrot.lane.b32.xlu0 %v2654_v48, %s2462_s29 }
  0xb5   : > { %748 = vrot.lane.b32.xlu2 %v2662_v50, %s2462_s29 }
  0xb7   : > { %v2701_v53 = vpop.permute.xlu2 %511 }
  0xb8   : > { %v514_v26 = vsel %vm513_vm3, %v2696_v52, %v2701_v53  ;;  %v515_v27 = vsel %vm513_vm3, %v2701_v53, %v2696_v52  ;;  %v2895_v53 = vadd.s32 4294967295, %v2818_v24 }
  0xb9   : > { %v2854_v34 = vmul.f32 %v522_v25, %v515_v27  ;;  %v524_v35 = vmul.f32 %v522_v25, %v514_v26 }
  0xba   : > { %vm337_vm14 = vcmp.ge.s32.totalorder %v2895_v53, 0  ;;  %vm338_vm15 = vcmp.lt.s32.totalorder %v2895_v53, 16 }
  0xbc   : > { %770 = vrot.lane.b32.xlu1 %v2654_v48, %s2463_s30  ;;  %750 = vrot.lane.b32.xlu0 %v2667_v51, %s2462_s29  ;;  %s2820_s29 = sld [smem:[#allocation4 + $0x33]] }
  0xbd   : > { %772 = vrot.lane.b32.xlu2 %v2651_v47, %s2463_s30 }
  0xbf   : > { %v2706_v54 = vpop.permute.xlu2 %538 }
  0xc4   : > { %779 = vrot.lane.b32.xlu1 %v2667_v51, %s2463_s30  ;;  %777 = vrot.lane.b32.xlu0 %v2662_v50, %s2463_s30  ;;  %s2471_s30 = smov 15  }
  0xc5   : > { %799 = vrot.lane.b32.xlu2 %v2654_v48, %s2464_s4 }
  0xc6   : > { %v2711_v55 = vpop.permute.xlu1 %569  ;;  %v2713_v56 = vpop.permute.xlu0 %473 }
  0xc7   : > { %v2715_v57 = vpop.permute.xlu2 %598 }
  0xcc   : > { %806 = vrot.lane.b32.xlu1 %v2662_v50, %s2464_s4  ;;  %801 = vrot.lane.b32.xlu0 %v2651_v47, %s2464_s4 }
  0xcd   : > { %808 = vrot.lane.b32.xlu2 %v2667_v51, %s2464_s4  ;;  %s2840_s4 = sld [smem:[#allocation4 + $0x34]] }
  0xce   : > { %v2720_v58 = vpop.permute.xlu1 %596  ;;  %v2722_v59 = vpop.permute.xlu0 %475 }
  0xcf   : > { %v2724_v60 = vpop.permute.xlu2 %547  ;;  %v601_v42 = vsel %vm600_vm4, %v2720_v58, %v2715_v57  ;;  %v602_v43 = vsel %vm600_vm4, %v2715_v57, %v2720_v58  ;;  %v480_v45 = vsel %vm479_vm5, %v2713_v56, %v2722_v59  ;;  %v481_v49 = vsel %vm479_vm5, %v2722_v59, %v2713_v56 }
  0xd0   : > { %v554_v58 = vstv %s2820_s29  ;;  %v2902_v59 = vmul.f32 %v609_v28, %v602_v43  ;;  %v2904_v25 = vmul.f32 %v609_v28, %v601_v42  ;;  %v494_v27 = vmul.f32 %v493_v30, %v481_v49  ;;  %s3176_s29 = sld [smem:[#allocation4 + $0x3a]] }
  0xd4   : > { %830 = vrot.lane.b32.xlu1 %v2651_v47, %s2465_s5  ;;  %828 = vrot.lane.b32.xlu0 %v2654_v48, %s2465_s5 }
  0xd5   : > { %835 = vrot.lane.b32.xlu2 %v2662_v50, %s2465_s5 }
  0xd6   : > { %v2729_v61 = vpop.permute.xlu1 %487  ;;  %v2731_v62 = vpop.permute.xlu0 %540 }
  0xd7   : > { %v2733_v63 = vpop.permute.xlu2 %574  ;;  %v543_v26 = vsel %vm542_vm6, %v2706_v54, %v2731_v62  ;;  %v544_v49 = vsel %vm542_vm6, %v2731_v62, %v2706_v54  ;;  %v2951_v62 = vadd.s32 1, %v2818_v24 }
  0xd9   : > { %vm351_vm1 = vcmp.ge.s32.totalorder %v2951_v62, 0 }
  0xdc   : > { %857 = vrot.lane.b32.xlu1 %v2654_v48, %s2466_s26  ;;  %837 = vrot.lane.b32.xlu0 %v2667_v51, %s2465_s5  ;;  %s2858_s5 = sld [smem:[#allocation4 + $0x35]] }
  0xdd   : > { %859 = vrot.lane.b32.xlu2 %v2651_v47, %s2466_s26 }
  0xde   : > { %v2738_v1 = vpop.permute.xlu1 %489  ;;  %v2740_v3 = vpop.permute.xlu0 %567 }
  0xdf   : > { %v2742_v4 = vpop.permute.xlu2 %625  ;;  %v491_v52 = vsel %vm479_vm5, %v2729_v61, %v2738_v1 }
  0xe0   : > { %v498_v43 = vmul.f32 %v496_v39, %v491_v52  ;;  %v553_v52 = vmul.f32 %v551_v36, %v543_v26  ;;  %v552_v26 = vmul.f32 %v551_v36, %v544_v49  ;;  %v4409_v36 = vstv %s2840_s4  ;;  %s3197_s4 = sld [smem:[#allocation4 + $0x3b]] }
  0xe2   : > { %v612_v2 = vstv %s2858_s5  ;;  %s3201_s5 = sld [smem:[#allocation4 + $0x3c]] }
  0xe4   : > { %866 = vrot.lane.b32.xlu1 %v2667_v51, %s2466_s26  ;;  %864 = vrot.lane.b32.xlu0 %v2662_v50, %s2466_s26  ;;  %s2472_s26 = smov 14  }
  0xe5   : > { %886 = vrot.lane.b32.xlu2 %v2654_v48, %s2467_s7 }
  0xe6   : > { %v2747_v5 = vpop.permute.xlu1 %518  ;;  %v2749_v6 = vpop.permute.xlu0 %516 }
  0xe7   : > { %v2751_v7 = vpop.permute.xlu2 %634  ;;  %v520_v41 = vsel %vm513_vm3, %v2749_v6, %v2747_v5  ;;  %v521_v28 = vsel %vm513_vm3, %v2747_v5, %v2749_v6  ;;  %v492_v6 = vsel %vm479_vm5, %v2738_v1, %v2729_v61  ;;  %vm344_vm3 = vcmp.lt.s32.totalorder %v2818_v24, 16  ;;  %vm2969_vm5 = vmand %vm329_vm12, %vm330_vm13 }
  0xe8   : > { %v527_v57 = vmul.f32 %v525_v40, %v520_v41  ;;  %v495_v41 = vmul.f32 %v493_v30, %v480_v45 }
  0xea   : > { %v529_v44 = vadd.f32 %v527_v57, %v524_v35  ;;  %v500_v35 = vadd.f32 %v498_v43, %v495_v41  ;;  %v526_v57 = vmul.f32 %v525_v40, %v521_v28  ;;  %v573_v40 = vsel %vm571_vm7, %v2711_v55, %v2740_v3 }
  0xeb   : > { %v4412_v43 = vstv %s2814_s28  ;;  %s3170_s28 = sld [smem:[#allocation4 + $0xa]] }
  0xec   : > { %893 = vrot.lane.b32.xlu1 %v2662_v50, %s2467_s7  ;;  %888 = vrot.lane.b32.xlu0 %v2651_v47, %s2467_s7 }
  0xed   : > { %895 = vrot.lane.b32.xlu2 %v2667_v51, %s2467_s7  ;;  %s2915_s7 = sld [smem:[#allocation4 + $0x36]] }
  0xee   : > { %v2756_v8 = vpop.permute.xlu1 %545  ;;  %v2758_v9 = vpop.permute.xlu0 %576 }
  0xef   : > { %v2760_v10 = vpop.permute.xlu2 %661  ;;  %v549_v56 = vsel %vm542_vm6, %v2756_v8, %v2724_v60  ;;  %v578_v54 = vsel %vm571_vm7, %v2733_v63, %v2758_v9  ;;  %v550_v61 = vsel %vm542_vm6, %v2724_v60, %v2756_v8  ;;  %v533_v8 = vrot.slane %v529_v44, 7  ;;  %vm2979_vm6 = vmand %vm318_vm8, %vm319_vm9 }
  0xf0   : > { %v556_v42 = vmul.f32 %v554_v58, %v549_v56  ;;  %v572_v56 = vsel %vm571_vm7, %v2740_v3, %v2711_v55  ;;  %v585_v41 = vmul.f32 %v4409_v36, %v578_v54  ;;  %v555_v3 = vmul.f32 %v554_v58, %v550_v61  ;;  %vm2996_vm8 = vmand %vm321_vm10, %vm322_vm11 }
  0xf1   : > { %v582_v55 = vmul.f32 %v4412_v43, %v572_v56  ;;  %v504_v44 = vrot.slane %v500_v35, 7  ;;  %v528_v58 = vadd.f32 %v526_v57, %v2854_v34  ;;  %vm629_vm9 = vcmp.lt.s32.totalorder %v2796_v20, 46  ;;  %vm530_vm10 = vmand %vm2979_vm6, %vm2969_vm5 }
  0xf2   : > { %v558_v46 = vadd.f32 %v556_v42, %v553_v52  ;;  %v579_v34 = vsel %vm571_vm7, %v2758_v9, %v2733_v63  ;;  %v3016_v42 = vadd.s32 2, %v2818_v24  ;;  %vm3028_vm11 = vmand %vm337_vm14, %vm338_vm15  ;;  %v557_v57 = vadd.f32 %v555_v3, %v552_v26 }
  0xf3   : > { %v641_v28 = vstv %s2915_s7  ;;  %v534_v54 = vsel %vm4396_vm2, %v528_v58, %v533_v8  ;;  %v587_v63 = vadd.f32 %v585_v41, %v582_v55  ;;  %v4418_v61 = vmov %v4409_v36  ;;  %vm559_vm12 = vmand %vm2979_vm6, %vm3028_vm11  ;;  %s2475_s7 = smov 2  }
  0xf4   : > { %917 = vrot.lane.b32.xlu1 %v2651_v47, %s2468_s9  ;;  %915 = vrot.lane.b32.xlu0 %v2654_v48, %s2468_s9  ;;  %v562_v31 = vrot.slane %v558_v46, 7  ;;  %vm352_vm7 = vcmp.lt.s32.totalorder %v2951_v62, 16  ;;  %v536_v26 = vsel %vm530_vm10, %v534_v54, 0.0  ;;  %vm359_vm13 = vcmp.ge.s32.totalorder %v3016_v42, 0 }
  0xf5   : > { %922 = vrot.lane.b32.xlu2 %v2662_v50, %s2468_s9  ;;  %v591_v36 = vrot.slane %v587_v63, 7  ;;  %vm658_vm14 = vcmp.lt.s32.totalorder %v2796_v20, 45  ;;  %vm4419_vm15 = vcmp.ge.s32.totalorder %v2818_v24, 0 }
  0xf6   : > { %v2765_v11 = vpop.permute.xlu1 %605  ;;  %v2767_v12 = vpop.permute.xlu0 %603  ;;  %vm3084_vm10 = vmand %vm4419_vm15, %vm344_vm3  ;;  %vm716_vm15 = vcmp.lt.s32.totalorder %v2796_v20, 34 }
  0xf7   : > { %v2769_v13 = vpop.permute.xlu2 %685  ;;  %v607_v1 = vsel %vm600_vm4, %v2767_v12, %v2765_v11  ;;  %v608_v9 = vsel %vm600_vm4, %v2765_v11, %v2767_v12  ;;  %vm501_vm4 = vmand %vm2979_vm6, %vm2996_vm8  ;;  %v4417_v12 = vmov %v4412_v43 }
  0xf8   : > { %v614_v37 = vmul.f32 %v612_v2, %v607_v1  ;;  %v584_v1 = vmul.f32 %v4418_v61, %v579_v34  ;;  %v613_v8 = vmul.f32 %v612_v2, %v608_v9  ;;  %vm3106_vm3 = vmand %vm351_vm1, %vm352_vm7  ;;  %vm687_vm7 = vcmp.lt.s32.totalorder %v2796_v20, 35 }
  0xf9   : > { %vm588_vm1 = vmand %vm2979_vm6, %vm3084_vm10 }
  0xfa   : > { %v615_v63 = vadd.f32 %v613_v8, %v2902_v59 }
  0xfc   : > { %944 = vrot.lane.b32.xlu1 %v2654_v48, %s2469_s20  ;;  %924 = vrot.lane.b32.xlu0 %v2667_v51, %s2468_s9  ;;  %s2925_s9 = sld [smem:[#allocation4 + $0x5]] }
  0xfd   : > { %946 = vrot.lane.b32.xlu2 %v2651_v47, %s2469_s20 }
  0xfe   : > { %v2774_v14 = vpop.permute.xlu1 %632  ;;  %v2776_v15 = vpop.permute.xlu0 %627 }
  0xff   : > { %v2778_v16 = vpop.permute.xlu2 %712  ;;  %v636_v53 = vsel %vm629_vm9, %v2774_v14, %v2751_v7  ;;  %v637_v9 = vsel %vm629_vm9, %v2751_v7, %v2774_v14  ;;  %v631_v62 = vsel %vm629_vm9, %v2776_v15, %v2742_v4 }
 0x100   : > { %v643_v41 = vmul.f32 %v641_v28, %v636_v53 }
 0x102   : > { %v638_v49 = vstv %s2925_s9  ;;  %s3340_s9 = sld [smem:[#allocation4 + $0xc]] }
 0x104   : > { %953 = vrot.lane.b32.xlu1 %v2667_v51, %s2469_s20  ;;  %951 = vrot.lane.b32.xlu0 %v2662_v50, %s2469_s20  ;;  %s2986_s20 = sld [smem:[#allocation4 + $0x37]] }
 0x105   : > { %973 = vrot.lane.b32.xlu2 %v2654_v48, %s2470_s21 }
 0x106   : > { %v2783_v17 = vpop.permute.xlu1 %656  ;;  %v2785_v18 = vpop.permute.xlu0 %654 }
 0x107   : > { %v2787_v19 = vpop.permute.xlu2 %721 }
 0x10c   : > { %980 = vrot.lane.b32.xlu1 %v2662_v50, %s2470_s21  ;;  %975 = vrot.lane.b32.xlu0 %v2651_v47, %s2470_s21 }
 0x10d   : > { %982 = vrot.lane.b32.xlu2 %v2667_v51, %s2470_s21  ;;  %s3003_s21 = sld [smem:[#allocation4 + $0x6]] }
 0x10e   : > { %v2803_v21 = vpop.permute.xlu1 %683  ;;  %v2805_v22 = vpop.permute.xlu0 %663 }
 0x10f   : > { %v2809_v23 = vpop.permute.xlu2 %748 }
 0x113   : > { %v667_v54 = vstv %s3003_s21  ;;  %s2476_s21 = smov 1  }
 0x114   : > { %1004 = vrot.lane.b32.xlu1 %v2651_v47, %s2471_s30  ;;  %1002 = vrot.lane.b32.xlu0 %v2654_v48, %s2471_s30 }
 0x115   : > { %1009 = vrot.lane.b32.xlu2 %v2662_v50, %s2471_s30 }
 0x116   : > { %v2850_v32 = vpop.permute.xlu1 %692  ;;  %v2852_v33 = vpop.permute.xlu0 %690 }
 0x117   : > { %v2860_v38 = vpop.permute.xlu2 %772 }
 0x118   : > { %4406 = vst [vmem:[#allocation18_spill] sm:$0xff] %v2860_v38  ;;  %v497_v38 = vmul.f32 %v496_v39, %v492_v6 }
 0x11a   : > { %v499_v56 = vadd.f32 %v497_v38, %v494_v27  ;;  %v616_v38 = vadd.f32 %v614_v37, %v2904_v25  ;;  %v630_v27 = vsel %vm629_vm9, %v2742_v4, %v2776_v15  ;;  %v581_v25 = vmul.f32 %v4417_v12, %v573_v40  ;;  %vm617_vm9 = vmand %vm2979_vm6, %vm3106_vm3 }
 0x11b   : > { %v563_v40 = vsel %vm4396_vm2, %v557_v57, %v562_v31  ;;  %v640_v43 = vmul.f32 %v638_v49, %v630_v27  ;;  %v670_v37 = vstv %s2986_s20  ;;  %v659_v57 = vsel %vm658_vm14, %v2785_v18, %v2783_v17  ;;  %s3348_s20 = sld [smem:[#allocation4 + $0x3d]] }
 0x11c   : > { %1031 = vrot.lane.b32.xlu1 %v2654_v48, %s2472_s26  ;;  %1011 = vrot.lane.b32.xlu0 %v2667_v51, %s2471_s30  ;;  %v505_v11 = vsel %vm4396_vm2, %v499_v56, %v504_v44  ;;  %v620_v3 = vrot.slane %v616_v38, 7  ;;  %v665_v44 = vsel %vm658_vm14, %v2760_v10, %v2805_v22  ;;  %v565_v31 = vsel %vm559_vm12, %v563_v40, 0.0  ;;  %s2474_s30 = smov 3  }
 0x11d   : > { %1033 = vrot.lane.b32.xlu2 %v2651_v47, %s2472_s26  ;;  %v507_v55 = vsel %vm501_vm4, %v505_v11, 0.0  ;;  %v586_v34 = vadd.f32 %v584_v1, %v581_v25  ;;  %vm360_vm4 = vcmp.lt.s32.totalorder %v3016_v42, 16  ;;  %v645_v4 = vadd.f32 %v643_v41, %v640_v43 }
 0x11e   : > { %v2927_v30 = vpop.permute.xlu1 %719  ;;  %v2929_v45 = vpop.permute.xlu0 %714  ;;  %v537_v58 = vadd.f32 %v536_v26, %v507_v55  ;;  %v672_v14 = vmul.f32 %v670_v37, %v665_v44  ;;  %v621_v27 = vsel %vm4396_vm2, %v615_v63, %v620_v3  ;;  %v3147_v11 = vadd.s32 3, %v2818_v24  ;;  %vm3182_vm12 = vmand %vm359_vm13, %vm360_vm4 }
 0x11f   : > { %v2936_v5 = vpop.permute.xlu2 %799  ;;  %v592_v7 = vsel %vm4396_vm2, %v586_v34, %v591_v36  ;;  %v642_v12 = vmul.f32 %v641_v28, %v637_v9  ;;  %v639_v25 = vmul.f32 %v638_v49, %v631_v62  ;;  %v669_v61 = vmul.f32 %v667_v54, %v659_v57 }
 0x120   : > { %v566_v59 = vadd.f32 %v565_v31, %v537_v58  ;;  %v666_v1 = vsel %vm658_vm14, %v2805_v22, %v2760_v10  ;;  %v594_v24 = vsel %vm588_vm1, %v592_v7, 0.0  ;;  %v696_v26 = vstv %s3057_s19  ;;  %vm646_vm1 = vmand %vm2979_vm6, %vm3182_vm12  ;;  %s3399_s19 = sld [smem:[#allocation4 + $0x3e]] }
 0x121   : > { %v699_v40 = vstv %s3070_s23  ;;  %v694_v28 = vsel %vm687_vm7, %v2852_v33, %v2850_v32  ;;  %v623_v49 = vsel %vm617_vm9, %v621_v27, 0.0  ;;  %v649_v8 = vrot.slane %v645_v4, 7  ;;  %s2477_s23 = smov 127  }
 0x122   : > { %v660_v10 = vsel %vm658_vm14, %v2783_v17, %v2785_v18  ;;  %v674_v22 = vadd.f32 %v672_v14, %v669_v61  ;;  %v595_v36 = vadd.f32 %v594_v24, %v566_v59  ;;  %v688_v43 = vsel %vm687_vm7, %v2803_v21, %v2769_v13 }
 0x123   : > { %v671_v55 = vmul.f32 %v670_v37, %v666_v1  ;;  %v3191_v17 = vadd.s32 4294967294, %v2816_v0  ;;  %v644_v18 = vadd.f32 %v642_v12, %v639_v25  ;;  %vm368_vm14 = vcmp.lt.s32.totalorder %v3147_v11, 16 }
 0x124   : > { %1040 = vrot.lane.b32.xlu1 %v2667_v51, %s2472_s26  ;;  %1038 = vrot.lane.b32.xlu0 %v2662_v50, %s2472_s26  ;;  %v701_v42 = vmul.f32 %v699_v40, %v694_v28  ;;  %v3205_v3 = vadd.f32 %v623_v49, %v595_v36  ;;  %v668_v37 = vmul.f32 %v667_v54, %v660_v10  ;;  %s3216_s26 = sld [smem:[#allocation4 + $0xb]]  ;;  %v678_v63 = vrot.slane %v674_v22, 7 }
 0x125   : > { %1060 = vrot.lane.b32.xlu2 %v2654_v48, %s2473_s11  ;;  %v695_v44 = vsel %vm687_vm7, %v2850_v32, %v2852_v33  ;;  %v650_v34 = vsel %vm4396_vm2, %v644_v18, %v649_v8  ;;  %v698_v54 = vmul.f32 %v696_v26, %v688_v43  ;;  %v728_v32 = vstv %s3136_s18  ;;  %s3434_s18 = sld [smem:[#allocation4 + $0x3f]] }
 0x126   : > { %v3019_v52 = vpop.permute.xlu1 %743  ;;  %v3021_v6 = vpop.permute.xlu0 %741  ;;  %v689_v9 = vsel %vm687_vm7, %v2769_v13, %v2803_v21  ;;  %v673_v62 = vadd.f32 %v671_v55, %v668_v37  ;;  %vm327_vm9 = vcmp.lt.s32.totalorder %v3191_v17, 16  ;;  %v725_v57 = vstv %s3149_s25  ;;  %s3438_s25 = sld [smem:[#allocation4 + $0xe]] }
 0x127   : > { %v3036_v35 = vpop.permute.xlu2 %808  ;;  %vm745_vm13 = vcmp.lt.s32.totalorder %v2796_v20, 33  ;;  %v700_v7 = vmul.f32 %v699_v40, %v695_v44  ;;  %v703_v4 = vadd.f32 %v701_v42, %v698_v54  ;;  %v723_v14 = vsel %vm716_vm15, %v2927_v30, %v2787_v19 }
 0x128   : > { %v717_v13 = vsel %vm716_vm15, %v2778_v16, %v2929_v45  ;;  %v3247_v21 = vsel %vm646_vm1, %v650_v34, 0.0  ;;  %v754_v59 = vstv %s3157_s27  ;;  %vm774_vm7 = vcmp.lt.s32.totalorder %v2796_v20, 32  ;;  %s2478_s27 = smov 126  }
 0x129   : > { %v783_v27 = vstv %s3170_s28  ;;  %v697_v12 = vmul.f32 %v696_v26, %v689_v9  ;;  %v679_v25 = vsel %vm4396_vm2, %v673_v62, %v678_v63  ;;  %v757_v61 = vstv %s3176_s29  ;;  %v4429_v9 = vld [vmem:[#allocation18_spill] sm:$0xff]  ;;  %s3479_s28 = sld [smem:[#allocation4 + $0xf]] }
 0x12a   : > { %v730_v24 = vmul.f32 %v728_v32, %v723_v14  ;;  %v727_v40 = vmul.f32 %v725_v57, %v717_v13  ;;  %v786_v28 = vstv %s3197_s4  ;;  %vm803_vm1 = vcmp.lt.s32.totalorder %v2796_v20, 31  ;;  %s2099_s29 = sld [smem:[#allocation4 + $0x40]] }
 0x12b   : > { %v702_v26 = vadd.f32 %v700_v7, %v697_v12  ;;  %v707_v49 = vrot.slane %v703_v4, 7  ;;  %v724_v8 = vsel %vm716_vm15, %v2787_v19, %v2927_v30  ;;  %v815_v10 = vstv %s3201_s5  ;;  %s3496_s4 = sld [smem:[#allocation4 + $0x10]] }
 0x12c   : > { %1067 = vrot.lane.b32.xlu1 %v2662_v50, %s2473_s11  ;;  %1062 = vrot.lane.b32.xlu0 %v2651_v47, %s2473_s11  ;;  %vm4426_vm2 = vcmp.ge.s32.totalorder %v3147_v11, 0  ;;  %v718_v36 = vsel %vm716_vm15, %v2929_v45, %v2778_v16  ;;  %v746_v19 = vsel %vm745_vm13, %v3021_v6, %v3019_v52  ;;  %v812_v55 = vstv %s3216_s26  ;;  %s3500_s5 = sld [smem:[#allocation4 + $0x41]]  ;;  %s2480_s26 = smov 115  }
 0x12d   : > { %1069 = vrot.lane.b32.xlu2 %v2667_v51, %s2473_s11  ;;  %vm3275_vm4 = vmand %vm4426_vm2, %vm368_vm14  ;;  %v732_v44 = vadd.f32 %v730_v24, %v727_v40  ;;  %v729_v14 = vmul.f32 %v728_v32, %v724_v8  ;;  %v726_v13 = vmul.f32 %v725_v57, %v718_v36  ;;  %v747_v32 = vsel %vm745_vm13, %v3019_v52, %v3021_v6  ;;  %s3394_s11 = sld [smem:[#allocation4 + $0xd]] }
 0x12e   : > { %v3126_v38 = vpop.permute.xlu1 %770  ;;  %v3128_v53 = vpop.permute.xlu0 %750  ;;  %vm675_vm2 = vmand %vm2979_vm6, %vm3275_vm4  ;;  %vm4430_vm6 = vcmp.ge.s32.totalorder %v3191_v17, 0  ;;  %vm832_vm15 = vcmp.lt.s32.totalorder %v2796_v20, 30 }
 0x12f   : > { %v3138_v15 = vpop.permute.xlu2 %835  ;;  %v752_v1 = vsel %vm745_vm13, %v2809_v23, %v3128_v53  ;;  %v775_v62 = vsel %vm774_vm7, %v3126_v38, %v4429_v9  ;;  %vm3326_vm14 = vmand %vm4430_vm6, %vm327_vm9  ;;  %v681_v40 = vsel %vm675_vm2, %v679_v25, 0.0  ;;  %vm4433_vm9 = vcmask 1040384  }
 0x130   : > { %v759_v30 = vmul.f32 %v757_v61, %v752_v1  ;;  %v708_v52 = vsel %vm4433_vm9, %v702_v26, %v707_v49  ;;  %v731_v26 = vadd.f32 %v729_v14, %v726_v13  ;;  %vm762_vm6 = vmand %vm3326_vm14, %vm3028_vm11 }
 0x134   : > { %1091 = vrot.lane.b32.xlu1 %v2651_v47, %s2474_s30  ;;  %1089 = vrot.lane.b32.xlu0 %v2654_v48, %s2474_s30 }
 0x135   : > { %1096 = vrot.lane.b32.xlu2 %v2662_v50, %s2474_s30 }
 0x136   : > { %v3212_v58 = vpop.permute.xlu1 %779  ;;  %v3214_v31 = vpop.permute.xlu0 %777 }
 0x137   : > { %v3224_v33 = vpop.permute.xlu2 %859  ;;  %v781_v11 = vsel %vm774_vm7, %v3214_v31, %v3212_v58  ;;  %v782_v17 = vsel %vm774_vm7, %v3212_v58, %v3214_v31  ;;  %v776_v58 = vsel %vm774_vm7, %v4429_v9, %v3126_v38  ;;  %vm733_vm7 = vmand %vm3326_vm14, %vm2969_vm5 }
 0x138   : > { %v788_v39 = vmul.f32 %v786_v28, %v781_v11 }
 0x13c   : > { %1118 = vrot.lane.b32.xlu1 %v2654_v48, %s2475_s7  ;;  %1098 = vrot.lane.b32.xlu0 %v2667_v51, %s2474_s30  ;;  %s2479_s30 = smov 125  }
 0x13d   : > { %1120 = vrot.lane.b32.xlu2 %v2651_v47, %s2475_s7 }
 0x13e   : > { %v807_v43 = vpop.permute.xlu1 %806  ;;  %v802_v18 = vpop.permute.xlu0 %801 }
 0x13f   : > { %v810_v42 = vsel %vm803_vm1, %v807_v43, %v3036_v35  ;;  %v811_v16 = vsel %vm803_vm1, %v3036_v35, %v807_v43  ;;  %v804_v45 = vsel %vm803_vm1, %v2936_v5, %v802_v18  ;;  %v3301_v37 = vpop.permute.xlu2 %886  ;;  %v805_v63 = vsel %vm803_vm1, %v802_v18, %v2936_v5  ;;  %vm4434_vm1 = vmmov %vm4433_vm9 }
 0x140   : > { %v816_v34 = vmul.f32 %v815_v10, %v811_v16  ;;  %v817_v54 = vmul.f32 %v815_v10, %v810_v42  ;;  %v756_v35 = vmul.f32 %v754_v59, %v746_v19  ;;  %v813_v7 = vmul.f32 %v812_v55, %v805_v63  ;;  %vm4435_vm2 = vmmov %vm4434_vm1 }
 0x141   : > { %v814_v4 = vmul.f32 %v812_v55, %v804_v45  ;;  %v753_v5 = vsel %vm745_vm13, %v3128_v53, %v2809_v23  ;;  %v736_v23 = vrot.slane %v732_v44, 7  ;;  %v785_v53 = vmul.f32 %v783_v27, %v775_v62  ;;  %vm704_vm13 = vmand %vm3326_vm14, %vm2996_vm8 }
 0x142   : > { %v761_v57 = vadd.f32 %v759_v30, %v756_v35  ;;  %v818_v1 = vadd.f32 %v816_v34, %v813_v7  ;;  %v758_v6 = vmul.f32 %v757_v61, %v753_v5  ;;  %v755_v61 = vmul.f32 %v754_v59, %v747_v32  ;;  %vm4436_vm9 = vmmov %vm4434_vm1 }
 0x143   : > { %v819_v24 = vadd.f32 %v817_v54, %v814_v4  ;;  %v790_v31 = vadd.f32 %v788_v39, %v785_v53  ;;  %v653_v59 = vadd.f32 %v3247_v21, %v3205_v3  ;;  %v737_v38 = vsel %vm4435_vm2, %v731_v26, %v736_v23 }
 0x144   : > { %1127 = vrot.lane.b32.xlu1 %v2667_v51, %s2475_s7  ;;  %1125 = vrot.lane.b32.xlu0 %v2662_v50, %s2475_s7  ;;  %v765_v10 = vrot.slane %v761_v57, 7  ;;  %v787_v55 = vmul.f32 %v786_v28, %v782_v17  ;;  %v710_v18 = vsel %vm704_vm13, %v708_v52, 0.0  ;;  %v760_v11 = vadd.f32 %v758_v6, %v755_v61  ;;  %s3525_s7 = sld [smem:[#allocation4 + $0x42]] }
 0x145   : > { %v823_v25 = vrot.slane %v819_v24, 7  ;;  %1147 = vrot.lane.b32.xlu2 %v2654_v48, %s2476_s21  ;;  %v682_v42 = vadd.f32 %v681_v40, %v653_v59  ;;  %v784_v3 = vmul.f32 %v783_v27, %v776_v58  ;;  %v794_v21 = vrot.slane %v790_v31, 7 }
 0x146   : > { %v831_v49 = vpop.permute.xlu1 %830  ;;  %v829_v8 = vpop.permute.xlu0 %828  ;;  %v739_v16 = vsel %vm733_vm7, %v737_v38, 0.0  ;;  %v766_v28 = vsel %vm4436_vm9, %v760_v11, %v765_v10  ;;  %vm861_vm13 = vcmp.lt.s32.totalorder %v2796_v20, 29  ;;  %v841_v27 = vstv %s3340_s9  ;;  %vm4437_vm7 = vmmov %vm4435_vm2  ;;  %s3529_s9 = sld [smem:[#allocation4 + $0x11]] }
 0x147   : > { %v824_v36 = vsel %vm4434_vm1, %v818_v1, %v823_v25  ;;  %v833_v19 = vsel %vm832_vm15, %v829_v8, %v831_v49  ;;  %v834_v30 = vsel %vm832_vm15, %v831_v49, %v829_v8  ;;  %v3367_v43 = vpop.permute.xlu2 %895  ;;  %v711_v45 = vadd.f32 %v710_v18, %v682_v42  ;;  %vm791_vm1 = vmand %vm3326_vm14, %vm3084_vm10 }
 0x148   : > { %v789_v44 = vadd.f32 %v787_v55, %v784_v3  ;;  %v844_v34 = vstv %s3348_s20  ;;  %v768_v63 = vsel %vm762_vm6, %v766_v28, 0.0  ;;  %vm820_vm2 = vmand %vm3326_vm14, %vm3106_vm3  ;;  %v842_v39 = vmul.f32 %v841_v27, %v834_v30  ;;  %s2481_s20 = smov 114  }
 0x149   : > { %v740_v54 = vadd.f32 %v739_v16, %v711_v45  ;;  %v843_v32 = vmul.f32 %v841_v27, %v833_v19  ;;  %v826_v53 = vsel %vm820_vm2, %v824_v36, 0.0  ;;  %v870_v6 = vstv %s3394_s11  ;;  %vm4438_vm6 = vmmov %vm4437_vm7  ;;  %s2102_s11 = sld [smem:[#allocation4 + $0x43]] }
 0x14a   : > { %v795_v35 = vsel %vm4437_vm7, %v789_v44, %v794_v21  ;;  %v873_v17 = vstv %s3399_s19  ;;  %v332_v11 = vadd.s32 4294967295, %v2816_v0  ;;  %vm878_vm9 = vmand %vm3326_vm14, %vm3275_vm4  ;;  %v902_v3 = vstv %s3434_s18  ;;  %s2482_s19 = smov 113   ;;  %s3575_s18 = sld [smem:[#allocation4 + $0x44]] }
 0x14b   : > { %v797_v1 = vsel %vm791_vm1, %v795_v35, 0.0  ;;  %v769_v24 = vadd.f32 %v768_v63, %v740_v54  ;;  %vm4439_vm1 = vmmov %vm4438_vm6  ;;  %v899_v0 = vstv %s3438_s25  ;;  %s2483_s25 = smov 112  }
 0x14c   : > { %1154 = vrot.lane.b32.xlu1 %v2662_v50, %s2476_s21  ;;  %1149 = vrot.lane.b32.xlu0 %v2651_v47, %s2476_s21  ;;  %vm334_vm7 = vcmp.ge.s32.totalorder %v332_v11, 0  ;;  %vm335_vm2 = vcmp.lt.s32.totalorder %v332_v11, 16 }
 0x14d   : > { %1156 = vrot.lane.b32.xlu2 %v2667_v51, %s2476_s21  ;;  %v798_v52 = vadd.f32 %v797_v1, %v769_v24  ;;  %s3554_s21 = sld [smem:[#allocation4 + $0x12]] }
 0x14e   : > { %v858_v9 = vpop.permute.xlu1 %857  ;;  %v838_v62 = vpop.permute.xlu0 %837 }
 0x14f   : > { %v862_v7 = vsel %vm861_vm13, %v858_v9, %v3224_v33  ;;  %v863_v4 = vsel %vm861_vm13, %v3224_v33, %v858_v9  ;;  %v839_v14 = vsel %vm832_vm15, %v3138_v15, %v838_v62  ;;  %v840_v13 = vsel %vm832_vm15, %v838_v62, %v3138_v15  ;;  %v3420_v5 = vpop.permute.xlu2 %922  ;;  %vm849_vm15 = vmand %vm3326_vm14, %vm3182_vm12 }
 0x150   : > { %v845_v57 = vmul.f32 %v844_v34, %v840_v13  ;;  %v846_v33 = vmul.f32 %v844_v34, %v839_v14  ;;  %v827_v25 = vadd.f32 %v826_v53, %v798_v52  ;;  %v871_v31 = vmul.f32 %v870_v6, %v863_v4  ;;  %vm3473_vm14 = vmand %vm334_vm7, %vm335_vm2 }
 0x151   : > { %v872_v19 = vmul.f32 %v870_v6, %v862_v7  ;;  %v931_v53 = vstv %s2099_s29  ;;  %vm965_vm2 = vmand %vm3473_vm14, %vm3028_vm11  ;;  %s2484_s29 = smov 111  }
 0x152   : > { %v847_v40 = vadd.f32 %v845_v57, %v842_v39  ;;  %v848_v23 = vadd.f32 %v846_v33, %v843_v32 }
 0x154   : > { %v852_v15 = vrot.slane %v848_v23, 7  ;;  %1184 = vrot.lane.b32.xlu1 %v2651_v47, %s2477_s23  ;;  %1182 = vrot.lane.b32.xlu0 %v2654_v48, %s2477_s23  ;;  %v928_v23 = vstv %s3479_s28  ;;  %s3602_s28 = sld [smem:[#allocation4 + $0x14]] }
 0x155   : > { %1189 = vrot.lane.b32.xlu2 %v2662_v50, %s2477_s23 }
 0x156   : > { %v853_v26 = vsel %vm4438_vm6, %v847_v40, %v852_v15  ;;  %v867_v61 = vpop.permute.xlu1 %866  ;;  %v865_v58 = vpop.permute.xlu0 %864  ;;  %vm907_vm6 = vmand %vm3473_vm14, %vm2996_vm8 }
 0x157   : > { %v855_v49 = vsel %vm849_vm15, %v853_v26, 0.0  ;;  %v868_v8 = vsel %vm861_vm13, %v865_v58, %v867_v61  ;;  %v869_v10 = vsel %vm861_vm13, %v867_v61, %v865_v58  ;;  %v3444_v36 = vpop.permute.xlu2 %946  ;;  %vm890_vm13 = vcmp.lt.s32.totalorder %v2796_v20, 19 }
 0x158   : > { %v856_v30 = vadd.f32 %v855_v49, %v827_v25  ;;  %v874_v59 = vmul.f32 %v873_v17, %v869_v10  ;;  %v875_v38 = vmul.f32 %v873_v17, %v868_v8  ;;  %vm919_vm15 = vcmp.lt.s32.totalorder %v2796_v20, 18 }
 0x15a   : > { %v876_v55 = vadd.f32 %v874_v59, %v871_v31  ;;  %v877_v18 = vadd.f32 %v875_v38, %v872_v19 }
 0x15c   : > { %v881_v42 = vrot.slane %v877_v18, 7  ;;  %1211 = vrot.lane.b32.xlu1 %v2654_v48, %s2478_s27  ;;  %1191 = vrot.lane.b32.xlu0 %v2667_v51, %s2477_s23  ;;  %s3571_s23 = sld [smem:[#allocation4 + $0x13]] }
 0x15d   : > { %1213 = vrot.lane.b32.xlu2 %v2651_v47, %s2478_s27 }
 0x15e   : > { %v882_v21 = vsel %vm4439_vm1, %v876_v55, %v881_v42  ;;  %v894_v16 = vpop.permute.xlu1 %893  ;;  %v889_v28 = vpop.permute.xlu0 %888 }
 0x15f   : > { %v884_v12 = vsel %vm878_vm9, %v882_v21, 0.0  ;;  %v897_v45 = vsel %vm890_vm13, %v894_v16, %v3367_v43  ;;  %v898_v44 = vsel %vm890_vm13, %v3367_v43, %v894_v16  ;;  %v891_v27 = vsel %vm890_vm13, %v3301_v37, %v889_v28  ;;  %v3467_v34 = vpop.permute.xlu2 %973  ;;  %vm4442_vm9 = vmmov %vm4439_vm1 }
 0x160   : > { %v885_v54 = vadd.f32 %v884_v12, %v856_v30  ;;  %v903_v63 = vmul.f32 %v902_v3, %v898_v44  ;;  %v904_v35 = vmul.f32 %v902_v3, %v897_v45  ;;  %v892_v9 = vsel %vm890_vm13, %v889_v28, %v3301_v37  ;;  %vm936_vm1 = vmand %vm3473_vm14, %vm2969_vm5 }
 0x161   : > { %v900_v62 = vmul.f32 %v899_v0, %v892_v9  ;;  %v901_v7 = vmul.f32 %v899_v0, %v891_v27  ;;  %vm948_vm13 = vcmp.lt.s32.totalorder %v2796_v20, 17  ;;  %v957_v30 = vstv %s3496_s4  ;;  %vm4443_vm7 = vmmov %vm4442_vm9  ;;  %s3636_s4 = sld [smem:[#allocation4 + $0x46]] }
 0x162   : > { %v986_v9 = vstv %s3529_s9  ;;  %s2486_s9 = smov 109  }
 0x163   : > { %v905_v43 = vadd.f32 %v903_v63, %v900_v62  ;;  %v906_v14 = vadd.f32 %v904_v35, %v901_v7 }
 0x164   : > { %1220 = vrot.lane.b32.xlu1 %v2667_v51, %s2478_s27  ;;  %1218 = vrot.lane.b32.xlu0 %v2662_v50, %s2478_s27  ;;  %s3598_s27 = sld [smem:[#allocation4 + $0x45]] }
 0x165   : > { %v910_v37 = vrot.slane %v906_v14, 7  ;;  %1240 = vrot.lane.b32.xlu2 %v2654_v48, %s2479_s30 }
 0x166   : > { %v918_v13 = vpop.permute.xlu1 %917  ;;  %v916_v39 = vpop.permute.xlu0 %915 }
 0x167   : > { %v911_v32 = vsel %vm4442_vm9, %v905_v43, %v910_v37  ;;  %v920_v57 = vsel %vm919_vm15, %v916_v39, %v918_v13  ;;  %v921_v33 = vsel %vm919_vm15, %v918_v13, %v916_v39  ;;  %v3492_v1 = vpop.permute.xlu2 %982  ;;  %vm1006_vm9 = vcmp.lt.s32.totalorder %v2796_v20, 15 }
 0x168   : > { %v913_v24 = vsel %vm907_vm6, %v911_v32, 0.0  ;;  %v929_v58 = vmul.f32 %v928_v23, %v921_v33  ;;  %v930_v31 = vmul.f32 %v928_v23, %v920_v57  ;;  %vm4444_vm6 = vmmov %vm4443_vm7 }
 0x169   : > { %v914_v40 = vadd.f32 %v913_v24, %v885_v54  ;;  %v989_v54 = vstv %s3525_s7  ;;  %s3653_s7 = sld [smem:[#allocation4 + $0x47]] }
 0x16c   : > { %1247 = vrot.lane.b32.xlu1 %v2662_v50, %s2479_s30  ;;  %1242 = vrot.lane.b32.xlu0 %v2651_v47, %s2479_s30 }
 0x16d   : > { %1249 = vrot.lane.b32.xlu2 %v2667_v51, %s2479_s30  ;;  %s3629_s30 = sld [smem:[#allocation4 + $0x15]] }
 0x16e   : > { %v945_v52 = vpop.permute.xlu1 %944  ;;  %v925_v6 = vpop.permute.xlu0 %924 }
 0x16f   : > { %v949_v15 = vsel %vm948_vm13, %v945_v52, %v3444_v36  ;;  %v950_v17 = vsel %vm948_vm13, %v3444_v36, %v945_v52  ;;  %v926_v25 = vsel %vm919_vm15, %v3420_v5, %v925_v6  ;;  %v927_v26 = vsel %vm919_vm15, %v925_v6, %v3420_v5  ;;  %v3515_v61 = vpop.permute.xlu2 %1009 }
 0x170   : > { %v932_v49 = vmul.f32 %v931_v53, %v927_v26  ;;  %v933_v8 = vmul.f32 %v931_v53, %v926_v25  ;;  %v960_v5 = vstv %s3500_s5  ;;  %v958_v18 = vmul.f32 %v957_v30, %v950_v17  ;;  %s2485_s5 = smov 110  }
 0x171   : > { %v959_v16 = vmul.f32 %v957_v30, %v949_v15  ;;  %vm977_vm15 = vcmp.lt.s32.totalorder %v2796_v20, 16 }
 0x172   : > { %v934_v10 = vadd.f32 %v932_v49, %v929_v58  ;;  %v935_v19 = vadd.f32 %v933_v8, %v930_v31  ;;  %v1015_v31 = vstv %s3554_s21  ;;  %v1018_v49 = vstv %s2102_s11  ;;  %s3690_s21 = sld [smem:[#allocation4 + $0x17]]  ;;  %s2487_s11 = smov 99  }
 0x174   : > { %v939_v36 = vrot.slane %v935_v19, 7  ;;  %1271 = vrot.lane.b32.xlu1 %v2651_v47, %s2480_s26  ;;  %1269 = vrot.lane.b32.xlu0 %v2654_v48, %s2480_s26 }
 0x175   : > { %1276 = vrot.lane.b32.xlu2 %v2662_v50, %s2480_s26 }
 0x176   : > { %v940_v59 = vsel %vm4443_vm7, %v934_v10, %v939_v36  ;;  %v954_v38 = vpop.permute.xlu1 %953  ;;  %v952_v55 = vpop.permute.xlu0 %951  ;;  %vm1035_vm7 = vcmp.lt.s32.totalorder %v2796_v20, 14 }
 0x177   : > { %v942_v11 = vsel %vm936_vm1, %v940_v59, 0.0  ;;  %v955_v42 = vsel %vm948_vm13, %v952_v55, %v954_v38  ;;  %v956_v3 = vsel %vm948_vm13, %v954_v38, %v952_v55  ;;  %v1034_v21 = vpop.permute.xlu2 %1033  ;;  %vm994_vm13 = vmand %vm3473_vm14, %vm3084_vm10 }
 0x178   : > { %v943_v0 = vadd.f32 %v942_v11, %v914_v40  ;;  %v961_v28 = vmul.f32 %v960_v5, %v956_v3  ;;  %v962_v12 = vmul.f32 %v960_v5, %v955_v42  ;;  %vm4445_vm1 = vmmov %vm4444_vm6 }
 0x17a   : > { %v963_v45 = vadd.f32 %v961_v28, %v958_v18  ;;  %v964_v44 = vadd.f32 %v962_v12, %v959_v16  ;;  %v1044_v16 = vstv %s3571_s23  ;;  %s3717_s23 = sld [smem:[#allocation4 + $0x49]] }
 0x17c   : > { %v968_v27 = vrot.slane %v964_v44, 7  ;;  %1298 = vrot.lane.b32.xlu1 %v2654_v48, %s2481_s20  ;;  %1278 = vrot.lane.b32.xlu0 %v2667_v51, %s2480_s26  ;;  %s3648_s26 = sld [smem:[#allocation4 + $0x16]] }
 0x17d   : > { %1300 = vrot.lane.b32.xlu2 %v2651_v47, %s2481_s20 }
 0x17e   : > { %v969_v63 = vsel %vm4444_vm6, %v963_v45, %v968_v27  ;;  %v981_v35 = vpop.permute.xlu1 %980  ;;  %v976_v62 = vpop.permute.xlu0 %975  ;;  %vm1052_vm6 = vmand %vm3473_vm14, %vm3182_vm12 }
 0x17f   : > { %v971_v7 = vsel %vm965_vm2, %v969_v63, 0.0  ;;  %v984_v43 = vsel %vm977_vm15, %v981_v35, %v3492_v1  ;;  %v985_v14 = vsel %vm977_vm15, %v3492_v1, %v981_v35  ;;  %v978_v37 = vsel %vm977_vm15, %v3467_v34, %v976_v62  ;;  %v3549_v13 = vpop.permute.xlu2 %1060  ;;  %vm1023_vm2 = vmand %vm3473_vm14, %vm3106_vm3 }
 0x180   : > { %v972_v39 = vadd.f32 %v971_v7, %v943_v0  ;;  %v990_v32 = vmul.f32 %v989_v54, %v985_v14  ;;  %v991_v57 = vmul.f32 %v989_v54, %v984_v43  ;;  %v979_v33 = vsel %vm977_vm15, %v976_v62, %v3467_v34  ;;  %vm4446_vm15 = vmmov %vm4445_vm1 }
 0x181   : > { %v987_v24 = vmul.f32 %v986_v9, %v979_v33  ;;  %v988_v40 = vmul.f32 %v986_v9, %v978_v37  ;;  %v1073_v33 = vstv %s3602_s28  ;;  %s3742_s28 = sld [smem:[#allocation4 + $0x1a]] }
 0x183   : > { %v992_v23 = vadd.f32 %v990_v32, %v987_v24  ;;  %v993_v53 = vadd.f32 %v991_v57, %v988_v40 }
 0x184   : > { %1307 = vrot.lane.b32.xlu1 %v2667_v51, %s2481_s20  ;;  %1305 = vrot.lane.b32.xlu0 %v2662_v50, %s2481_s20  ;;  %s3686_s20 = sld [smem:[#allocation4 + $0x48]] }
 0x185   : > { %v997_v1 = vrot.slane %v993_v53, 7  ;;  %1327 = vrot.lane.b32.xlu2 %v2654_v48, %s2482_s19 }
 0x186   : > { %v1005_v34 = vpop.permute.xlu1 %1004  ;;  %v1003_v52 = vpop.permute.xlu0 %1002 }
 0x187   : > { %v998_v6 = vsel %vm4445_vm1, %v992_v23, %v997_v1  ;;  %v1007_v15 = vsel %vm1006_vm9, %v1003_v52, %v1005_v34  ;;  %v1008_v17 = vsel %vm1006_vm9, %v1005_v34, %v1003_v52  ;;  %v3567_v25 = vpop.permute.xlu2 %1069 }
 0x188   : > { %v1000_v26 = vsel %vm994_vm13, %v998_v6, 0.0  ;;  %v1016_v38 = vmul.f32 %v1015_v31, %v1008_v17  ;;  %v1017_v55 = vmul.f32 %v1015_v31, %v1007_v15  ;;  %vm4447_vm13 = vmmov %vm4445_vm1  ;;  %vm1093_vm1 = vcmp.lt.s32.totalorder %v2796_v20, 3 }
 0x189   : > { %v1001_v58 = vadd.f32 %v1000_v26, %v972_v39  ;;  %v1076_v39 = vstv %s3598_s27  ;;  %s2488_s27 = smov 98  }
 0x18c   : > { %1334 = vrot.lane.b32.xlu1 %v2662_v50, %s2482_s19  ;;  %1329 = vrot.lane.b32.xlu0 %v2651_v47, %s2482_s19 }
 0x18d   : > { %1336 = vrot.lane.b32.xlu2 %v2667_v51, %s2482_s19  ;;  %s3715_s19 = sld [smem:[#allocation4 + $0x18]] }
 0x18e   : > { %v1032_v8 = vpop.permute.xlu1 %1031  ;;  %v1012_v10 = vpop.permute.xlu0 %1011 }
 0x18f   : > { %v1036_v19 = vsel %vm1035_vm7, %v1032_v8, %v1034_v21  ;;  %v1037_v30 = vsel %vm1035_vm7, %v1034_v21, %v1032_v8  ;;  %v1013_v36 = vsel %vm1006_vm9, %v3515_v61, %v1012_v10  ;;  %v1014_v5 = vsel %vm1006_vm9, %v1012_v10, %v3515_v61  ;;  %v3588_v59 = vpop.permute.xlu2 %1096 }
 0x190   : > { %v1019_v18 = vmul.f32 %v1018_v49, %v1014_v5  ;;  %v1020_v11 = vmul.f32 %v1018_v49, %v1013_v36  ;;  %v1047_v61 = vstv %s3575_s18  ;;  %v1045_v45 = vmul.f32 %v1044_v16, %v1037_v30  ;;  %s3721_s18 = sld [smem:[#allocation4 + $0x19]] }
 0x191   : > { %v1046_v35 = vmul.f32 %v1044_v16, %v1036_v19  ;;  %vm1064_vm9 = vcmp.lt.s32.totalorder %v2796_v20, 13 }
 0x192   : > { %v1021_v42 = vadd.f32 %v1019_v18, %v1016_v38  ;;  %v1022_v3 = vadd.f32 %v1020_v11, %v1017_v55  ;;  %v1102_v38 = vstv %s3629_s30  ;;  %v1105_v55 = vstv %s3636_s4  ;;  %v3656_v11 = vld [vmem:[#allocation8] sm:$0x3]  ;;  %s2489_s30 = smov 97   ;;  %s3773_s4 = sld [smem:[#allocation4 + $0x4c]] }
 0x194   : > { %v1026_v21 = vrot.slane %v1022_v3, 7  ;;  %1358 = vrot.lane.b32.xlu1 %v2651_v47, %s2483_s25  ;;  %1356 = vrot.lane.b32.xlu0 %v2654_v48, %s2483_s25 }
 0x195   : > { %1363 = vrot.lane.b32.xlu2 %v2662_v50, %s2483_s25 }
 0x196   : > { %v1027_v0 = vsel %vm4446_vm15, %v1021_v42, %v1026_v21  ;;  %v1041_v28 = vpop.permute.xlu1 %1040  ;;  %v1039_v12 = vpop.permute.xlu0 %1038  ;;  %vm340_vm15 = vcmp.ge.s32.totalorder %v3656_v11, 0 }
 0x197   : > { %v1029_v44 = vsel %vm1023_vm2, %v1027_v0, 0.0  ;;  %v1042_v27 = vsel %vm1035_vm7, %v1039_v12, %v1041_v28  ;;  %v1043_v54 = vsel %vm1035_vm7, %v1041_v28, %v1039_v12  ;;  %v3608_v63 = vpop.permute.xlu2 %1120  ;;  %vm1081_vm7 = vmand %vm3473_vm14, %vm3275_vm4  ;;  %vm1122_vm14 = vcmp.lt.s32.totalorder %v2796_v20, 2 }
 0x198   : > { %v1030_v9 = vadd.f32 %v1029_v44, %v1001_v58  ;;  %v1048_v62 = vmul.f32 %v1047_v61, %v1043_v54  ;;  %v1049_v7 = vmul.f32 %v1047_v61, %v1042_v27  ;;  %vm4448_vm2 = vmmov %vm4447_vm13 }
 0x19a   : > { %v1050_v43 = vadd.f32 %v1048_v62, %v1045_v45  ;;  %v1051_v14 = vadd.f32 %v1049_v7, %v1046_v35  ;;  %v1131_v35 = vstv %s3648_s26  ;;  %s2490_s26 = smov 96  }
 0x19c   : > { %v1055_v37 = vrot.slane %v1051_v14, 7  ;;  %1385 = vrot.lane.b32.xlu1 %v2654_v48, %s2484_s29  ;;  %1365 = vrot.lane.b32.xlu0 %v2667_v51, %s2483_s25  ;;  %s3728_s25 = sld [smem:[#allocation4 + $0x4a]] }
 0x19d   : > { %1387 = vrot.lane.b32.xlu2 %v2651_v47, %s2484_s29 }
 0x19e   : > { %v1056_v32 = vsel %vm4447_vm13, %v1050_v43, %v1055_v37  ;;  %v1068_v57 = vpop.permute.xlu1 %1067  ;;  %v1063_v24 = vpop.permute.xlu0 %1062 }
 0x19f   : > { %v1058_v40 = vsel %vm1052_vm6, %v1056_v32, 0.0  ;;  %v1071_v23 = vsel %vm1064_vm9, %v1068_v57, %v3567_v25  ;;  %v1072_v53 = vsel %vm1064_vm9, %v3567_v25, %v1068_v57  ;;  %v1065_v1 = vsel %vm1064_vm9, %v3549_v13, %v1063_v24  ;;  %v3624_v34 = vpop.permute.xlu2 %1147 }
 0x1a0   : > { %v1059_v52 = vadd.f32 %v1058_v40, %v1030_v9  ;;  %v1077_v6 = vmul.f32 %v1076_v39, %v1072_v53  ;;  %v1078_v15 = vmul.f32 %v1076_v39, %v1071_v23  ;;  %v1066_v17 = vsel %vm1064_vm9, %v1063_v24, %v3549_v13 }
 0x1a1   : > { %v1074_v26 = vmul.f32 %v1073_v33, %v1066_v17  ;;  %v1075_v58 = vmul.f32 %v1073_v33, %v1065_v1  ;;  %vm341_vm6 = vcmp.lt.s32.totalorder %v3656_v11, 16 }
 0x1a2   : > { %vm3674_vm9 = vmand %vm340_vm15, %vm341_vm6  ;;  %vm1186_vm15 = vcmp.lt.s32.totalorder %v2796_v20, 127 }
 0x1a3   : > { %v1079_v31 = vadd.f32 %v1077_v6, %v1074_v26  ;;  %v1080_v49 = vadd.f32 %v1078_v15, %v1075_v58  ;;  %vm1110_vm13 = vmand %vm3674_vm9, %vm2996_vm8  ;;  %v1163_v6 = vstv %s3686_s20  ;;  %v1160_v26 = vstv %s3690_s21  ;;  %s2491_s20 = smov 95   ;;  %s3824_s21 = sld [smem:[#allocation4 + $0x1d]] }
 0x1a4   : > { %1394 = vrot.lane.b32.xlu1 %v2667_v51, %s2484_s29  ;;  %1392 = vrot.lane.b32.xlu0 %v2662_v50, %s2484_s29  ;;  %vm1168_vm6 = vmand %vm3674_vm9, %vm3028_vm11  ;;  %s3747_s29 = sld [smem:[#allocation4 + $0x4b]] }
 0x1a5   : > { %v1084_v25 = vrot.slane %v1080_v49, 7  ;;  %1414 = vrot.lane.b32.xlu2 %v2654_v48, %s2485_s5 }
 0x1a6   : > { %v1092_v13 = vpop.permute.xlu1 %1091  ;;  %v1090_v8 = vpop.permute.xlu0 %1089 }
 0x1a7   : > { %v1085_v10 = vsel %vm4448_vm2, %v1079_v31, %v1084_v25  ;;  %v1094_v19 = vsel %vm1093_vm1, %v1090_v8, %v1092_v13  ;;  %v1095_v30 = vsel %vm1093_vm1, %v1092_v13, %v1090_v8  ;;  %v3644_v4 = vpop.permute.xlu2 %1156 }
 0x1a8   : > { %v1087_v36 = vsel %vm1081_vm7, %v1085_v10, 0.0  ;;  %v1103_v28 = vmul.f32 %v1102_v38, %v1095_v30  ;;  %v1104_v12 = vmul.f32 %v1102_v38, %v1094_v19  ;;  %vm1139_vm7 = vmand %vm3674_vm9, %vm2969_vm5 }
 0x1a9   : > { %v1088_v5 = vadd.f32 %v1087_v36, %v1059_v52 }
 0x1ac   : > { %1421 = vrot.lane.b32.xlu1 %v2662_v50, %s2485_s5  ;;  %1416 = vrot.lane.b32.xlu0 %v2651_v47, %s2485_s5 }
 0x1ad   : > { %1423 = vrot.lane.b32.xlu2 %v2667_v51, %s2485_s5  ;;  %s3777_s5 = sld [smem:[#allocation4 + $0x1b]] }
 0x1ae   : > { %v1119_v18 = vpop.permute.xlu1 %1118  ;;  %v1099_v42 = vpop.permute.xlu0 %1098 }
 0x1af   : > { %v1123_v3 = vsel %vm1122_vm14, %v1119_v18, %v3608_v63  ;;  %v1124_v16 = vsel %vm1122_vm14, %v3608_v63, %v1119_v18  ;;  %v1100_v21 = vsel %vm1093_vm1, %v3588_v59, %v1099_v42  ;;  %v1101_v61 = vsel %vm1093_vm1, %v1099_v42, %v3588_v59  ;;  %v3672_v0 = vpop.permute.xlu2 %1189  ;;  %vm4451_vm1 = vmmov %vm4448_vm2 }
 0x1b0   : > { %v1106_v45 = vmul.f32 %v1105_v55, %v1101_v61  ;;  %v1107_v44 = vmul.f32 %v1105_v55, %v1100_v21  ;;  %v1134_v59 = vstv %s3653_s7  ;;  %v1132_v14 = vmul.f32 %v1131_v35, %v1124_v16  ;;  %s3804_s7 = sld [smem:[#allocation4 + $0x1c]] }
 0x1b1   : > { %v1133_v33 = vmul.f32 %v1131_v35, %v1123_v3  ;;  %vm1151_vm2 = vcmp.lt.s32.totalorder %v2796_v20, 1 }
 0x1b2   : > { %v1108_v54 = vadd.f32 %v1106_v45, %v1103_v28  ;;  %v1109_v63 = vadd.f32 %v1107_v44, %v1104_v12  ;;  %v1176_v45 = vstv %s3715_s19  ;;  %v1178_v44 = vstv %s3717_s23  ;;  %s2492_s19 = smov 94   ;;  %s3858_s23 = sld [smem:[#allocation4 + $0x4f]] }
 0x1b4   : > { %v1113_v9 = vrot.slane %v1109_v63, 7  ;;  %1445 = vrot.lane.b32.xlu1 %v2651_v47, %s2486_s9  ;;  %1443 = vrot.lane.b32.xlu0 %v2654_v48, %s2486_s9  ;;  %v1198_v63 = vstv %s3728_s25  ;;  %s2493_s25 = smov 93  }
 0x1b5   : > { %1450 = vrot.lane.b32.xlu2 %v2662_v50, %s2486_s9 }
 0x1b6   : > { %v1114_v62 = vsel %vm4451_vm1, %v1108_v54, %v1113_v9  ;;  %v1128_v7 = vpop.permute.xlu1 %1127  ;;  %v1126_v43 = vpop.permute.xlu0 %1125  ;;  %v1195_v54 = vstv %s3721_s18  ;;  %v4454_v9 = vld [vmem:[#allocation17_spill] sm:$0xff]  ;;  %s3862_s18 = sld [smem:[#allocation4 + $0x1e]] }
 0x1b7   : > { %v1116_v37 = vsel %vm1110_vm13, %v1114_v62, 0.0  ;;  %v1129_v39 = vsel %vm1122_vm14, %v1126_v43, %v1128_v7  ;;  %v1130_v32 = vsel %vm1122_vm14, %v1128_v7, %v1126_v43  ;;  %v3696_v57 = vpop.permute.xlu2 %1213  ;;  %vm4452_vm14 = vmmov %vm4451_vm1  ;;  %v2278_v62 = vld [vmem:[#allocation3] sm:$0x3] }
 0x1b8   : > { %v1117_v24 = vadd.f32 %v1116_v37, %v1088_v5  ;;  %v1135_v40 = vmul.f32 %v1134_v59, %v1130_v32  ;;  %v1136_v23 = vmul.f32 %v1134_v59, %v1129_v39  ;;  %vm4453_vm13 = vmmov %vm4451_vm1  ;;  %vm1215_vm1 = vcmp.lt.s32.totalorder %v2796_v20, 126 }
 0x1b9   : > { %v1177_v59 = vmul.f32 %v1176_v45, %v4454_v9  ;;  %v1179_v7 = vmul.f32 %v2278_v62, %v1178_v44 }
 0x1ba   : > { %v1137_v53 = vadd.f32 %v1135_v40, %v1132_v14  ;;  %v1138_v1 = vadd.f32 %v1136_v23, %v1133_v33 }
 0x1bc   : > { %v1142_v52 = vrot.slane %v1138_v1, 7  ;;  %1472 = vrot.lane.b32.xlu1 %v2654_v48, %s2487_s11  ;;  %1452 = vrot.lane.b32.xlu0 %v2667_v51, %s2486_s9  ;;  %v1180_v1 = vadd.f32 %v1179_v7, %v1177_v59  ;;  %s3811_s9 = sld [smem:[#allocation4 + $0x4d]] }
 0x1bd   : > { %1474 = vrot.lane.b32.xlu2 %v2651_v47, %s2487_s11 }
 0x1be   : > { %v1143_v15 = vsel %vm4452_vm14, %v1137_v53, %v1142_v52  ;;  %v1155_v17 = vpop.permute.xlu1 %1154  ;;  %v1150_v58 = vpop.permute.xlu0 %1149  ;;  %vm1232_vm14 = vmand %vm3674_vm9, %vm3182_vm12 }
 0x1bf   : > { %v1145_v31 = vsel %vm1139_vm7, %v1143_v15, 0.0  ;;  %v1158_v49 = vsel %vm1151_vm2, %v1155_v17, %v3644_v4  ;;  %v1159_v25 = vsel %vm1151_vm2, %v3644_v4, %v1155_v17  ;;  %v1152_v13 = vsel %vm1151_vm2, %v3624_v34, %v1150_v58  ;;  %v3712_v8 = vpop.permute.xlu2 %1240  ;;  %vm1203_vm7 = vmand %vm3674_vm9, %vm3106_vm3 }
 0x1c0   : > { %v1146_v10 = vadd.f32 %v1145_v31, %v1117_v24  ;;  %v1164_v19 = vmul.f32 %v1163_v6, %v1159_v25  ;;  %v1165_v30 = vmul.f32 %v1163_v6, %v1158_v49  ;;  %v1153_v36 = vsel %vm1151_vm2, %v1150_v58, %v3624_v34  ;;  %vm4455_vm2 = vmmov %vm4453_vm13 }
 0x1c1   : > { %v1161_v5 = vmul.f32 %v1160_v26, %v1153_v36  ;;  %v1162_v38 = vmul.f32 %v1160_v26, %v1152_v13  ;;  %v1224_v15 = vstv %s3742_s28  ;;  %s2115_s28 = sld [smem:[#allocation4 + $0x50]] }
 0x1c3   : > { %v1166_v55 = vadd.f32 %v1164_v19, %v1161_v5  ;;  %v1167_v18 = vadd.f32 %v1165_v30, %v1162_v38 }
 0x1c4   : > { %1481 = vrot.lane.b32.xlu1 %v2667_v51, %s2487_s11  ;;  %1479 = vrot.lane.b32.xlu0 %v2662_v50, %s2487_s11  ;;  %s3829_s11 = sld [smem:[#allocation4 + $0x4e]] }
 0x1c5   : > { %v1171_v34 = vrot.slane %v1167_v18, 7  ;;  %1501 = vrot.lane.b32.xlu2 %v2654_v48, %s2488_s27 }
 0x1c6   : > { %v1185_v4 = vpop.permute.xlu1 %1184  ;;  %v1183_v42 = vpop.permute.xlu0 %1182 }
 0x1c7   : > { %v1172_v3 = vsel %vm4453_vm13, %v1166_v55, %v1171_v34  ;;  %v1187_v16 = vsel %vm1186_vm15, %v1183_v42, %v1185_v4  ;;  %v1188_v21 = vsel %vm1186_vm15, %v1185_v4, %v1183_v42  ;;  %v3736_v61 = vpop.permute.xlu2 %1249  ;;  %v1256_v4 = vstv %s3773_s4  ;;  %s3908_s4 = sld [smem:[#allocation4 + $0x51]] }
 0x1c8   : > { %v1174_v28 = vsel %vm1168_vm6, %v1172_v3, 0.0  ;;  %v1196_v24 = vmul.f32 %v1195_v54, %v1187_v16  ;;  %v1197_v40 = vmul.f32 %v1195_v54, %v1188_v21  ;;  %vm4456_vm6 = vmmov %vm4455_vm2  ;;  %v1253_v16 = vstv %s3777_s5  ;;  %s2495_s5 = smov 82  }
 0x1c9   : > { %v1175_v12 = vadd.f32 %v1174_v28, %v1146_v10  ;;  %vm1273_vm13 = vcmp.lt.s32.totalorder %v2796_v20, 115 }
 0x1cb   : > { %v1181_v17 = vadd.f32 %v1180_v1, %v1175_v12  ;;  %v1282_v1 = vstv %s3804_s7  ;;  %s3935_s7 = sld [smem:[#allocation4 + $0x21]] }
 0x1cc   : > { %1508 = vrot.lane.b32.xlu1 %v2662_v50, %s2488_s27  ;;  %1503 = vrot.lane.b32.xlu0 %v2651_v47, %s2488_s27 }
 0x1cd   : > { %1510 = vrot.lane.b32.xlu2 %v2667_v51, %s2488_s27  ;;  %s3887_s27 = sld [smem:[#allocation4 + $0x1f]] }
 0x1ce   : > { %v1212_v35 = vpop.permute.xlu1 %1211  ;;  %v1192_v43 = vpop.permute.xlu0 %1191 }
 0x1cf   : > { %v1216_v14 = vsel %vm1215_vm1, %v1212_v35, %v3696_v57  ;;  %v1217_v37 = vsel %vm1215_vm1, %v3696_v57, %v1212_v35  ;;  %v1193_v39 = vsel %vm1186_vm15, %v3672_v0, %v1192_v43  ;;  %v1194_v32 = vsel %vm1186_vm15, %v1192_v43, %v3672_v0  ;;  %v3763_v33 = vpop.permute.xlu2 %1276 }
 0x1d0   : > { %v1199_v23 = vmul.f32 %v1198_v63, %v1193_v39  ;;  %v1200_v53 = vmul.f32 %v1198_v63, %v1194_v32  ;;  %v1227_v0 = vstv %s3747_s29  ;;  %v1225_v49 = vmul.f32 %v1224_v15, %v1216_v14  ;;  %s2494_s29 = smov 83  }
 0x1d1   : > { %v1226_v30 = vmul.f32 %v1224_v15, %v1217_v37  ;;  %vm1244_vm15 = vcmp.lt.s32.totalorder %v2796_v20, 125 }
 0x1d2   : > { %v1201_v52 = vadd.f32 %v1199_v23, %v1196_v24  ;;  %v1202_v6 = vadd.f32 %v1200_v53, %v1197_v40  ;;  %v346_v53 = vadd.s32 1, %v3656_v11 }
 0x1d4   : > { %v1206_v57 = vrot.slane %v1202_v6, 7  ;;  %1532 = vrot.lane.b32.xlu1 %v2651_v47, %s2489_s30  ;;  %1530 = vrot.lane.b32.xlu0 %v2654_v48, %s2489_s30 }
 0x1d5   : > { %1537 = vrot.lane.b32.xlu2 %v2662_v50, %s2489_s30 }
 0x1d6   : > { %v1207_v26 = vsel %vm4455_vm2, %v1201_v52, %v1206_v57  ;;  %v1221_v58 = vpop.permute.xlu1 %1220  ;;  %v1219_v31 = vpop.permute.xlu0 %1218  ;;  %v1285_v52 = vstv %s3811_s9  ;;  %s2496_s9 = smov 81  }
 0x1d7   : > { %v1209_v25 = vsel %vm1203_vm7, %v1207_v26, 0.0  ;;  %v1222_v13 = vsel %vm1215_vm1, %v1219_v31, %v1221_v58  ;;  %v1223_v10 = vsel %vm1215_vm1, %v1221_v58, %v1219_v31  ;;  %v3783_v19 = vpop.permute.xlu2 %1300  ;;  %vm1261_vm1 = vmand %vm3674_vm9, %vm3275_vm4  ;;  %vm1302_vm9 = vcmp.lt.s32.totalorder %v2796_v20, 114 }
 0x1d8   : > { %v1210_v36 = vadd.f32 %v1209_v25, %v1181_v17  ;;  %v1228_v5 = vmul.f32 %v1227_v0, %v1222_v13  ;;  %v1229_v38 = vmul.f32 %v1227_v0, %v1223_v10  ;;  %vm4457_vm7 = vmmov %vm4455_vm2  ;;  %vm348_vm2 = vcmp.ge.s32.totalorder %v346_v53, 0 }
 0x1da   : > { %v1230_v55 = vadd.f32 %v1228_v5, %v1225_v49  ;;  %v1231_v18 = vadd.f32 %v1229_v38, %v1226_v30 }
 0x1dc   : > { %v1235_v34 = vrot.slane %v1231_v18, 7  ;;  %1559 = vrot.lane.b32.xlu1 %v2654_v48, %s2490_s26  ;;  %1539 = vrot.lane.b32.xlu0 %v2667_v51, %s2489_s30  ;;  %s3904_s30 = sld [smem:[#allocation4 + $0x20]] }
 0x1dd   : > { %1561 = vrot.lane.b32.xlu2 %v2651_v47, %s2490_s26 }
 0x1de   : > { %v1236_v42 = vsel %vm4456_vm6, %v1230_v55, %v1235_v34  ;;  %v1248_v3 = vpop.permute.xlu1 %1247  ;;  %v1243_v21 = vpop.permute.xlu0 %1242 }
 0x1df   : > { %v1238_v28 = vsel %vm1232_vm14, %v1236_v42, 0.0  ;;  %v1251_v12 = vsel %vm1244_vm15, %v1248_v3, %v3736_v61  ;;  %v1252_v45 = vsel %vm1244_vm15, %v3736_v61, %v1248_v3  ;;  %v1245_v44 = vsel %vm1244_vm15, %v3712_v8, %v1243_v21  ;;  %v3799_v54 = vpop.permute.xlu2 %1327 }
 0x1e0   : > { %v1239_v63 = vadd.f32 %v1238_v28, %v1210_v36  ;;  %v1257_v35 = vmul.f32 %v1256_v4, %v1251_v12  ;;  %v1258_v9 = vmul.f32 %v1256_v4, %v1252_v45  ;;  %v1246_v59 = vsel %vm1244_vm15, %v1243_v21, %v3712_v8 }
 0x1e1   : > { %v1254_v62 = vmul.f32 %v1253_v16, %v1245_v44  ;;  %v1255_v7 = vmul.f32 %v1253_v16, %v1246_v59  ;;  %vm349_vm14 = vcmp.lt.s32.totalorder %v346_v53, 16  ;;  %v1311_v36 = vstv %s3824_s21  ;;  %s2118_s21 = sld [smem:[#allocation4 + $0x53]] }
 0x1e2   : > { %vm3846_vm15 = vmand %vm348_vm2, %vm349_vm14  ;;  %vm1360_vm2 = vcmp.lt.s32.totalorder %v2796_v20, 112 }
 0x1e3   : > { %v1259_v43 = vadd.f32 %v1257_v35, %v1254_v62  ;;  %v1260_v14 = vadd.f32 %v1258_v9, %v1255_v7  ;;  %vm1290_vm6 = vmand %vm3846_vm15, %vm2996_vm8  ;;  %v1343_v9 = vstv %s3858_s23  ;;  %v1340_v7 = vstv %s3862_s18  ;;  %s3981_s23 = sld [smem:[#allocation4 + $0x54]]  ;;  %s2498_s18 = smov 79  }
 0x1e4   : > { %1568 = vrot.lane.b32.xlu1 %v2667_v51, %s2490_s26  ;;  %1566 = vrot.lane.b32.xlu0 %v2662_v50, %s2490_s26  ;;  %vm1348_vm14 = vmand %vm3846_vm15, %vm3028_vm11  ;;  %s3931_s26 = sld [smem:[#allocation4 + $0x52]] }
 0x1e5   : > { %v1264_v61 = vrot.slane %v1260_v14, 7  ;;  %1588 = vrot.lane.b32.xlu2 %v2654_v48, %s2491_s20 }
 0x1e6   : > { %v1272_v8 = vpop.permute.xlu1 %1271  ;;  %v1270_v37 = vpop.permute.xlu0 %1269 }
 0x1e7   : > { %v1265_v39 = vsel %vm4457_vm7, %v1259_v43, %v1264_v61  ;;  %v1274_v32 = vsel %vm1273_vm13, %v1270_v37, %v1272_v8  ;;  %v1275_v24 = vsel %vm1273_vm13, %v1272_v8, %v1270_v37  ;;  %v3819_v27 = vpop.permute.xlu2 %1336 }
 0x1e8   : > { %v1267_v40 = vsel %vm1261_vm1, %v1265_v39, 0.0  ;;  %v1283_v31 = vmul.f32 %v1282_v1, %v1274_v32  ;;  %v1284_v49 = vmul.f32 %v1282_v1, %v1275_v24  ;;  %vm1319_vm1 = vmand %vm3846_vm15, %vm2969_vm5 }
 0x1e9   : > { %v1268_v23 = vadd.f32 %v1267_v40, %v1239_v63 }
 0x1ec   : > { %1595 = vrot.lane.b32.xlu1 %v2662_v50, %s2491_s20  ;;  %1590 = vrot.lane.b32.xlu0 %v2651_v47, %s2491_s20 }
 0x1ed   : > { %1597 = vrot.lane.b32.xlu2 %v2667_v51, %s2491_s20  ;;  %s3960_s20 = sld [smem:[#allocation4 + $0x22]] }
 0x1ee   : > { %v1299_v6 = vpop.permute.xlu1 %1298  ;;  %v1279_v15 = vpop.permute.xlu0 %1278 }
 0x1ef   : > { %v1303_v57 = vsel %vm1302_vm9, %v1299_v6, %v3783_v19  ;;  %v1304_v0 = vsel %vm1302_vm9, %v3783_v19, %v1299_v6  ;;  %v1280_v17 = vsel %vm1273_vm13, %v3763_v33, %v1279_v15  ;;  %v1281_v26 = vsel %vm1273_vm13, %v1279_v15, %v3763_v33  ;;  %v3844_v58 = vpop.permute.xlu2 %1363  ;;  %vm4460_vm13 = vmmov %vm4457_vm7 }
 0x1f0   : > { %v1286_v25 = vmul.f32 %v1285_v52, %v1280_v17  ;;  %v1287_v13 = vmul.f32 %v1285_v52, %v1281_v26  ;;  %v1314_v33 = vstv %s3829_s11  ;;  %v1312_v34 = vmul.f32 %v1311_v36, %v1303_v57  ;;  %s2497_s11 = smov 80  }
 0x1f1   : > { %v1313_v21 = vmul.f32 %v1311_v36, %v1304_v0  ;;  %vm1331_vm7 = vcmp.lt.s32.totalorder %v2796_v20, 113 }
 0x1f2   : > { %v1288_v19 = vadd.f32 %v1286_v25, %v1283_v31  ;;  %v1289_v30 = vadd.f32 %v1287_v13, %v1284_v49  ;;  %v1369_v25 = vstv %s3887_s27  ;;  %v1372_v13 = vstv %s2115_s28  ;;  %s4009_s27 = sld [smem:[#allocation4 + $0x24]]  ;;  %s2499_s28 = smov 78  }
 0x1f4   : > { %v1293_v5 = vrot.slane %v1289_v30, 7  ;;  %1619 = vrot.lane.b32.xlu1 %v2651_v47, %s2492_s19  ;;  %1617 = vrot.lane.b32.xlu0 %v2654_v48, %s2492_s19 }
 0x1f5   : > { %1624 = vrot.lane.b32.xlu2 %v2662_v50, %s2492_s19 }
 0x1f6   : > { %v1294_v38 = vsel %vm4460_vm13, %v1288_v19, %v1293_v5  ;;  %v1308_v55 = vpop.permute.xlu1 %1307  ;;  %v1306_v18 = vpop.permute.xlu0 %1305 }
 0x1f7   : > { %v1296_v4 = vsel %vm1290_vm6, %v1294_v38, 0.0  ;;  %v1309_v42 = vsel %vm1302_vm9, %v1306_v18, %v1308_v55  ;;  %v1310_v3 = vsel %vm1302_vm9, %v1308_v55, %v1306_v18  ;;  %v1388_v16 = vpop.permute.xlu2 %1387  ;;  %vm4461_vm9 = vmmov %vm4460_vm13  ;;  %vm1389_vm13 = vcmp.lt.s32.totalorder %v2796_v20, 111 }
 0x1f8   : > { %v1297_v28 = vadd.f32 %v1296_v4, %v1268_v23  ;;  %v1315_v12 = vmul.f32 %v1314_v33, %v1309_v42  ;;  %v1316_v45 = vmul.f32 %v1314_v33, %v1310_v3  ;;  %vm4462_vm6 = vmmov %vm4461_vm9 }
 0x1fa   : > { %v1317_v44 = vadd.f32 %v1315_v12, %v1312_v34  ;;  %v1318_v63 = vadd.f32 %v1316_v45, %v1313_v21 }
 0x1fc   : > { %v1322_v35 = vrot.slane %v1318_v63, 7  ;;  %1646 = vrot.lane.b32.xlu1 %v2654_v48, %s2493_s25  ;;  %1626 = vrot.lane.b32.xlu0 %v2667_v51, %s2492_s19  ;;  %s3977_s19 = sld [smem:[#allocation4 + $0x23]] }
 0x1fd   : > { %1648 = vrot.lane.b32.xlu2 %v2651_v47, %s2493_s25 }
 0x1fe   : > { %v1323_v59 = vsel %vm4461_vm9, %v1317_v44, %v1322_v35  ;;  %v1335_v62 = vpop.permute.xlu1 %1334  ;;  %v1330_v43 = vpop.permute.xlu0 %1329  ;;  %vm1406_vm9 = vmand %vm3846_vm15, %vm3106_vm3 }
 0x1ff   : > { %v1325_v14 = vsel %vm1319_vm1, %v1323_v59, 0.0  ;;  %v1338_v61 = vsel %vm1331_vm7, %v1335_v62, %v3819_v27  ;;  %v1339_v8 = vsel %vm1331_vm7, %v3819_v27, %v1335_v62  ;;  %v1332_v37 = vsel %vm1331_vm7, %v3799_v54, %v1330_v43  ;;  %v3882_v39 = vpop.permute.xlu2 %1414  ;;  %vm1377_vm1 = vmand %vm3846_vm15, %vm3084_vm10 }
 0x200   : > { %v1326_v32 = vadd.f32 %v1325_v14, %v1297_v28  ;;  %v1344_v24 = vmul.f32 %v1343_v9, %v1338_v61  ;;  %v1345_v40 = vmul.f32 %v1343_v9, %v1339_v8  ;;  %v1333_v23 = vsel %vm1331_vm7, %v1330_v43, %v3799_v54  ;;  %vm4463_vm7 = vmmov %vm4462_vm6 }
 0x201   : > { %v1341_v53 = vmul.f32 %v1340_v7, %v1332_v37  ;;  %v1342_v1 = vmul.f32 %v1340_v7, %v1333_v23  ;;  %v1398_v28 = vstv %s3904_s30  ;;  %s2121_s30 = sld [smem:[#allocation4 + $0x56]] }
 0x203   : > { %v1346_v52 = vadd.f32 %v1344_v24, %v1341_v53  ;;  %v1347_v6 = vadd.f32 %v1345_v40, %v1342_v1  ;;  %v1430_v24 = vstv %s3931_s26  ;;  %v1427_v53 = vstv %s3935_s7  ;;  %s4057_s26 = sld [smem:[#allocation4 + $0x57]] }
 0x204   : > { %1655 = vrot.lane.b32.xlu1 %v2667_v51, %s2493_s25  ;;  %1653 = vrot.lane.b32.xlu0 %v2662_v50, %s2493_s25  ;;  %s4005_s25 = sld [smem:[#allocation4 + $0x55]] }
 0x205   : > { %v1351_v27 = vrot.slane %v1347_v6, 7  ;;  %1675 = vrot.lane.b32.xlu2 %v2654_v48, %s2494_s29  ;;  %s2123_s7 = sld [smem:[#allocation4 + $0x58]] }
 0x206   : > { %v1359_v54 = vpop.permute.xlu1 %1358  ;;  %v1357_v15 = vpop.permute.xlu0 %1356 }
 0x207   : > { %v1352_v57 = vsel %vm4462_vm6, %v1346_v52, %v1351_v27  ;;  %v1361_v0 = vsel %vm1360_vm2, %v1357_v15, %v1359_v54  ;;  %v1362_v17 = vsel %vm1360_vm2, %v1359_v54, %v1357_v15  ;;  %v3900_v26 = vpop.permute.xlu2 %1423 }
 0x208   : > { %v1354_v31 = vsel %vm1348_vm14, %v1352_v57, 0.0  ;;  %v1370_v18 = vmul.f32 %v1369_v25, %v1361_v0  ;;  %v1371_v34 = vmul.f32 %v1369_v25, %v1362_v17  ;;  %vm4464_vm14 = vmmov %vm4462_vm6  ;;  %vm1447_vm6 = vcmp.lt.s32.totalorder %v2796_v20, 109 }
 0x209   : > { %v1355_v49 = vadd.f32 %v1354_v31, %v1326_v32 }
 0x20c   : > { %1682 = vrot.lane.b32.xlu1 %v2662_v50, %s2494_s29  ;;  %1677 = vrot.lane.b32.xlu0 %v2651_v47, %s2494_s29 }
 0x20d   : > { %1684 = vrot.lane.b32.xlu2 %v2667_v51, %s2494_s29  ;;  %s4038_s29 = sld [smem:[#allocation4 + $0x25]] }
 0x20e   : > { %v1386_v19 = vpop.permute.xlu1 %1385  ;;  %v1366_v30 = vpop.permute.xlu0 %1365 }
 0x20f   : > { %v1390_v36 = vsel %vm1389_vm13, %v1386_v19, %v1388_v16  ;;  %v1391_v5 = vsel %vm1389_vm13, %v1388_v16, %v1386_v19  ;;  %v1367_v33 = vsel %vm1360_vm2, %v3844_v58, %v1366_v30  ;;  %v1368_v38 = vsel %vm1360_vm2, %v1366_v30, %v3844_v58  ;;  %v3921_v55 = vpop.permute.xlu2 %1450 }
 0x210   : > { %v1373_v4 = vmul.f32 %v1372_v13, %v1367_v33  ;;  %v1374_v42 = vmul.f32 %v1372_v13, %v1368_v38  ;;  %v1401_v58 = vstv %s3908_s4  ;;  %v1399_v63 = vmul.f32 %v1398_v28, %v1390_v36  ;;  %s2500_s4 = smov 77  }
 0x211   : > { %v1400_v7 = vmul.f32 %v1398_v28, %v1391_v5  ;;  %vm1418_vm2 = vcmp.lt.s32.totalorder %v2796_v20, 110 }
 0x212   : > { %v1375_v3 = vadd.f32 %v1373_v4, %v1370_v18  ;;  %v1376_v21 = vadd.f32 %v1374_v42, %v1371_v34  ;;  %v1456_v4 = vstv %s3960_s20  ;;  %v1459_v42 = vstv %s2118_s21  ;;  %s2075_s20 = sld [smem:[#allocation4 + $0x28]] }
 0x213   : > { %s2124_s21 = sld [smem:[#allocation4 + $0x59]] }
 0x214   : > { %v1380_v16 = vrot.slane %v1376_v21, 7  ;;  %1706 = vrot.lane.b32.xlu1 %v2651_v47, %s2495_s5  ;;  %1704 = vrot.lane.b32.xlu0 %v2654_v48, %s2495_s5 }
 0x215   : > { %1711 = vrot.lane.b32.xlu2 %v2662_v50, %s2495_s5 }
 0x216   : > { %v1381_v12 = vsel %vm4463_vm7, %v1375_v3, %v1380_v16  ;;  %v1395_v45 = vpop.permute.xlu1 %1394  ;;  %v1393_v44 = vpop.permute.xlu0 %1392 }
 0x217   : > { %v1383_v35 = vsel %vm1377_vm1, %v1381_v12, 0.0  ;;  %v1396_v9 = vsel %vm1389_vm13, %v1393_v44, %v1395_v45  ;;  %v1397_v59 = vsel %vm1389_vm13, %v1395_v45, %v1393_v44  ;;  %v1475_v62 = vpop.permute.xlu2 %1474  ;;  %vm1435_vm13 = vmand %vm3846_vm15, %vm3182_vm12 }
 0x218   : > { %v1384_v43 = vadd.f32 %v1383_v35, %v1355_v49  ;;  %v1402_v14 = vmul.f32 %v1401_v58, %v1396_v9  ;;  %v1403_v61 = vmul.f32 %v1401_v58, %v1397_v59  ;;  %vm4465_vm1 = vmmov %vm4463_vm7  ;;  %vm1476_vm7 = vcmp.lt.s32.totalorder %v2796_v20, 99 }
 0x21a   : > { %v1404_v8 = vadd.f32 %v1402_v14, %v1399_v63  ;;  %v1405_v37 = vadd.f32 %v1403_v61, %v1400_v7 }
 0x21c   : > { %v1409_v32 = vrot.slane %v1405_v37, 7  ;;  %1733 = vrot.lane.b32.xlu1 %v2654_v48, %s2496_s9  ;;  %1713 = vrot.lane.b32.xlu0 %v2667_v51, %s2495_s5  ;;  %s4053_s5 = sld [smem:[#allocation4 + $0x26]] }
 0x21d   : > { %1735 = vrot.lane.b32.xlu2 %v2651_v47, %s2496_s9 }
 0x21e   : > { %v1410_v40 = vsel %vm4464_vm14, %v1404_v8, %v1409_v32  ;;  %v1422_v23 = vpop.permute.xlu1 %1421  ;;  %v1417_v1 = vpop.permute.xlu0 %1416 }
 0x21f   : > { %v1412_v52 = vsel %vm1406_vm9, %v1410_v40, 0.0  ;;  %v1425_v6 = vsel %vm1418_vm2, %v1422_v23, %v3900_v26  ;;  %v1426_v27 = vsel %vm1418_vm2, %v3900_v26, %v1422_v23  ;;  %v1419_v54 = vsel %vm1418_vm2, %v3882_v39, %v1417_v1  ;;  %v3955_v15 = vpop.permute.xlu2 %1501  ;;  %vm1464_vm9 = vmand %vm3846_vm15, %vm3275_vm4 }
 0x220   : > { %v1413_v57 = vadd.f32 %v1412_v52, %v1384_v43  ;;  %v1431_v0 = vmul.f32 %v1430_v24, %v1425_v6  ;;  %v1432_v17 = vmul.f32 %v1430_v24, %v1426_v27  ;;  %v1420_v31 = vsel %vm1418_vm2, %v1417_v1, %v3882_v39  ;;  %vm4466_vm2 = vmmov %vm4465_vm1 }
 0x221   : > { %v1428_v49 = vmul.f32 %v1427_v53, %v1419_v54  ;;  %v1429_v25 = vmul.f32 %v1427_v53, %v1420_v31  ;;  %v354_v43 = vadd.s32 2, %v3656_v11 }
 0x223   : > { %v1433_v13 = vadd.f32 %v1431_v0, %v1428_v49  ;;  %v1434_v19 = vadd.f32 %v1432_v17, %v1429_v25  ;;  %vm356_vm14 = vcmp.ge.s32.totalorder %v354_v43, 0  ;;  %v1517_v0 = vstv %s4005_s25  ;;  %s4157_s25 = sld [smem:[#allocation4 + $0x5c]] }
 0x224   : > { %1742 = vrot.lane.b32.xlu1 %v2667_v51, %s2496_s9  ;;  %1740 = vrot.lane.b32.xlu0 %v2662_v50, %s2496_s9  ;;  %v1514_v49 = vstv %s4009_s27  ;;  %s2074_s9 = sld [smem:[#allocation4 + $0x27]] }
 0x225   : > { %v1438_v26 = vrot.slane %v1434_v19, 7  ;;  %1762 = vrot.lane.b32.xlu2 %v2654_v48, %s2497_s11  ;;  %s4159_s27 = sld [smem:[#allocation4 + $0x2b]] }
 0x226   : > { %v1446_v39 = vpop.permute.xlu1 %1445  ;;  %v1444_v30 = vpop.permute.xlu0 %1443 }
 0x227   : > { %v1439_v36 = vsel %vm4465_vm1, %v1433_v13, %v1438_v26  ;;  %v1448_v5 = vsel %vm1447_vm6, %v1444_v30, %v1446_v39  ;;  %v1449_v33 = vsel %vm1447_vm6, %v1446_v39, %v1444_v30  ;;  %v3973_v38 = vpop.permute.xlu2 %1510  ;;  %vm1505_vm1 = vcmp.lt.s32.totalorder %v2796_v20, 98 }
 0x228   : > { %v1441_v18 = vsel %vm1435_vm13, %v1439_v36, 0.0  ;;  %v1457_v44 = vmul.f32 %v1456_v4, %v1448_v5  ;;  %v1458_v63 = vmul.f32 %v1456_v4, %v1449_v33 }
 0x229   : > { %v1442_v34 = vadd.f32 %v1441_v18, %v1413_v57 }
 0x22c   : > { %1769 = vrot.lane.b32.xlu1 %v2662_v50, %s2497_s11  ;;  %1764 = vrot.lane.b32.xlu0 %v2651_v47, %s2497_s11 }
 0x22d   : > { %1771 = vrot.lane.b32.xlu2 %v2667_v51, %s2497_s11  ;;  %s4105_s11 = sld [smem:[#allocation4 + $0x29]] }
 0x22e   : > { %v1473_v3 = vpop.permute.xlu1 %1472  ;;  %v1453_v21 = vpop.permute.xlu0 %1452 }
 0x22f   : > { %v1477_v28 = vsel %vm1476_vm7, %v1473_v3, %v1475_v62  ;;  %v1478_v16 = vsel %vm1476_vm7, %v1475_v62, %v1473_v3  ;;  %v1454_v58 = vsel %vm1447_vm6, %v3921_v55, %v1453_v21  ;;  %v1455_v12 = vsel %vm1447_vm6, %v1453_v21, %v3921_v55  ;;  %v3994_v45 = vpop.permute.xlu2 %1537 }
 0x230   : > { %v1460_v35 = vmul.f32 %v1459_v42, %v1454_v58  ;;  %v1461_v9 = vmul.f32 %v1459_v42, %v1455_v12  ;;  %v1485_v62 = vstv %s3977_s19  ;;  %v1488_v55 = vstv %s3981_s23  ;;  %s2125_s19 = sld [smem:[#allocation4 + $0x5a]] }
 0x231   : > { %vm357_vm6 = vcmp.lt.s32.totalorder %v354_v43, 16  ;;  %v1486_v10 = vmul.f32 %v1485_v62, %v1477_v28  ;;  %v1487_v23 = vmul.f32 %v1485_v62, %v1478_v16  ;;  %s4147_s23 = sld [smem:[#allocation4 + $0x5b]] }
 0x232   : > { %v1462_v59 = vadd.f32 %v1460_v35, %v1457_v44  ;;  %v1463_v7 = vadd.f32 %v1461_v9, %v1458_v63  ;;  %vm4015_vm15 = vmand %vm356_vm14, %vm357_vm6  ;;  %vm1563_vm6 = vcmp.lt.s32.totalorder %v2796_v20, 96  ;;  %v1546_v35 = vstv %s2121_s30  ;;  %s4167_s30 = sld [smem:[#allocation4 + $0x5e]] }
 0x233   : > { %vm1493_vm13 = vmand %vm4015_vm15, %vm2996_vm8 }
 0x234   : > { %v1467_v14 = vrot.slane %v1463_v7, 7  ;;  %1793 = vrot.lane.b32.xlu1 %v2651_v47, %s2498_s18  ;;  %1791 = vrot.lane.b32.xlu0 %v2654_v48, %s2498_s18 }
 0x235   : > { %1798 = vrot.lane.b32.xlu2 %v2662_v50, %s2498_s18 }
 0x236   : > { %v1468_v61 = vsel %vm4466_vm2, %v1462_v59, %v1467_v14  ;;  %v1482_v11 = vpop.permute.xlu1 %1481  ;;  %v1480_v8 = vpop.permute.xlu0 %1479 }
 0x237   : > { %v1470_v37 = vsel %vm1464_vm9, %v1468_v61, 0.0  ;;  %v1483_v32 = vsel %vm1476_vm7, %v1480_v8, %v1482_v11  ;;  %v1484_v24 = vsel %vm1476_vm7, %v1482_v11, %v1480_v8  ;;  %v1562_v40 = vpop.permute.xlu2 %1561  ;;  %vm4469_vm7 = vmmov %vm4466_vm2  ;;  %vm1534_vm9 = vcmp.lt.s32.totalorder %v2796_v20, 97 }
 0x238   : > { %v1471_v53 = vadd.f32 %v1470_v37, %v1442_v34  ;;  %v1489_v1 = vmul.f32 %v1488_v55, %v1483_v32  ;;  %v1490_v52 = vmul.f32 %v1488_v55, %v1484_v24  ;;  %vm1522_vm2 = vmand %vm4015_vm15, %vm2969_vm5  ;;  %v1575_v32 = vstv %s4057_s26  ;;  %s4196_s26 = sld [smem:[#allocation4 + $0x2e]] }
 0x239   : > { %vm4470_vm14 = vmmov %vm4469_vm7 }
 0x23a   : > { %v1491_v27 = vadd.f32 %v1489_v1, %v1486_v10  ;;  %v1492_v54 = vadd.f32 %v1490_v52, %v1487_v23  ;;  %v1572_v10 = vstv %s4053_s5  ;;  %s4188_s5 = sld [smem:[#allocation4 + $0x5f]] }
 0x23c   : > { %v1496_v57 = vrot.slane %v1492_v54, 7  ;;  %1820 = vrot.lane.b32.xlu1 %v2654_v48, %s2499_s28  ;;  %1800 = vrot.lane.b32.xlu0 %v2667_v51, %s2498_s18  ;;  %s4149_s18 = sld [smem:[#allocation4 + $0x2a]] }
 0x23d   : > { %1822 = vrot.lane.b32.xlu2 %v2651_v47, %s2499_s28 }
 0x23e   : > { %v1497_v17 = vsel %vm4469_vm7, %v1491_v27, %v1496_v57  ;;  %v1509_v31 = vpop.permute.xlu1 %1508  ;;  %v1504_v25 = vpop.permute.xlu0 %1503 }
 0x23f   : > { %v1499_v13 = vsel %vm1493_vm13, %v1497_v17, 0.0  ;;  %v1512_v19 = vsel %vm1505_vm1, %v1509_v31, %v3973_v38  ;;  %v1513_v26 = vsel %vm1505_vm1, %v3973_v38, %v1509_v31  ;;  %v1506_v39 = vsel %vm1505_vm1, %v3955_v15, %v1504_v25  ;;  %v4033_v30 = vpop.permute.xlu2 %1588  ;;  %vm1551_vm13 = vmand %vm4015_vm15, %vm3028_vm11 }
 0x240   : > { %v1500_v36 = vadd.f32 %v1499_v13, %v1471_v53  ;;  %v1518_v5 = vmul.f32 %v1517_v0, %v1512_v19  ;;  %v1519_v33 = vmul.f32 %v1517_v0, %v1513_v26  ;;  %v1507_v18 = vsel %vm1505_vm1, %v1504_v25, %v3955_v15  ;;  %vm4471_vm1 = vmmov %vm4469_vm7 }
 0x241   : > { %v1515_v34 = vmul.f32 %v1514_v49, %v1506_v39  ;;  %v1516_v4 = vmul.f32 %v1514_v49, %v1507_v18  ;;  %vm1580_vm7 = vmand %vm4015_vm15, %vm3084_vm10  ;;  %v1604_v13 = vstv %s2123_s7  ;;  %v1601_v39 = vstv %s2074_s9  ;;  %s4213_s7 = sld [smem:[#allocation4 + $0x2f]] }
 0x242   : > { %s4219_s9 = sld [smem:[#allocation4 + $0x60]] }
 0x243   : > { %v1520_v42 = vadd.f32 %v1518_v5, %v1515_v34  ;;  %v1521_v3 = vadd.f32 %v1519_v33, %v1516_v4 }
 0x244   : > { %1829 = vrot.lane.b32.xlu1 %v2667_v51, %s2499_s28  ;;  %1827 = vrot.lane.b32.xlu0 %v2662_v50, %s2499_s28  ;;  %s4161_s28 = sld [smem:[#allocation4 + $0x2c]] }
 0x245   : > { %v1525_v38 = vrot.slane %v1521_v3, 7  ;;  %1849 = vrot.lane.b32.xlu2 %v2654_v48, %s2500_s4  ;;  %v1543_v48 = vstv %s4038_s29  ;;  %s4164_s29 = sld [smem:[#allocation4 + $0x5d]] }
 0x246   : > { %v1533_v15 = vpop.permute.xlu1 %1532  ;;  %v1531_v21 = vpop.permute.xlu0 %1530 }
 0x247   : > { %v1526_v28 = vsel %vm4470_vm14, %v1520_v42, %v1525_v38  ;;  %v1535_v16 = vsel %vm1534_vm9, %v1531_v21, %v1533_v15  ;;  %v1536_v58 = vsel %vm1534_vm9, %v1533_v15, %v1531_v21  ;;  %v1598_v12 = vpop.permute.xlu2 %1597  ;;  %vm1621_vm14 = vcmp.lt.s32.totalorder %v2796_v20, 94 }
 0x248   : > { %v1528_v44 = vsel %vm1522_vm2, %v1526_v28, 0.0  ;;  %v1545_v14 = vmul.f32 %v1543_v48, %v1536_v58  ;;  %vm4472_vm2 = vmmov %vm4471_vm1 }
 0x249   : > { %v1529_v63 = vadd.f32 %v1528_v44, %v1500_v36 }
 0x24c   : > { %1856 = vrot.lane.b32.xlu1 %v2662_v50, %s2500_s4  ;;  %1851 = vrot.lane.b32.xlu0 %v2651_v47, %s2500_s4 }
 0x24d   : > { %1858 = vrot.lane.b32.xlu2 %v2667_v51, %s2500_s4  ;;  %v1544_v51 = vmul.f32 %v1543_v48, %v1535_v16  ;;  %s4176_s4 = sld [smem:[#allocation4 + $0x2d]] }
 0x24e   : > { %v1560_v9 = vpop.permute.xlu1 %1559  ;;  %v1540_v59 = vpop.permute.xlu0 %1539 }
 0x24f   : > { %v1564_v7 = vsel %vm1563_vm6, %v1560_v9, %v1562_v40  ;;  %v1565_v47 = vsel %vm1563_vm6, %v1562_v40, %v1560_v9  ;;  %v1541_v50 = vsel %vm1534_vm9, %v3994_v45, %v1540_v59  ;;  %v1542_v43 = vsel %vm1534_vm9, %v1540_v59, %v3994_v45  ;;  %v4070_v62 = vpop.permute.xlu2 %1624 }
 0x250   : > { %v1547_v55 = vmul.f32 %v1546_v35, %v1541_v50  ;;  %v1548_v61 = vmul.f32 %v1546_v35, %v1542_v43  ;;  %v1573_v23 = vmul.f32 %v1572_v10, %v1564_v7  ;;  %v1574_v54 = vmul.f32 %v1572_v10, %v1565_v47 }
 0x251   : > { %vm1592_vm9 = vcmp.lt.s32.totalorder %v2796_v20, 95  ;;  %v1630_v47 = vstv %s2075_s20  ;;  %v1633_v50 = vstv %s2124_s21  ;;  %s4274_s20 = sld [smem:[#allocation4 + $0x61]] }
 0x252   : > { %v1549_v11 = vadd.f32 %v1547_v55, %v1544_v51  ;;  %v1550_v8 = vadd.f32 %v1548_v61, %v1545_v14  ;;  %s4282_s21 = sld [smem:[#allocation4 + $0x30]] }
 0x254   : > { %v1554_v37 = vrot.slane %v1550_v8, 7 }
 0x256   : > { %v1555_v24 = vsel %vm4471_vm1, %v1549_v11, %v1554_v37  ;;  %v1569_v45 = vpop.permute.xlu1 %1568  ;;  %v1567_v40 = vpop.permute.xlu0 %1566 }
 0x257   : > { %v1557_v53 = vsel %vm1551_vm13, %v1555_v24, 0.0  ;;  %v1570_v1 = vsel %vm1563_vm6, %v1567_v40, %v1569_v45  ;;  %v1571_v52 = vsel %vm1563_vm6, %v1569_v45, %v1567_v40  ;;  %v1649_v27 = vpop.permute.xlu2 %1648  ;;  %vm1609_vm6 = vmand %vm4015_vm15, %vm3106_vm3 }
 0x258   : > { %v1558_v57 = vadd.f32 %v1557_v53, %v1529_v63  ;;  %v1576_v0 = vmul.f32 %v1575_v32, %v1570_v1  ;;  %v1577_v17 = vmul.f32 %v1575_v32, %v1571_v52  ;;  %vm4473_vm13 = vmmov %vm4471_vm1  ;;  %vm1650_vm1 = vcmp.lt.s32.totalorder %v2796_v20, 93 }
 0x259   : > { %v1662_v53 = vstv %s2125_s19  ;;  %s2134_s19 = sshll.u32 %s2437_s15, 1  ;;  %s1902_s15 = scalar_lea.sflag [#allocation6], %s2621_s6 }
 0x25a   : > { %v1578_v31 = vadd.f32 %v1576_v0, %v1573_v23  ;;  %v1579_v49 = vadd.f32 %v1577_v17, %v1574_v54  ;;  %v1659_v23 = vstv %s4105_s11  ;;  %s2035_s11 = sshll.u32 %s2621_s6, 1 }
 0x25c   : > { %v1583_v25 = vrot.slane %v1579_v49, 7 }
 0x25e   : > { %v1584_v19 = vsel %vm4472_vm2, %v1578_v31, %v1583_v25  ;;  %v1596_v26 = vpop.permute.xlu1 %1595  ;;  %v1591_v36 = vpop.permute.xlu0 %1590 }
 0x25f   : > { %v1586_v5 = vsel %vm1580_vm7, %v1584_v19, 0.0  ;;  %v1599_v33 = vsel %vm1592_vm9, %v1596_v26, %v1598_v12  ;;  %v1600_v18 = vsel %vm1592_vm9, %v1598_v12, %v1596_v26  ;;  %v1593_v34 = vsel %vm1592_vm9, %v4033_v30, %v1591_v36  ;;  %v4091_v28 = vpop.permute.xlu2 %1675  ;;  %vm1638_vm7 = vmand %vm4015_vm15, %vm3182_vm12 }
 0x260   : > { %v1587_v4 = vadd.f32 %v1586_v5, %v1558_v57  ;;  %v1605_v42 = vmul.f32 %v1604_v13, %v1599_v33  ;;  %v1606_v3 = vmul.f32 %v1604_v13, %v1600_v18  ;;  %v1594_v38 = vsel %vm1592_vm9, %v1591_v36, %v4033_v30  ;;  %vm4474_vm9 = vmmov %vm4472_vm2 }
 0x261   : > { %v1602_v15 = vmul.f32 %v1601_v39, %v1593_v34  ;;  %v1603_v21 = vmul.f32 %v1601_v39, %v1594_v38  ;;  %vm1667_vm2 = vmand %vm4015_vm15, %vm3275_vm4  ;;  %vm1679_vm15 = vcmp.lt.s32.totalorder %v2796_v20, 83 }
 0x263   : > { %v1607_v16 = vadd.f32 %v1605_v42, %v1602_v15  ;;  %v1608_v58 = vadd.f32 %v1606_v3, %v1603_v21 }
 0x265   : > { %v1612_v12 = vrot.slane %v1608_v58, 7 }
 0x266   : > { %v1620_v44 = vpop.permute.xlu1 %1619  ;;  %v1618_v63 = vpop.permute.xlu0 %1617 }
 0x267   : > { %v1613_v30 = vsel %vm4473_vm13, %v1607_v16, %v1612_v12  ;;  %v1622_v48 = vsel %vm1621_vm14, %v1618_v63, %v1620_v44  ;;  %v1623_v35 = vsel %vm1621_vm14, %v1620_v44, %v1618_v63  ;;  %v4103_v7 = vpop.permute.xlu2 %1684  ;;  %vm1737_vm13 = vcmp.lt.s32.totalorder %v2796_v20, 81 }
 0x268   : > { %v1615_v9 = vsel %vm1609_vm6, %v1613_v30, 0.0  ;;  %v1631_v8 = vmul.f32 %v1630_v47, %v1622_v48  ;;  %v1632_v10 = vmul.f32 %v1630_v47, %v1623_v35  ;;  %v1691_v30 = vstv %s4147_s23  ;;  %v2279_v35 = vld [vmem:[#allocation8] sm:$0x3] }
 0x269   : > { %v1616_v59 = vadd.f32 %v1615_v9, %v1587_v4  ;;  %v362_v9 = vadd.s32 3, %v2279_v35  ;;  %vm1708_vm6 = vcmp.lt.s32.totalorder %v2796_v20, 82 }
 0x26e   : > { %v1647_v43 = vpop.permute.xlu1 %1646  ;;  %v1627_v51 = vpop.permute.xlu0 %1626 }
 0x26f   : > { %v1651_v14 = vsel %vm1650_vm1, %v1647_v43, %v1649_v27  ;;  %v1652_v55 = vsel %vm1650_vm1, %v1649_v27, %v1647_v43  ;;  %v1628_v61 = vsel %vm1621_vm14, %v4070_v62, %v1627_v51  ;;  %v1629_v11 = vsel %vm1621_vm14, %v1627_v51, %v4070_v62  ;;  %v4123_v1 = vpop.permute.xlu2 %1711  ;;  %vm4475_vm14 = vmmov %vm4474_vm9 }
 0x270   : > { %v1634_v37 = vmul.f32 %v1633_v50, %v1628_v61  ;;  %v1635_v32 = vmul.f32 %v1633_v50, %v1629_v11  ;;  %v1661_v17 = vmul.f32 %v1659_v23, %v1652_v55  ;;  %v1660_v13 = vmul.f32 %v1659_v23, %v1651_v14 }
 0x271   : > { %v1720_v51 = vstv %s4157_s25  ;;  %s1912_s25 = scalar_lea.hbm %s4392_s3, %s2134_s19 }
 0x272   : > { %v1636_v24 = vadd.f32 %v1634_v37, %v1631_v8  ;;  %v1637_v45 = vadd.f32 %v1635_v32, %v1632_v10  ;;  %v1717_v37 = vstv %s4159_s27  ;;  %s235_s27 = scalar_lea.vmem [#allocation11], %s2035_s11 }
 0x274   : > { %v1641_v40 = vrot.slane %v1637_v45, 7  ;;  %v1749_v45 = vstv %s4164_s29  ;;  %s1916_s29 = sshll.u32 %s1912_s25, 4  ;;  %s1917_s29 = int_to_ptr.hbm [resolvable:$true] %s1916_s29 }
 0x276   : > { %v1642_v52 = vsel %vm4474_vm9, %v1636_v24, %v1641_v40  ;;  %v1656_v27 = vpop.permute.xlu1 %1655  ;;  %v1654_v62 = vpop.permute.xlu0 %1653  ;;  %v1746_v24 = vstv %s4161_s28  ;;  %vm1766_vm9 = vcmp.lt.s32.totalorder %v2796_v20, 80  ;;  %s1914_s28 = sshll.u32 %s235_s27, 4  ;;  %s1915_s28 = int_to_ptr.vmem [resolvable:$true] %s1914_s28 }
 0x277   : > { %v1644_v54 = vsel %vm1638_vm7, %v1642_v52, 0.0  ;;  %v1657_v57 = vsel %vm1650_vm1, %v1654_v62, %v1656_v27  ;;  %v1658_v0 = vsel %vm1650_vm1, %v1656_v27, %v1654_v62  ;;  %v4135_v34 = vpop.permute.xlu2 %1735  ;;  %vm364_vm1 = vcmp.ge.s32.totalorder %v362_v9, 0 }
 0x278   : > { %v1645_v31 = vadd.f32 %v1644_v54, %v1616_v59  ;;  %v1663_v49 = vmul.f32 %v1662_v53, %v1657_v57  ;;  %v1664_v25 = vmul.f32 %v1662_v53, %v1658_v0  ;;  %v1688_v59 = vstv %s4149_s18 }
 0x279   : > { %vm365_vm7 = vcmp.lt.s32.totalorder %v362_v9, 16  ;;  %v1778_v54 = vstv %s4167_s30  ;;  %v1836_v9 = vstv %s4219_s9  ;;  %s2369_s30 = sshra.s32 %s1917_s29, 4  ;;  %s2370_s30 = int_to_ptr.hbm [resolvable:$true] %s2369_s30 }
 0x27a   : > { %v1666_v19 = vadd.f32 %v1664_v25, %v1661_v17  ;;  %v1665_v26 = vadd.f32 %v1663_v49, %v1660_v13  ;;  %v1775_v17 = vstv %s4176_s4  ;;  %s2371_s4 = scalar_lea.hbm %s2370_s30, 2  ;;  %p2376_p11 = scmp.lt.s32.totalorder %s2370_s30, %s4392_s3 }
 0x27b   : > { %p2372_p1 = scmp.ne.s32.totalorder %s2370_s30, %s2371_s4 }
 0x27c   : > { %v1670_v39 = vrot.slane %v1666_v19, 7 }
 0x27d   : > { %p2373_p3 = pnand %p2372_p1, %p2593_p2 }
 0x27e   : > { %v1671_v36 = vsel %vm4475_vm14, %v1665_v26, %v1670_v39  ;;  %v1683_v5 = vpop.permute.xlu1 %1682  ;;  %v1678_v33 = vpop.permute.xlu0 %1677  ;;  %vm1824_vm14 = vcmp.lt.s32.totalorder %v2796_v20, 78 }
 0x27f   : > { %v1673_v18 = vsel %vm1667_vm2, %v1671_v36, 0.0  ;;  %v4139_v38 = vpop.permute.xlu2 %1762  ;;  %v1687_v48 = vsel %vm1679_vm15, %v4103_v7, %v1683_v5  ;;  %v1681_v47 = vsel %vm1679_vm15, %v1678_v33, %v4091_v28  ;;  %v1686_v55 = vsel %vm1679_vm15, %v1683_v5, %v4103_v7  ;;  %p2374_p7 = pneg %p2373_p3 }
 0x280   : > { %v4137_v4 = vadd.f32 %v1673_v18, %v1645_v31  ;;  %v1693_v61 = vmul.f32 %v1691_v30, %v1687_v48  ;;  %v1680_v11 = vsel %vm1679_vm15, %v4091_v28, %v1678_v33  ;;  %v1690_v8 = vmul.f32 %v1688_v59, %v1681_v47  ;;  %vm4254_vm15 = vmand %vm364_vm1, %vm365_vm7 }
 0x281   : > { %v1692_v40 = vmul.f32 %v1691_v30, %v1686_v55  ;;  %v1689_v23 = vmul.f32 %v1688_v59, %v1680_v11  ;;  %vm1795_vm2 = vcmp.lt.s32.totalorder %v2796_v20, 79  ;;  %v1807_v36 = vstv %s4188_s5  ;;  %vm1725_vm7 = vmand %vm4254_vm15, %vm2969_vm5 }
 0x282   : > { %v1695_v52 = vadd.f32 %v1693_v61, %v1690_v8  ;;  %v1833_v55 = vstv %s4213_s7  ;;  %vm1853_vm5 = vcmp.lt.s32.totalorder %v2796_v20, 77  ;;  %s2375_s7 = scalar_lea.hbm %s4392_s3, 4 }
 0x283   : > { %p2377_p12 = scmp.lt.s32.totalorder %s2375_s7, %s2371_s4 }
 0x284   : > { %v1699_v33 = vrot.slane %v1695_v52, 7 }
 0x285   : > { %p2378_p13 = por %p2377_p12, %p2376_p11 }
 0x286   : > { %v1707_v42 = vpop.permute.xlu1 %1706  ;;  %v1705_v3 = vpop.permute.xlu0 %1704 }
 0x287   : > { %v4143_v6 = vpop.permute.xlu2 %1771  ;;  %v1710_v32 = vsel %vm1708_vm6, %v1707_v42, %v1705_v3  ;;  %v1709_v57 = vsel %vm1708_vm6, %v1705_v3, %v1707_v42  ;;  %v1804_v3 = vstv %s4196_s26  ;;  %p2379_p0 = pnand %p2378_p13, %p2374_p7 }
 0x288   : > { %v1719_v27 = vmul.f32 %v1717_v37, %v1710_v32  ;;  %v1718_v18 = vmul.f32 %v1717_v37, %v1709_v57 }
 0x28e   : > { %v4141_v15 = vpop.permute.xlu1 %1733  ;;  %v1714_v21 = vpop.permute.xlu0 %1713 }
 0x28f   : > { %v4151_v12 = vpop.permute.xlu2 %1798  ;;  %v1716_v14 = vsel %vm1708_vm6, %v1714_v21, %v4123_v1  ;;  %v1739_v53 = vsel %vm1737_vm13, %v4135_v34, %v4141_v15  ;;  %v1715_v62 = vsel %vm1708_vm6, %v4123_v1, %v1714_v21  ;;  %v1738_v42 = vsel %vm1737_vm13, %v4141_v15, %v4135_v34  ;;  %vm1696_vm6 = vmand %vm4254_vm15, %vm2996_vm8 }
 0x290   : > { %v1722_v7 = vmul.f32 %v1720_v51, %v1716_v14  ;;  %v1748_v31 = vmul.f32 %v1746_v24, %v1739_v53  ;;  %v1721_v26 = vmul.f32 %v1720_v51, %v1715_v62  ;;  %v1694_v15 = vadd.f32 %v1692_v40, %v1689_v23  ;;  %vm1783_vm8 = vmand %vm4254_vm15, %vm3084_vm10 }
 0x291   : > { %v1747_v51 = vmul.f32 %v1746_v24, %v1738_v42  ;;  %vm1870_vm10 = vmand %vm4254_vm15, %vm3275_vm4 }
 0x292   : > { %v1724_v49 = vadd.f32 %v1722_v7, %v1719_v27  ;;  %v1723_v14 = vadd.f32 %v1721_v26, %v1718_v18 }
 0x296   : > { %v4145_v16 = vpop.permute.xlu1 %1742  ;;  %v1741_v58 = vpop.permute.xlu0 %1740 }
 0x297   : > { %v4198_v10 = vpop.permute.xlu2 %1822  ;;  %v1745_v28 = vsel %vm1737_vm13, %v4145_v16, %v1741_v58  ;;  %v1744_v39 = vsel %vm1737_vm13, %v1741_v58, %v4145_v16  ;;  %v1728_v58 = vrot.slane %v1724_v49, 7  ;;  %vm4478_vm13 = vcmask 1040384  }
 0x298   : > { %v1751_v0 = vmul.f32 %v1749_v45, %v1745_v28  ;;  %v1750_v35 = vmul.f32 %v1749_v45, %v1744_v39  ;;  %vm4479_vm1 = vmmov %vm4478_vm13 }
 0x29a   : > { %v1753_v21 = vadd.f32 %v1751_v0, %v1748_v31 }
 0x29c   : > { %v1757_v37 = vrot.slane %v1753_v21, 7 }
 0x29e   : > { %v4153_v44 = vpop.permute.xlu1 %1769  ;;  %v4155_v63 = vpop.permute.xlu0 %1764 }
 0x29f   : > { %v1774_v25 = vsel %vm1766_vm9, %v4143_v6, %v4153_v44  ;;  %v1768_v1 = vsel %vm1766_vm9, %v4155_v63, %v4139_v38  ;;  %v4250_v47 = vpop.permute.xlu2 %1849  ;;  %v1773_v61 = vsel %vm1766_vm9, %v4153_v44, %v4143_v6  ;;  %v1767_v11 = vsel %vm1766_vm9, %v4139_v38, %v4155_v63  ;;  %vm1754_vm9 = vmand %vm4254_vm15, %vm3028_vm11 }
 0x2a0   : > { %v1780_v30 = vmul.f32 %v1778_v54, %v1774_v25  ;;  %v1777_v48 = vmul.f32 %v1775_v17, %v1768_v1  ;;  %v1700_v38 = vsel %vm4478_vm13, %v1694_v15, %v1699_v33  ;;  %v1729_v6 = vsel %vm4479_vm1, %v1723_v14, %v1728_v58  ;;  %vm4481_vm11 = vmmov %vm4479_vm1 }
 0x2a1   : > { %v1752_v44 = vadd.f32 %v1750_v35, %v1747_v51  ;;  %v1779_v40 = vmul.f32 %v1778_v54, %v1773_v61  ;;  %v1776_v23 = vmul.f32 %v1775_v17, %v1767_v11  ;;  %v1731_v49 = vsel %vm1725_vm7, %v1729_v6, 0.0  ;;  %vm4483_vm13 = vmmov %vm4479_vm1 }
 0x2a2   : > { %v1782_v32 = vadd.f32 %v1780_v30, %v1777_v48 }
 0x2a3   : > { %v1781_v29 = vadd.f32 %v1779_v40, %v1776_v23 }
 0x2a6   : > { %v4179_v50 = vpop.permute.xlu1 %1793  ;;  %v4181_v43 = vpop.permute.xlu0 %1791 }
 0x2a7   : > { %v1797_v16 = vsel %vm1795_vm2, %v4179_v50, %v4181_v43  ;;  %v1859_v26 = vpop.permute.xlu2 %1858 }
 0x2a8   : > { %v1806_v8 = vmul.f32 %v1804_v3, %v1797_v16 }
 0x2ae   : > { %v1821_v13 = vpop.permute.xlu1 %1820  ;;  %v1801_v19 = vpop.permute.xlu0 %1800 }
 0x2af   : > { %v1803_v5 = vsel %vm1795_vm2, %v1801_v19, %v4151_v12  ;;  %v1826_v24 = vsel %vm1824_vm14, %v4198_v10, %v1821_v13  ;;  %v1802_v7 = vsel %vm1795_vm2, %v4151_v12, %v1801_v19  ;;  %v1796_v12 = vsel %vm1795_vm2, %v4181_v43, %v4179_v50  ;;  %vm4480_vm2 = vmmov %vm4479_vm1 }
 0x2b0   : > { %v1809_v59 = vmul.f32 %v1807_v36, %v1803_v5  ;;  %v1835_v52 = vmul.f32 %v1833_v55, %v1826_v24  ;;  %v1808_v27 = vmul.f32 %v1807_v36, %v1802_v7  ;;  %v1702_v50 = vsel %vm1696_vm6, %v1700_v38, 0.0  ;;  %vm1812_vm6 = vmand %vm4254_vm15, %vm3106_vm3 }
 0x2b1   : > { %v1758_v60 = vsel %vm4480_vm2, %v1752_v44, %v1757_v37  ;;  %v1786_v43 = vrot.slane %v1782_v32, 7  ;;  %v1805_v57 = vmul.f32 %v1804_v3, %v1796_v12  ;;  %v1825_v0 = vsel %vm1824_vm14, %v1821_v13, %v4198_v10  ;;  %vm1841_vm3 = vmand %vm4254_vm15, %vm3182_vm12 }
 0x2b2   : > { %v1811_v63 = vadd.f32 %v1809_v59, %v1806_v8  ;;  %v1703_v46 = vadd.f32 %v1702_v50, %v4137_v4  ;;  %v1760_v1 = vsel %vm1754_vm9, %v1758_v60, 0.0  ;;  %v1834_v13 = vmul.f32 %v1833_v55, %v1825_v0  ;;  %vm4484_vm12 = vmmov %vm4479_vm1 }
 0x2b3   : > { %v1810_v19 = vadd.f32 %v1808_v27, %v1805_v57  ;;  %v1787_v10 = vsel %vm4481_vm11, %v1781_v29, %v1786_v43  ;;  %v1865_v36 = vstv %s4274_s20  ;;  %v1862_v4 = vstv %s4282_s21 }
 0x2b4   : > { %v1815_v17 = vrot.slane %v1811_v63, 7  ;;  %v1732_v5 = vadd.f32 %v1731_v49, %v1703_v46  ;;  %v1789_v56 = vsel %vm1783_vm8, %v1787_v10, 0.0 }
 0x2b6   : > { %v1830_v45 = vpop.permute.xlu1 %1829  ;;  %v1828_v28 = vpop.permute.xlu0 %1827  ;;  %v1761_v16 = vadd.f32 %v1760_v1, %v1732_v5 }
 0x2b7   : > { %v1832_v53 = vsel %vm1824_vm14, %v1830_v45, %v1828_v28  ;;  %v1831_v62 = vsel %vm1824_vm14, %v1828_v28, %v1830_v45  ;;  %vm4482_vm14 = vmmov %vm4479_vm1 }
 0x2b8   : > { %v1838_v54 = vmul.f32 %v1836_v9, %v1832_v53  ;;  %v1837_v25 = vmul.f32 %v1836_v9, %v1831_v62  ;;  %v1816_v33 = vsel %vm4482_vm14, %v1810_v19, %v1815_v17  ;;  %v1790_v61 = vadd.f32 %v1789_v56, %v1761_v16 }
 0x2b9   : > { %v1818_v55 = vsel %vm1812_vm6, %v1816_v33, 0.0 }
 0x2ba   : > { %v1840_v31 = vadd.f32 %v1838_v54, %v1835_v52  ;;  %v1839_v3 = vadd.f32 %v1837_v25, %v1834_v13  ;;  %v1819_v8 = vadd.f32 %v1818_v55, %v1790_v61 }
 0x2bc   : > { %v1844_v39 = vrot.slane %v1840_v31, 7 }
 0x2be   : > { %v1857_v18 = vpop.permute.xlu1 %1856  ;;  %v1852_v42 = vpop.permute.xlu0 %1851  ;;  %v1845_v59 = vsel %vm4483_vm13, %v1839_v3, %v1844_v39 }
 0x2bf   : > { %v1860_v21 = vsel %vm1853_vm5, %v1857_v18, %v1859_v26  ;;  %v1861_v30 = vsel %vm1853_vm5, %v1859_v26, %v1857_v18  ;;  %v1854_v48 = vsel %vm1853_vm5, %v4250_v47, %v1852_v42  ;;  %v1855_v35 = vsel %vm1853_vm5, %v1852_v42, %v4250_v47 }
 0x2c0   : > { %v1867_v58 = vmul.f32 %v1865_v36, %v1861_v30  ;;  %v1866_v15 = vmul.f32 %v1865_v36, %v1860_v21  ;;  %v1863_v51 = vmul.f32 %v1862_v4, %v1854_v48  ;;  %v1864_v14 = vmul.f32 %v1862_v4, %v1855_v35 }
 0x2c1   : > { %v1847_v11 = vsel %vm1841_vm3, %v1845_v59, 0.0 }
 0x2c2   : > { %v1869_v2 = vadd.f32 %v1867_v58, %v1864_v14  ;;  %v1868_v20 = vadd.f32 %v1866_v15, %v1863_v51  ;;  %v1848_v47 = vadd.f32 %v1847_v11, %v1819_v8 }
 0x2c4   : > { %v1873_v41 = vrot.slane %v1869_v2, 7 }
 0x2c6   : > { %v1874_v9 = vsel %vm4484_vm12, %v1868_v20, %v1873_v41 }
 0x2c7   : > { %v1876_v37 = vsel %vm1870_vm10, %v1874_v9, 0.0 }
 0x2c8   : > { %v1877_v32 = vadd.f32 %v1876_v37, %v1848_v47 }
 0x2ca   : > { %v1878_v24 = vand.u32 2147483647, %v1877_v32  ;;  %vm1882_vm7 = vcmp.ge.f32.partialorder %v1877_v32, 0.0 }
 0x2cc   : > { %v1879_v7 = vsub.f32 0.0, %v1878_v24 }
 0x2ce   : > { %v1880_v38 = vmul.f32 1.442695, %v1879_v7 }
 0x2d0   : > { %2273 = vpow2.f32 %v1880_v38 }
 0x2d6   : > { %v2274_v6 = vpop.eup %2273 }
 0x2d7   : > { %v1884_v44 = vadd.f32 1.0, %v2274_v6  ;;  %v1883_v52 = vsel %vm1882_vm7, 1.0, %v2274_v6 }
 0x2d9   : > { %2275 = vrcp.f32 %v1884_v44  ;;  %v1896_v45 = vand.u32 2147483648, %v1884_v44  ;;  %v1894_v40 = vand.u32 2147483647, %v1884_v44  ;;  %vm1890_vm15 = vweird.f32 %v1884_v44 }
 0x2db   : > { %v1897_v12 = vor.u32 1.1754944e-38, %v1896_v45  ;;  %vm1895_vm9 = vcmp.eq.f32.partialorder %v1894_v40, 8.507059e+37 }
 0x2df   : > { %v2276_v22 = vpop.eup %2275 }
 0x2e0   : > { %v1886_v63 = vmul.f32 %v2276_v22, %v1884_v44  ;;  %vm1891_vm4 = vweird.f32 %v2276_v22 }
 0x2e1   : > { %vm1892_vm1 = vmor %vm1890_vm15, %vm1891_vm4 }
 0x2e2   : > { %v1887_v34 = vsub.f32 1.0, %v1886_v63 }
 0x2e4   : > { %v1888_v28 = vmul.f32 %v2276_v22, %v1887_v34 }
 0x2e6   : > { %v1889_v23 = vadd.f32 %v2276_v22, %v1888_v28 }
 0x2e8   : > { %v1893_v53 = vsel %vm1892_vm1, %v2276_v22, %v1889_v23 }
 0x2e9   : > { %v1898_v27 = vsel %vm1895_vm9, %v1897_v12, %v1893_v53 }
 0x2ea   : > { %v1899_v62 = vmul.f32 %v1898_v27, %v1883_v52 }
 0x2ec   : > { %1900 = vst.msk [vmem:[%s235_s27] sm:$0x3] %vm2630_vm0, %v1899_v62 }
 0x2ed   : > { %2382 = shalt.err (!%p2379_p0)
}
 0x2ee   : > { %2148 = dma.vmem_to_hbm [thread:$0]  (%p2593_p2), %s1915_s28, 32, %s1917_s29, %s1902_s15  }
 0x2ef PF: > { %s1928_s6 = sand.u32 1, %s2425_s12   ;;  %p2162_p4 = pnand %p2027_p8, %p2566_p5 }
 0x2f0   : > { %s1929_s21 = scalar_lea.sflag [#allocation6], %s1928_s6 }
 0x2f1   : > { %p2163_p6 = pneg %p2162_p4 }
 0x2f3   : > { %2420 = dma.done.wait (%p2163_p6), %s1929_s21, 32  }
 0x2f4   : > { %2422 = vsyncadd (%p2163_p6), %s1929_s21, 4294967264  ;;  %s21_s17 = sadd.s32 1, %s2445_s17   ;;  %s4486_s12 = smov %s2429_s13 }
 0x2f5   : > { %p18_p9 = scmp.ge.s32.totalorder %s21_s17, 4   ;;  %s4487_s13 = smov %s2433_s14 }
 0x2f6   : > { %s4488_s14 = smov %s2603_s24  ;;  %s4489_s15 = smov %s2441_s16 }
 0x2f7   : > { %s4490_s16 = smov %s4492_s8  ;;  %20 = sbr.rel (!%p18_p9) target bundleno = 8 (0x8), region = 95 }
 0x2fc   :  { %1935 = vsyncpa [#allocation5], 1 }
 0x2fd   :  { %1937 = vsyncpa [#allocation5 + $0x1], 1 }
 0x2fe   :  { %1938 = vsyncpa [#allocation10], 1 }
 0x2ff   :  { %1940 = vsyncpa [#allocation10 + $0x1], 1 }
 0x300   :  { %1941 = vsyncpa [#allocation6], 1 }
 0x301   :  { %1943 = vsyncpa [#allocation6 + $0x1], 1 }
 0x302   :  { %1944 = vsyncpa [#allocation7], 1 }
 0x303   :  { %1946 = vsyncpa [#allocation7 + $0x1], 1 }

</bundles_post_ra>
